<compile_context>
chip_gen: v6e
topology: v6e:2x2x1
jax: 0.10.0
libtpu: 0.0.40
codegen_flags: <defaults>
</compile_context>

<pallas_src>
import functools

import jax
import jax.numpy as jnp
from jax.experimental import pallas as pl
from jax.experimental.pallas import tpu as pltpu

EPS_LN = 1e-6        # LayerNorm eps
EPS_NORM = 1e-12     # torch.nn.functional.normalize default eps


# ---------------------------------------------------------------- kernel helpers

def _dwconv3x3(z, w9, tap_masks, W):
    """Depthwise 3x3 conv with zero padding on a (C, H*W) tensor (spatial on lanes).

    z         : (C, HW) f32
    w9        : (C, 9)  f32, per-channel taps, column t = (dh+1)*3 + (dw+1)
    tap_masks : (9, HW) f32 0/1 validity masks (zero padding) in the same tap order
    """
    HW = z.shape[1]
    acc = z * w9[:, 4:5]                                   # centre tap, always valid
    for dh in (-1, 0, 1):
        for dw in (-1, 0, 1):
            if dh == 0 and dw == 0:
                continue
            t = (dh + 1) * 3 + (dw + 1)
            off = dh * W + dw
            # shifted[:, p] = z[:, p + off]; wrap-around entries are killed by the mask
            shifted = pltpu.roll(z, (-off) % HW, axis=1)   # XLU lane rotation
            acc = acc + (shifted * tap_masks[t:t + 1]) * w9[:, t:t + 1]
    return acc


def _mcc_kernel(x_ref, lnw_ref, lnb_ref, wpw_ref, wdw1_ref, temp_ref, bias_ref,
                mask_ref, wproj_ref, wff1_ref, wdw2_ref, out_ref, *, W):
    """Fully fused MCC forward for one batch element, channels-first (C, H*W)."""
    C = x_ref.shape[1]
    x = x_ref[0].astype(jnp.float32)                        # (C, HW), lanes = HW

    # ---- LayerNorm over the channel axis (channels_first semantics) ----
    mu = jnp.mean(x, axis=0, keepdims=True)
    xc = x - mu
    var = jnp.mean(xc * xc, axis=0, keepdims=True)
    y = xc * jax.lax.rsqrt(var + EPS_LN) * lnw_ref[...] + lnb_ref[...]

    # ---- 1x1 conv C -> 3C on the MXU (bf16 operands, f32 accumulate) ----
    qkv = jnp.dot(wpw_ref[...], y.astype(jnp.bfloat16),
                  preferred_element_type=jnp.float32)       # (3C, HW)

    tap_m = mask_ref[...]                                   # (9, HW) 0/1 masks

    # ---- depthwise 3x3 (zero padding): lane rolls + masks, no pad scratch ----
    qkv = _dwconv3x3(qkv, wdw1_ref[...], tap_m, W)

    q = qkv[0:C]                                            # sublane-aligned slices
    k = qkv[C:2 * C]
    v = qkv[2 * C:3 * C]

    # ---- channel attention: all heads in one (C, C) gram matrix ----
    # F.normalize over HW is applied as post/pre scaling of the gram instead of
    # materialising qn/kn;  temperature is folded into the row scale.
    eps2 = EPS_NORM * EPS_NORM
    qs = jax.lax.rsqrt(jnp.maximum(jnp.sum(q * q, axis=1, keepdims=True), eps2))
    ks = jax.lax.rsqrt(jnp.maximum(jnp.sum(k * k, axis=1, keepdims=True), eps2))
    qs = qs * temp_ref[...]                                 # (C, 1)

    gram = jax.lax.dot_general(q.astype(jnp.bfloat16), (k * ks).astype(jnp.bfloat16),
                               (((1,), (1,)), ((), ())),
                               preferred_element_type=jnp.float32)   # (C, C)
    # row scale (1/||q_i|| * temperature) + additive block-diagonal head mask
    logits = gram * qs + bias_ref[...]
    logits = logits - jnp.max(logits, axis=1, keepdims=True)
    e = jnp.exp(logits)
    # NOTE: approx reciprocal (EUP) -> not bit-identical to torch's exact divide.
    probs = e * pl.reciprocal(jnp.sum(e, axis=1, keepdims=True), approx=True)

    att = jnp.dot(probs.astype(jnp.bfloat16), v.astype(jnp.bfloat16),
                  preferred_element_type=jnp.float32)       # (C, HW)

    # ---- project_out 1x1 + residual with the raw input ----
    y2 = jnp.dot(wproj_ref[...], att.astype(jnp.bfloat16),
                 preferred_element_type=jnp.float32) + x

    # ---- feedforward: 1x1 conv, GELU, depthwise 3x3, GELU (no second residual) ----
    z = jnp.dot(wff1_ref[...], y2.astype(jnp.bfloat16),
                preferred_element_type=jnp.float32)
    z = jax.nn.gelu(z, approximate=True)                    # tanh form -> EUP
    z = _dwconv3x3(z, wdw2_ref[...], tap_m, W)
    out_ref[0] = jax.nn.gelu(z, approximate=True)


# ---------------------------------------------------------------- public wrapper

def mcc_forward(x_nchw, params, num_heads):
    B, C, H, W = x_nchw.shape
    assert C % num_heads == 0
    HW = H * W
    C3 = 3 * C
    cph = C // num_heads

    # NCHW -> (B, C, H*W) is a free reshape: no boundary transposes at all.
    xf = x_nchw.reshape(B, C, HW).astype(jnp.float32)

    # bf16 matmul operands (accumulation stays f32 inside the kernel)
    w_pw = params["w_pw"].astype(jnp.bfloat16)
    w_proj = params["w_proj"].astype(jnp.bfloat16)
    w_ff1 = params["w_ff1"].astype(jnp.bfloat16)

    # per-channel temperature (head h covers channels [h*cph, (h+1)*cph))
    temp_c = jnp.repeat(params["temperature"].reshape(num_heads), cph).reshape(C, 1)

    # additive block-diagonal head mask for the (C, C) attention logits
    head_id = jnp.arange(C, dtype=jnp.int32) // cph
    attn_bias = jnp.where(head_id[:, None] == head_id[None, :],
                          0.0, -1e30).astype(jnp.float32)   # (C, C)

    # per-tap zero-padding validity masks for the depthwise 3x3 convs
    pp = jnp.arange(HW, dtype=jnp.int32)
    hh, ww = pp // W, pp % W
    tap_masks = jnp.stack(
        [((hh + dh >= 0) & (hh + dh < H) & (ww + dw >= 0) & (ww + dw < W))
         for dh in (-1, 0, 1) for dw in (-1, 0, 1)]
    ).astype(jnp.float32)                                    # (9, HW)

    out = pl.pallas_call(
        functools.partial(_mcc_kernel, W=W),
        out_shape=jax.ShapeDtypeStruct((B, C, HW), jnp.float32),
        grid=(B,),
        in_specs=[
            pl.BlockSpec((1, C, HW), lambda b: (b, 0, 0)),   # x
            pl.BlockSpec((C, 1), lambda b: (0, 0)),          # ln weight
            pl.BlockSpec((C, 1), lambda b: (0, 0)),          # ln bias
            pl.BlockSpec((C3, C), lambda b: (0, 0)),          # pwconv weight (bf16)
            pl.BlockSpec((C3, 9), lambda b: (0, 0)),          # dwconv (qkv) taps
            pl.BlockSpec((C, 1), lambda b: (0, 0)),           # temperature per channel
            pl.BlockSpec((C, C), lambda b: (0, 0)),           # block-diag head bias
            pl.BlockSpec((9, HW), lambda b: (0, 0)),          # dwconv edge masks
            pl.BlockSpec((C, C), lambda b: (0, 0)),           # project_out weight (bf16)
            pl.BlockSpec((C, C), lambda b: (0, 0)),           # feedforward 1x1 weight (bf16)
            pl.BlockSpec((C, 9), lambda b: (0, 0)),           # feedforward dwconv taps
        ],
        out_specs=pl.BlockSpec((1, C, HW), lambda b: (b, 0, 0)),
        compiler_params=pltpu.CompilerParams(dimension_semantics=("parallel",)),
    )(xf, params["ln_w"], params["ln_b"], w_pw, params["w_dw_qkv"],
      temp_c, attn_bias, tap_masks, w_proj, w_ff1, params["w_dw_ff"])

    return out.reshape(B, C, H, W)


def init_params(key, f_number, num_heads):
    C = f_number
    ks = jax.random.split(key, 5)
    s = 0.1
    return {
        "ln_w": jnp.ones((C, 1), jnp.float32),
        "ln_b": jnp.zeros((C, 1), jnp.float32),
        "temperature": jnp.ones((num_heads,), jnp.float32),
        # conv weights (bias=False); depthwise weights are torch (C,1,3,3) -> (C, 9)
        "w_pw": s * jax.random.normal(ks[0], (3 * C, C), jnp.float32),
        "w_dw_qkv": s * jax.random.normal(ks[1], (3 * C, 9), jnp.float32),
        "w_proj": s * jax.random.normal(ks[2], (C, C), jnp.float32),
        "w_ff1": s * jax.random.normal(ks[3], (C, C), jnp.float32),
        "w_dw_ff": s * jax.random.normal(ks[4], (C, 9), jnp.float32),
    }


# ---------------------------------------------------------------- pure-JAX reference

def _ref_dwconv(x_img, w9):
    B, C, H, W = x_img.shape
    xp = jnp.pad(x_img, ((0, 0), (0, 0), (1, 1), (1, 1)))
    w = w9.reshape(C, 3, 3)
    acc = jnp.zeros_like(x_img)
    for i in range(3):
        for j in range(3):
            acc = acc + xp[:, :, i:i + H, j:j + W] * w[None, :, i, j, None, None]
    return acc


def mcc_reference(x, params, num_heads):
    """Plain-XLA f32 reference matching the PyTorch MCC forward."""
    hi = jax.lax.Precision.HIGHEST
    B, C, H, W = x.shape
    HW = H * W
    cph = C // num_heads
    xf = x.astype(jnp.float32).reshape(B, C, HW)
    mu = jnp.mean(xf, axis=1, keepdims=True)
    var = jnp.mean((xf - mu) ** 2, axis=1, keepdims=True)
    y = (xf - mu) / jnp.sqrt(var + EPS_LN)
    y = params["ln_w"].reshape(1, C, 1) * y + params["ln_b"].reshape(1, C, 1)
    qkv = jnp.einsum("oc,bcp->bop", params["w_pw"], y, precision=hi)
    qkv = _ref_dwconv(qkv.reshape(B, 3 * C, H, W),
                      params["w_dw_qkv"]).reshape(B, 3 * C, HW)
    q, k, v = qkv[:, :C], qkv[:, C:2 * C], qkv[:, 2 * C:]
    q = q.reshape(B, num_heads, cph, HW)
    k = k.reshape(B, num_heads, cph, HW)
    v = v.reshape(B, num_heads, cph, HW)
    q = q / jnp.maximum(jnp.sqrt(jnp.sum(q * q, axis=-1, keepdims=True)), EPS_NORM)
    k = k / jnp.maximum(jnp.sqrt(jnp.sum(k * k, axis=-1, keepdims=True)), EPS_NORM)
    attn = jnp.einsum("bhcp,bhdp->bhcd", q, k, precision=hi)
    attn = attn * params["temperature"].reshape(1, num_heads, 1, 1)
    attn = jax.nn.softmax(attn, axis=-1)
    o = jnp.einsum("bhcd,bhdp->bhcp", attn, v, precision=hi).reshape(B, C, HW)
    o = jnp.einsum("oc,bcp->bop", params["w_proj"], o, precision=hi) + xf
    z = jnp.einsum("oc,bcp->bop", params["w_ff1"], o, precision=hi)
    z = jax.nn.gelu(z, approximate=False)
    z = _ref_dwconv(z.reshape(B, C, H, W), params["w_dw_ff"])
    return jax.nn.gelu(z, approximate=False)


if __name__ == "__main__":
    key = jax.random.PRNGKey(0)
    kx, kp = jax.random.split(key)

    B, C, H, W = 2, 32, 16, 16
    num_heads = 4

    x = jax.random.normal(kx, (B, C, H, W), jnp.float32)
    params = init_params(kp, C, num_heads)

    fwd = jax.jit(functools.partial(mcc_forward, num_heads=num_heads))
    out = jax.block_until_ready(fwd(x, params))
    assert out.shape == (B, C, H, W)
    assert bool(jnp.all(jnp.isfinite(out)))

    # correctness self-check against the pure-JAX f32 reference
    # (tolerance covers bf16 matmul operands, tanh-GELU and the approx reciprocal)
    ref = mcc_reference(x, params, num_heads)
    err = float(jnp.max(jnp.abs(out - ref)))
    assert err < 3e-2, f"kernel/reference mismatch: max abs err = {err}"

    print("KERNEL_OK")
</pallas_src>

<mosaic_0001>
module attributes {stable_mosaic.version = 11 : i64} {
  func.func @_mcc_kernel(%arg0: i32, %arg1: memref<1x32x256xf32, #tpu.memory_space<vmem>>, %arg2: memref<32x1xf32, #tpu.memory_space<vmem>>, %arg3: memref<32x1xf32, #tpu.memory_space<vmem>>, %arg4: memref<96x32xbf16, #tpu.memory_space<vmem>>, %arg5: memref<96x9xf32, #tpu.memory_space<vmem>>, %arg6: memref<32x1xf32, #tpu.memory_space<vmem>>, %arg7: memref<32x32xf32, #tpu.memory_space<vmem>>, %arg8: memref<9x256xf32, #tpu.memory_space<vmem>>, %arg9: memref<32x32xbf16, #tpu.memory_space<vmem>>, %arg10: memref<32x32xbf16, #tpu.memory_space<vmem>>, %arg11: memref<32x9xf32, #tpu.memory_space<vmem>>, %arg12: memref<1x32x256xf32, #tpu.memory_space<vmem>>) attributes {dimension_semantics = [#tpu.dimension_semantics<parallel>], iteration_bounds = array<i64: 2>, scalar_prefetch = 0 : i64, scratch_operands = 0 : i64, tpu.core_type = #tpu.core_type<tc>, window_params = [{transform_indices = @transform_0, window_bounds = array<i64: 1, 32, 256>}, {pipeline_mode = #tpu.pipeline_mode<synchronous>, transform_indices = @transform_1, window_bounds = array<i64: 32, 1>}, {pipeline_mode = #tpu.pipeline_mode<synchronous>, transform_indices = @transform_2, window_bounds = array<i64: 32, 1>}, {pipeline_mode = #tpu.pipeline_mode<synchronous>, transform_indices = @transform_3, window_bounds = array<i64: 96, 32>}, {pipeline_mode = #tpu.pipeline_mode<synchronous>, transform_indices = @transform_4, window_bounds = array<i64: 96, 9>}, {pipeline_mode = #tpu.pipeline_mode<synchronous>, transform_indices = @transform_5, window_bounds = array<i64: 32, 1>}, {pipeline_mode = #tpu.pipeline_mode<synchronous>, transform_indices = @transform_6, window_bounds = array<i64: 32, 32>}, {pipeline_mode = #tpu.pipeline_mode<synchronous>, transform_indices = @transform_7, window_bounds = array<i64: 9, 256>}, {pipeline_mode = #tpu.pipeline_mode<synchronous>, transform_indices = @transform_8, window_bounds = array<i64: 32, 32>}, {pipeline_mode = #tpu.pipeline_mode<synchronous>, transform_indices = @transform_9, window_bounds = array<i64: 32, 32>}, {pipeline_mode = #tpu.pipeline_mode<synchronous>, transform_indices = @transform_10, window_bounds = array<i64: 32, 9>}, {transform_indices = @transform_11, window_bounds = array<i64: 1, 32, 256>}]} {
    %c0 = arith.constant 0 : index
    %c0_0 = arith.constant 0 : index
    %c0_1 = arith.constant 0 : index
    %0 = vector.load %arg1[%c0, %c0_0, %c0_1] : memref<1x32x256xf32, #tpu.memory_space<vmem>>, vector<1x32x256xf32>
    %1 = vector.shape_cast %0 : vector<1x32x256xf32> to vector<32x256xf32>
    %cst = arith.constant dense<0.000000e+00> : vector<256xf32>
    %2 = vector.multi_reduction <add>, %1, %cst [0] : vector<32x256xf32> to vector<256xf32>
    %3 = vector.shape_cast %2 : vector<256xf32> to vector<1x256xf32>
    %cst_2 = arith.constant 3.200000e+01 : f32
    %4 = vector.broadcast %cst_2 : f32 to vector<1x256xf32>
    %5 = arith.divf %3, %4 : vector<1x256xf32>
    %6 = vector.broadcast %5 : vector<1x256xf32> to vector<32x256xf32>
    %7 = arith.subf %1, %6 : vector<32x256xf32>
    %8 = arith.mulf %7, %7 : vector<32x256xf32>
    %cst_3 = arith.constant dense<0.000000e+00> : vector<256xf32>
    %9 = vector.multi_reduction <add>, %8, %cst_3 [0] : vector<32x256xf32> to vector<256xf32>
    %10 = vector.shape_cast %9 : vector<256xf32> to vector<1x256xf32>
    %cst_4 = arith.constant 3.200000e+01 : f32
    %11 = vector.broadcast %cst_4 : f32 to vector<1x256xf32>
    %12 = arith.divf %10, %11 : vector<1x256xf32>
    %cst_5 = arith.constant 9.99999997E-7 : f32
    %13 = vector.broadcast %cst_5 : f32 to vector<1x256xf32>
    %14 = arith.addf %12, %13 : vector<1x256xf32>
    %15 = math.rsqrt %14 : vector<1x256xf32>
    %16 = vector.broadcast %15 : vector<1x256xf32> to vector<32x256xf32>
    %17 = arith.mulf %7, %16 : vector<32x256xf32>
    %c0_6 = arith.constant 0 : index
    %c0_7 = arith.constant 0 : index
    %18 = vector.load %arg2[%c0_6, %c0_7] : memref<32x1xf32, #tpu.memory_space<vmem>>, vector<32x1xf32>
    %19 = vector.broadcast %18 : vector<32x1xf32> to vector<32x256xf32>
    %20 = arith.mulf %17, %19 : vector<32x256xf32>
    %c0_8 = arith.constant 0 : index
    %c0_9 = arith.constant 0 : index
    %21 = vector.load %arg3[%c0_8, %c0_9] : memref<32x1xf32, #tpu.memory_space<vmem>>, vector<32x1xf32>
    %22 = vector.broadcast %21 : vector<32x1xf32> to vector<32x256xf32>
    %23 = arith.addf %20, %22 : vector<32x256xf32>
    %c0_10 = arith.constant 0 : index
    %c0_11 = arith.constant 0 : index
    %24 = vector.load %arg4[%c0_10, %c0_11] : memref<96x32xbf16, #tpu.memory_space<vmem>>, vector<96x32xbf16>
    %25 = arith.truncf %23 : vector<32x256xf32> to vector<32x256xbf16>
    %cst_12 = arith.constant dense<0.000000e+00> : vector<96x256xf32>
    %26 = tpu.matmul %24, %25, %cst_12 {dimension_numbers = #tpu.dot_dimension_numbers<[1], [0], [0], [1], [0, 0, 1, 1], [], []>} : vector<96x32xbf16>, vector<32x256xbf16>, vector<96x256xf32> -> vector<96x256xf32>
    %c0_13 = arith.constant 0 : index
    %c0_14 = arith.constant 0 : index
    %27 = vector.load %arg8[%c0_13, %c0_14] : memref<9x256xf32, #tpu.memory_space<vmem>>, vector<9x256xf32>
    %c0_15 = arith.constant 0 : index
    %c0_16 = arith.constant 0 : index
    %28 = vector.load %arg5[%c0_15, %c0_16] : memref<96x9xf32, #tpu.memory_space<vmem>>, vector<96x9xf32>
    %29 = vector.extract_strided_slice %28 {offsets = [0, 4], sizes = [96, 1], strides = [1, 1]} : vector<96x9xf32> to vector<96x1xf32>
    %30 = vector.broadcast %29 : vector<96x1xf32> to vector<96x256xf32>
    %31 = arith.mulf %26, %30 : vector<96x256xf32>
    %c17_i32 = arith.constant 17 : i32
    %32 = tpu.dynamic_rotate %26 by %c17_i32 dim 1 : vector<96x256xf32>, i32 -> vector<96x256xf32>
    %33 = vector.extract_strided_slice %27 {offsets = [0, 0], sizes = [1, 256], strides = [1, 1]} : vector<9x256xf32> to vector<1x256xf32>
    %34 = vector.broadcast %33 : vector<1x256xf32> to vector<96x256xf32>
    %35 = arith.mulf %32, %34 : vector<96x256xf32>
    %36 = vector.extract_strided_slice %28 {offsets = [0, 0], sizes = [96, 1], strides = [1, 1]} : vector<96x9xf32> to vector<96x1xf32>
    %37 = vector.broadcast %36 : vector<96x1xf32> to vector<96x256xf32>
    %38 = arith.mulf %35, %37 : vector<96x256xf32>
    %39 = arith.addf %31, %38 : vector<96x256xf32>
    %c16_i32 = arith.constant 16 : i32
    %40 = tpu.dynamic_rotate %26 by %c16_i32 dim 1 : vector<96x256xf32>, i32 -> vector<96x256xf32>
    %41 = vector.extract_strided_slice %27 {offsets = [1, 0], sizes = [1, 256], strides = [1, 1]} : vector<9x256xf32> to vector<1x256xf32>
    %42 = vector.broadcast %41 : vector<1x256xf32> to vector<96x256xf32>
    %43 = arith.mulf %40, %42 : vector<96x256xf32>
    %44 = vector.extract_strided_slice %28 {offsets = [0, 1], sizes = [96, 1], strides = [1, 1]} : vector<96x9xf32> to vector<96x1xf32>
    %45 = vector.broadcast %44 : vector<96x1xf32> to vector<96x256xf32>
    %46 = arith.mulf %43, %45 : vector<96x256xf32>
    %47 = arith.addf %39, %46 : vector<96x256xf32>
    %c15_i32 = arith.constant 15 : i32
    %48 = tpu.dynamic_rotate %26 by %c15_i32 dim 1 : vector<96x256xf32>, i32 -> vector<96x256xf32>
    %49 = vector.extract_strided_slice %27 {offsets = [2, 0], sizes = [1, 256], strides = [1, 1]} : vector<9x256xf32> to vector<1x256xf32>
    %50 = vector.broadcast %49 : vector<1x256xf32> to vector<96x256xf32>
    %51 = arith.mulf %48, %50 : vector<96x256xf32>
    %52 = vector.extract_strided_slice %28 {offsets = [0, 2], sizes = [96, 1], strides = [1, 1]} : vector<96x9xf32> to vector<96x1xf32>
    %53 = vector.broadcast %52 : vector<96x1xf32> to vector<96x256xf32>
    %54 = arith.mulf %51, %53 : vector<96x256xf32>
    %55 = arith.addf %47, %54 : vector<96x256xf32>
    %c1_i32 = arith.constant 1 : i32
    %56 = tpu.dynamic_rotate %26 by %c1_i32 dim 1 : vector<96x256xf32>, i32 -> vector<96x256xf32>
    %57 = vector.extract_strided_slice %27 {offsets = [3, 0], sizes = [1, 256], strides = [1, 1]} : vector<9x256xf32> to vector<1x256xf32>
    %58 = vector.broadcast %57 : vector<1x256xf32> to vector<96x256xf32>
    %59 = arith.mulf %56, %58 : vector<96x256xf32>
    %60 = vector.extract_strided_slice %28 {offsets = [0, 3], sizes = [96, 1], strides = [1, 1]} : vector<96x9xf32> to vector<96x1xf32>
    %61 = vector.broadcast %60 : vector<96x1xf32> to vector<96x256xf32>
    %62 = arith.mulf %59, %61 : vector<96x256xf32>
    %63 = arith.addf %55, %62 : vector<96x256xf32>
    %c255_i32 = arith.constant 255 : i32
    %64 = tpu.dynamic_rotate %26 by %c255_i32 dim 1 : vector<96x256xf32>, i32 -> vector<96x256xf32>
    %65 = vector.extract_strided_slice %27 {offsets = [5, 0], sizes = [1, 256], strides = [1, 1]} : vector<9x256xf32> to vector<1x256xf32>
    %66 = vector.broadcast %65 : vector<1x256xf32> to vector<96x256xf32>
    %67 = arith.mulf %64, %66 : vector<96x256xf32>
    %68 = vector.extract_strided_slice %28 {offsets = [0, 5], sizes = [96, 1], strides = [1, 1]} : vector<96x9xf32> to vector<96x1xf32>
    %69 = vector.broadcast %68 : vector<96x1xf32> to vector<96x256xf32>
    %70 = arith.mulf %67, %69 : vector<96x256xf32>
    %71 = arith.addf %63, %70 : vector<96x256xf32>
    %c241_i32 = arith.constant 241 : i32
    %72 = tpu.dynamic_rotate %26 by %c241_i32 dim 1 : vector<96x256xf32>, i32 -> vector<96x256xf32>
    %73 = vector.extract_strided_slice %27 {offsets = [6, 0], sizes = [1, 256], strides = [1, 1]} : vector<9x256xf32> to vector<1x256xf32>
    %74 = vector.broadcast %73 : vector<1x256xf32> to vector<96x256xf32>
    %75 = arith.mulf %72, %74 : vector<96x256xf32>
    %76 = vector.extract_strided_slice %28 {offsets = [0, 6], sizes = [96, 1], strides = [1, 1]} : vector<96x9xf32> to vector<96x1xf32>
    %77 = vector.broadcast %76 : vector<96x1xf32> to vector<96x256xf32>
    %78 = arith.mulf %75, %77 : vector<96x256xf32>
    %79 = arith.addf %71, %78 : vector<96x256xf32>
    %c240_i32 = arith.constant 240 : i32
    %80 = tpu.dynamic_rotate %26 by %c240_i32 dim 1 : vector<96x256xf32>, i32 -> vector<96x256xf32>
    %81 = vector.extract_strided_slice %27 {offsets = [7, 0], sizes = [1, 256], strides = [1, 1]} : vector<9x256xf32> to vector<1x256xf32>
    %82 = vector.broadcast %81 : vector<1x256xf32> to vector<96x256xf32>
    %83 = arith.mulf %80, %82 : vector<96x256xf32>
    %84 = vector.extract_strided_slice %28 {offsets = [0, 7], sizes = [96, 1], strides = [1, 1]} : vector<96x9xf32> to vector<96x1xf32>
    %85 = vector.broadcast %84 : vector<96x1xf32> to vector<96x256xf32>
    %86 = arith.mulf %83, %85 : vector<96x256xf32>
    %87 = arith.addf %79, %86 : vector<96x256xf32>
    %c239_i32 = arith.constant 239 : i32
    %88 = tpu.dynamic_rotate %26 by %c239_i32 dim 1 : vector<96x256xf32>, i32 -> vector<96x256xf32>
    %89 = vector.extract_strided_slice %27 {offsets = [8, 0], sizes = [1, 256], strides = [1, 1]} : vector<9x256xf32> to vector<1x256xf32>
    %90 = vector.broadcast %89 : vector<1x256xf32> to vector<96x256xf32>
    %91 = arith.mulf %88, %90 : vector<96x256xf32>
    %92 = vector.extract_strided_slice %28 {offsets = [0, 8], sizes = [96, 1], strides = [1, 1]} : vector<96x9xf32> to vector<96x1xf32>
    %93 = vector.broadcast %92 : vector<96x1xf32> to vector<96x256xf32>
    %94 = arith.mulf %91, %93 : vector<96x256xf32>
    %95 = arith.addf %87, %94 : vector<96x256xf32>
    %96 = vector.extract_strided_slice %95 {offsets = [0, 0], sizes = [32, 256], strides = [1, 1]} : vector<96x256xf32> to vector<32x256xf32>
    %97 = vector.extract_strided_slice %95 {offsets = [32, 0], sizes = [32, 256], strides = [1, 1]} : vector<96x256xf32> to vector<32x256xf32>
    %98 = vector.extract_strided_slice %95 {offsets = [64, 0], sizes = [32, 256], strides = [1, 1]} : vector<96x256xf32> to vector<32x256xf32>
    %99 = arith.mulf %96, %96 : vector<32x256xf32>
    %cst_17 = arith.constant dense<0.000000e+00> : vector<32xf32>
    %100 = vector.multi_reduction <add>, %99, %cst_17 [1] : vector<32x256xf32> to vector<32xf32>
    %101 = vector.shape_cast %100 : vector<32xf32> to vector<32x1xf32>
    %cst_18 = arith.constant 1.000000e-24 : f32
    %102 = vector.broadcast %cst_18 : f32 to vector<32x1xf32>
    %103 = arith.maximumf %101, %102 : vector<32x1xf32>
    %104 = math.rsqrt %103 : vector<32x1xf32>
    %105 = arith.mulf %97, %97 : vector<32x256xf32>
    %cst_19 = arith.constant dense<0.000000e+00> : vector<32xf32>
    %106 = vector.multi_reduction <add>, %105, %cst_19 [1] : vector<32x256xf32> to vector<32xf32>
    %107 = vector.shape_cast %106 : vector<32xf32> to vector<32x1xf32>
    %cst_20 = arith.constant 1.000000e-24 : f32
    %108 = vector.broadcast %cst_20 : f32 to vector<32x1xf32>
    %109 = arith.maximumf %107, %108 : vector<32x1xf32>
    %110 = math.rsqrt %109 : vector<32x1xf32>
    %c0_21 = arith.constant 0 : index
    %c0_22 = arith.constant 0 : index
    %111 = vector.load %arg6[%c0_21, %c0_22] : memref<32x1xf32, #tpu.memory_space<vmem>>, vector<32x1xf32>
    %112 = arith.mulf %104, %111 : vector<32x1xf32>
    %113 = arith.truncf %96 : vector<32x256xf32> to vector<32x256xbf16>
    %114 = vector.broadcast %110 : vector<32x1xf32> to vector<32x256xf32>
    %115 = arith.mulf %97, %114 : vector<32x256xf32>
    %116 = arith.truncf %115 : vector<32x256xf32> to vector<32x256xbf16>
    %cst_23 = arith.constant dense<0.000000e+00> : vector<32x32xf32>
    %117 = tpu.matmul %113, %116, %cst_23 {dimension_numbers = #tpu.dot_dimension_numbers<[1], [1], [0], [0], [0, 0, 1, 0], [], []>} : vector<32x256xbf16>, vector<32x256xbf16>, vector<32x32xf32> -> vector<32x32xf32>
    %118 = vector.broadcast %112 : vector<32x1xf32> to vector<32x32xf32>
    %119 = arith.mulf %117, %118 : vector<32x32xf32>
    %c0_24 = arith.constant 0 : index
    %c0_25 = arith.constant 0 : index
    %120 = vector.load %arg7[%c0_24, %c0_25] : memref<32x32xf32, #tpu.memory_space<vmem>>, vector<32x32xf32>
    %121 = arith.addf %119, %120 : vector<32x32xf32>
    %cst_26 = arith.constant dense<0xFF800000> : vector<32xf32>
    %122 = vector.multi_reduction <maximumf>, %121, %cst_26 [1] : vector<32x32xf32> to vector<32xf32>
    %123 = vector.shape_cast %122 : vector<32xf32> to vector<32x1xf32>
    %124 = vector.broadcast %123 : vector<32x1xf32> to vector<32x32xf32>
    %125 = arith.subf %121, %124 : vector<32x32xf32>
    %126 = math.exp %125 : vector<32x32xf32>
    %cst_27 = arith.constant dense<0.000000e+00> : vector<32xf32>
    %127 = vector.multi_reduction <add>, %126, %cst_27 [1] : vector<32x32xf32> to vector<32xf32>
    %128 = vector.shape_cast %127 : vector<32xf32> to vector<32x1xf32>
    %129 = tpu.reciprocal %128 {approx = true} : vector<32x1xf32> -> vector<32x1xf32>
    %130 = vector.broadcast %129 : vector<32x1xf32> to vector<32x32xf32>
    %131 = arith.mulf %126, %130 : vector<32x32xf32>
    %132 = arith.truncf %131 : vector<32x32xf32> to vector<32x32xbf16>
    %133 = arith.truncf %98 : vector<32x256xf32> to vector<32x256xbf16>
    %cst_28 = arith.constant dense<0.000000e+00> : vector<32x256xf32>
    %134 = tpu.matmul %132, %133, %cst_28 {dimension_numbers = #tpu.dot_dimension_numbers<[1], [0], [0], [1], [0, 0, 1, 1], [], []>} : vector<32x32xbf16>, vector<32x256xbf16>, vector<32x256xf32> -> vector<32x256xf32>
    %c0_29 = arith.constant 0 : index
    %c0_30 = arith.constant 0 : index
    %135 = vector.load %arg9[%c0_29, %c0_30] : memref<32x32xbf16, #tpu.memory_space<vmem>>, vector<32x32xbf16>
    %136 = arith.truncf %134 : vector<32x256xf32> to vector<32x256xbf16>
    %cst_31 = arith.constant dense<0.000000e+00> : vector<32x256xf32>
    %137 = tpu.matmul %135, %136, %cst_31 {dimension_numbers = #tpu.dot_dimension_numbers<[1], [0], [0], [1], [0, 0, 1, 1], [], []>} : vector<32x32xbf16>, vector<32x256xbf16>, vector<32x256xf32> -> vector<32x256xf32>
    %138 = arith.addf %137, %1 : vector<32x256xf32>
    %c0_32 = arith.constant 0 : index
    %c0_33 = arith.constant 0 : index
    %139 = vector.load %arg10[%c0_32, %c0_33] : memref<32x32xbf16, #tpu.memory_space<vmem>>, vector<32x32xbf16>
    %140 = arith.truncf %138 : vector<32x256xf32> to vector<32x256xbf16>
    %cst_34 = arith.constant dense<0.000000e+00> : vector<32x256xf32>
    %141 = tpu.matmul %139, %140, %cst_34 {dimension_numbers = #tpu.dot_dimension_numbers<[1], [0], [0], [1], [0, 0, 1, 1], [], []>} : vector<32x32xbf16>, vector<32x256xbf16>, vector<32x256xf32> -> vector<32x256xf32>
    %142 = arith.mulf %141, %141 : vector<32x256xf32>
    %143 = arith.mulf %141, %142 : vector<32x256xf32>
    %cst_35 = arith.constant 4.471500e-02 : f32
    %144 = vector.broadcast %cst_35 : f32 to vector<32x256xf32>
    %145 = arith.mulf %144, %143 : vector<32x256xf32>
    %146 = arith.addf %141, %145 : vector<32x256xf32>
    %cst_36 = arith.constant 0.797884583 : f32
    %147 = vector.broadcast %cst_36 : f32 to vector<32x256xf32>
    %148 = arith.mulf %147, %146 : vector<32x256xf32>
    %149 = math.tanh %148 : vector<32x256xf32>
    %cst_37 = arith.constant 1.000000e+00 : f32
    %150 = vector.broadcast %cst_37 : f32 to vector<32x256xf32>
    %151 = arith.addf %150, %149 : vector<32x256xf32>
    %cst_38 = arith.constant 5.000000e-01 : f32
    %152 = vector.broadcast %cst_38 : f32 to vector<32x256xf32>
    %153 = arith.mulf %152, %151 : vector<32x256xf32>
    %154 = arith.mulf %141, %153 : vector<32x256xf32>
    %c0_39 = arith.constant 0 : index
    %c0_40 = arith.constant 0 : index
    %155 = vector.load %arg11[%c0_39, %c0_40] : memref<32x9xf32, #tpu.memory_space<vmem>>, vector<32x9xf32>
    %156 = vector.extract_strided_slice %155 {offsets = [0, 4], sizes = [32, 1], strides = [1, 1]} : vector<32x9xf32> to vector<32x1xf32>
    %157 = vector.broadcast %156 : vector<32x1xf32> to vector<32x256xf32>
    %158 = arith.mulf %154, %157 : vector<32x256xf32>
    %c17_i32_41 = arith.constant 17 : i32
    %159 = tpu.dynamic_rotate %154 by %c17_i32_41 dim 1 : vector<32x256xf32>, i32 -> vector<32x256xf32>
    %160 = vector.extract_strided_slice %27 {offsets = [0, 0], sizes = [1, 256], strides = [1, 1]} : vector<9x256xf32> to vector<1x256xf32>
    %161 = vector.broadcast %160 : vector<1x256xf32> to vector<32x256xf32>
    %162 = arith.mulf %159, %161 : vector<32x256xf32>
    %163 = vector.extract_strided_slice %155 {offsets = [0, 0], sizes = [32, 1], strides = [1, 1]} : vector<32x9xf32> to vector<32x1xf32>
    %164 = vector.broadcast %163 : vector<32x1xf32> to vector<32x256xf32>
    %165 = arith.mulf %162, %164 : vector<32x256xf32>
    %166 = arith.addf %158, %165 : vector<32x256xf32>
    %c16_i32_42 = arith.constant 16 : i32
    %167 = tpu.dynamic_rotate %154 by %c16_i32_42 dim 1 : vector<32x256xf32>, i32 -> vector<32x256xf32>
    %168 = vector.extract_strided_slice %27 {offsets = [1, 0], sizes = [1, 256], strides = [1, 1]} : vector<9x256xf32> to vector<1x256xf32>
    %169 = vector.broadcast %168 : vector<1x256xf32> to vector<32x256xf32>
    %170 = arith.mulf %167, %169 : vector<32x256xf32>
    %171 = vector.extract_strided_slice %155 {offsets = [0, 1], sizes = [32, 1], strides = [1, 1]} : vector<32x9xf32> to vector<32x1xf32>
    %172 = vector.broadcast %171 : vector<32x1xf32> to vector<32x256xf32>
    %173 = arith.mulf %170, %172 : vector<32x256xf32>
    %174 = arith.addf %166, %173 : vector<32x256xf32>
    %c15_i32_43 = arith.constant 15 : i32
    %175 = tpu.dynamic_rotate %154 by %c15_i32_43 dim 1 : vector<32x256xf32>, i32 -> vector<32x256xf32>
    %176 = vector.extract_strided_slice %27 {offsets = [2, 0], sizes = [1, 256], strides = [1, 1]} : vector<9x256xf32> to vector<1x256xf32>
    %177 = vector.broadcast %176 : vector<1x256xf32> to vector<32x256xf32>
    %178 = arith.mulf %175, %177 : vector<32x256xf32>
    %179 = vector.extract_strided_slice %155 {offsets = [0, 2], sizes = [32, 1], strides = [1, 1]} : vector<32x9xf32> to vector<32x1xf32>
    %180 = vector.broadcast %179 : vector<32x1xf32> to vector<32x256xf32>
    %181 = arith.mulf %178, %180 : vector<32x256xf32>
    %182 = arith.addf %174, %181 : vector<32x256xf32>
    %c1_i32_44 = arith.constant 1 : i32
    %183 = tpu.dynamic_rotate %154 by %c1_i32_44 dim 1 : vector<32x256xf32>, i32 -> vector<32x256xf32>
    %184 = vector.extract_strided_slice %27 {offsets = [3, 0], sizes = [1, 256], strides = [1, 1]} : vector<9x256xf32> to vector<1x256xf32>
    %185 = vector.broadcast %184 : vector<1x256xf32> to vector<32x256xf32>
    %186 = arith.mulf %183, %185 : vector<32x256xf32>
    %187 = vector.extract_strided_slice %155 {offsets = [0, 3], sizes = [32, 1], strides = [1, 1]} : vector<32x9xf32> to vector<32x1xf32>
    %188 = vector.broadcast %187 : vector<32x1xf32> to vector<32x256xf32>
    %189 = arith.mulf %186, %188 : vector<32x256xf32>
    %190 = arith.addf %182, %189 : vector<32x256xf32>
    %c255_i32_45 = arith.constant 255 : i32
    %191 = tpu.dynamic_rotate %154 by %c255_i32_45 dim 1 : vector<32x256xf32>, i32 -> vector<32x256xf32>
    %192 = vector.extract_strided_slice %27 {offsets = [5, 0], sizes = [1, 256], strides = [1, 1]} : vector<9x256xf32> to vector<1x256xf32>
    %193 = vector.broadcast %192 : vector<1x256xf32> to vector<32x256xf32>
    %194 = arith.mulf %191, %193 : vector<32x256xf32>
    %195 = vector.extract_strided_slice %155 {offsets = [0, 5], sizes = [32, 1], strides = [1, 1]} : vector<32x9xf32> to vector<32x1xf32>
    %196 = vector.broadcast %195 : vector<32x1xf32> to vector<32x256xf32>
    %197 = arith.mulf %194, %196 : vector<32x256xf32>
    %198 = arith.addf %190, %197 : vector<32x256xf32>
    %c241_i32_46 = arith.constant 241 : i32
    %199 = tpu.dynamic_rotate %154 by %c241_i32_46 dim 1 : vector<32x256xf32>, i32 -> vector<32x256xf32>
    %200 = vector.extract_strided_slice %27 {offsets = [6, 0], sizes = [1, 256], strides = [1, 1]} : vector<9x256xf32> to vector<1x256xf32>
    %201 = vector.broadcast %200 : vector<1x256xf32> to vector<32x256xf32>
    %202 = arith.mulf %199, %201 : vector<32x256xf32>
    %203 = vector.extract_strided_slice %155 {offsets = [0, 6], sizes = [32, 1], strides = [1, 1]} : vector<32x9xf32> to vector<32x1xf32>
    %204 = vector.broadcast %203 : vector<32x1xf32> to vector<32x256xf32>
    %205 = arith.mulf %202, %204 : vector<32x256xf32>
    %206 = arith.addf %198, %205 : vector<32x256xf32>
    %c240_i32_47 = arith.constant 240 : i32
    %207 = tpu.dynamic_rotate %154 by %c240_i32_47 dim 1 : vector<32x256xf32>, i32 -> vector<32x256xf32>
    %208 = vector.extract_strided_slice %27 {offsets = [7, 0], sizes = [1, 256], strides = [1, 1]} : vector<9x256xf32> to vector<1x256xf32>
    %209 = vector.broadcast %208 : vector<1x256xf32> to vector<32x256xf32>
    %210 = arith.mulf %207, %209 : vector<32x256xf32>
    %211 = vector.extract_strided_slice %155 {offsets = [0, 7], sizes = [32, 1], strides = [1, 1]} : vector<32x9xf32> to vector<32x1xf32>
    %212 = vector.broadcast %211 : vector<32x1xf32> to vector<32x256xf32>
    %213 = arith.mulf %210, %212 : vector<32x256xf32>
    %214 = arith.addf %206, %213 : vector<32x256xf32>
    %c239_i32_48 = arith.constant 239 : i32
    %215 = tpu.dynamic_rotate %154 by %c239_i32_48 dim 1 : vector<32x256xf32>, i32 -> vector<32x256xf32>
    %216 = vector.extract_strided_slice %27 {offsets = [8, 0], sizes = [1, 256], strides = [1, 1]} : vector<9x256xf32> to vector<1x256xf32>
    %217 = vector.broadcast %216 : vector<1x256xf32> to vector<32x256xf32>
    %218 = arith.mulf %215, %217 : vector<32x256xf32>
    %219 = vector.extract_strided_slice %155 {offsets = [0, 8], sizes = [32, 1], strides = [1, 1]} : vector<32x9xf32> to vector<32x1xf32>
    %220 = vector.broadcast %219 : vector<32x1xf32> to vector<32x256xf32>
    %221 = arith.mulf %218, %220 : vector<32x256xf32>
    %222 = arith.addf %214, %221 : vector<32x256xf32>
    %223 = arith.mulf %222, %222 : vector<32x256xf32>
    %224 = arith.mulf %222, %223 : vector<32x256xf32>
    %cst_49 = arith.constant 4.471500e-02 : f32
    %225 = vector.broadcast %cst_49 : f32 to vector<32x256xf32>
    %226 = arith.mulf %225, %224 : vector<32x256xf32>
    %227 = arith.addf %222, %226 : vector<32x256xf32>
    %cst_50 = arith.constant 0.797884583 : f32
    %228 = vector.broadcast %cst_50 : f32 to vector<32x256xf32>
    %229 = arith.mulf %228, %227 : vector<32x256xf32>
    %230 = math.tanh %229 : vector<32x256xf32>
    %cst_51 = arith.constant 1.000000e+00 : f32
    %231 = vector.broadcast %cst_51 : f32 to vector<32x256xf32>
    %232 = arith.addf %231, %230 : vector<32x256xf32>
    %cst_52 = arith.constant 5.000000e-01 : f32
    %233 = vector.broadcast %cst_52 : f32 to vector<32x256xf32>
    %234 = arith.mulf %233, %232 : vector<32x256xf32>
    %235 = arith.mulf %222, %234 : vector<32x256xf32>
    %c0_53 = arith.constant 0 : index
    %c0_54 = arith.constant 0 : index
    %c0_55 = arith.constant 0 : index
    %236 = vector.load %arg12[%c0_53, %c0_54, %c0_55] : memref<1x32x256xf32, #tpu.memory_space<vmem>>, vector<1x32x256xf32>
    %237 = vector.shape_cast %236 : vector<1x32x256xf32> to vector<32x256xf32>
    %238 = vector.shape_cast %235 : vector<32x256xf32> to vector<1x32x256xf32>
    tpu.vector_store %arg12[%c0_53, %c0_54, %c0_55], %238 {strides = array<i32>} : memref<1x32x256xf32, #tpu.memory_space<vmem>>, vector<1x32x256xf32>,
    return
  }
  func.func @transform_0(%arg0: i32) -> (i32, i32, i32) {
    %c0_i32 = arith.constant 0 : i32
    %c0_i32_0 = arith.constant 0 : i32
    %c0_i32_1 = arith.constant 0 : i32
    return %arg0, %c0_i32, %c0_i32_0 : i32, i32, i32
  }
  func.func @transform_1(%arg0: i32) -> (i32, i32) {
    %c0_i32 = arith.constant 0 : i32
    %c0_i32_0 = arith.constant 0 : i32
    %c0_i32_1 = arith.constant 0 : i32
    return %c0_i32, %c0_i32_0 : i32, i32
  }
  func.func @transform_2(%arg0: i32) -> (i32, i32) {
    %c0_i32 = arith.constant 0 : i32
    %c0_i32_0 = arith.constant 0 : i32
    %c0_i32_1 = arith.constant 0 : i32
    return %c0_i32, %c0_i32_0 : i32, i32
  }
  func.func @transform_3(%arg0: i32) -> (i32, i32) {
    %c0_i32 = arith.constant 0 : i32
    %c0_i32_0 = arith.constant 0 : i32
    %c0_i32_1 = arith.constant 0 : i32
    return %c0_i32, %c0_i32_0 : i32, i32
  }
  func.func @transform_4(%arg0: i32) -> (i32, i32) {
    %c0_i32 = arith.constant 0 : i32
    %c0_i32_0 = arith.constant 0 : i32
    %c0_i32_1 = arith.constant 0 : i32
    return %c0_i32, %c0_i32_0 : i32, i32
  }
  func.func @transform_5(%arg0: i32) -> (i32, i32) {
    %c0_i32 = arith.constant 0 : i32
    %c0_i32_0 = arith.constant 0 : i32
    %c0_i32_1 = arith.constant 0 : i32
    return %c0_i32, %c0_i32_0 : i32, i32
  }
  func.func @transform_6(%arg0: i32) -> (i32, i32) {
    %c0_i32 = arith.constant 0 : i32
    %c0_i32_0 = arith.constant 0 : i32
    %c0_i32_1 = arith.constant 0 : i32
    return %c0_i32, %c0_i32_0 : i32, i32
  }
  func.func @transform_7(%arg0: i32) -> (i32, i32) {
    %c0_i32 = arith.constant 0 : i32
    %c0_i32_0 = arith.constant 0 : i32
    %c0_i32_1 = arith.constant 0 : i32
    return %c0_i32, %c0_i32_0 : i32, i32
  }
  func.func @transform_8(%arg0: i32) -> (i32, i32) {
    %c0_i32 = arith.constant 0 : i32
    %c0_i32_0 = arith.constant 0 : i32
    %c0_i32_1 = arith.constant 0 : i32
    return %c0_i32, %c0_i32_0 : i32, i32
  }
  func.func @transform_9(%arg0: i32) -> (i32, i32) {
    %c0_i32 = arith.constant 0 : i32
    %c0_i32_0 = arith.constant 0 : i32
    %c0_i32_1 = arith.constant 0 : i32
    return %c0_i32, %c0_i32_0 : i32, i32
  }
  func.func @transform_10(%arg0: i32) -> (i32, i32) {
    %c0_i32 = arith.constant 0 : i32
    %c0_i32_0 = arith.constant 0 : i32
    %c0_i32_1 = arith.constant 0 : i32
    return %c0_i32, %c0_i32_0 : i32, i32
  }
  func.func @transform_11(%arg0: i32) -> (i32, i32, i32) {
    %c0_i32 = arith.constant 0 : i32
    %c0_i32_0 = arith.constant 0 : i32
    %c0_i32_1 = arith.constant 0 : i32
    return %arg0, %c0_i32, %c0_i32_0 : i32, i32, i32
  }
}

</mosaic_0001>

<bundles_post_ra>
// kernel: mcc_forward.1
= control target key start
LH: loop header
LB: loop body
LE: loop exit
PB: predicated region body
PF: predicated region fallthrough
CT: control target
= control target key end

     0   :  { %s3905_s17 = smov 0   ;;  %s7415_s0 = inlined_call_operand.vmem [shape: f32[2,32,256], index: 0, kind: input, shape index: {}]   ;;  %s7416_s1 = inlined_call_operand.vmem [shape: f32[32,1], index: 1, kind: input, shape index: {}]   ;;  %s7417_s2 = inlined_call_operand.vmem [shape: f32[32,1], index: 2, kind: input, shape index: {}]   ;;  %s7418_s3 = inlined_call_operand.vmem [shape: bf16[96,32], index: 3, kind: input, shape index: {}]   ;;  %s7419_s4 = inlined_call_operand.vmem [shape: f32[96,9], index: 4, kind: input, shape index: {}]   ;;  %s7420_s5 = inlined_call_operand.vmem [shape: f32[32,1], index: 5, kind: input, shape index: {}]   ;;  %s7421_s6 = inlined_call_operand.vmem [shape: f32[32,32], index: 6, kind: input, shape index: {}]   ;;  %s7422_s7 = inlined_call_operand.vmem [shape: f32[9,256], index: 7, kind: input, shape index: {}]   ;;  %s7423_s8 = inlined_call_operand.vmem [shape: bf16[32,32], index: 8, kind: input, shape index: {}]   ;;  %s7424_s9 = inlined_call_operand.vmem [shape: bf16[32,32], index: 9, kind: input, shape index: {}]   ;;  %s7425_s10 = inlined_call_operand.vmem [shape: f32[32,9], index: 10, kind: input, shape index: {}]   ;;  %s7426_s11 = inlined_call_operand.vmem [shape: f32[2,32,256], index: 11, kind: output, shape index: {}]  }
   0x1 LB: > { %s3572_s18 = sadd.s32 4294967295, %s3826_s17   ;;  %p3576_p0 = scmp.ge.s32.totalorder %s3826_s17, 1  ;;  %s3826_s17 = sphi %s3905_s17, %s21_s17  }
   0x2   : > { %p337_p1 = scmp.lt.s32.totalorder %s3826_s17, 3 }
   0x4   : > { %p338_p2 = pnand %p3576_p0, %p337_p1 }
   0x6   : > { %341 = sbr.rel (%p338_p2) target bundleno = 2766 (0xace), region = 64 }
   0xb   : > { %v3916_v0 = vld [vmem:[%s7419_s4 + $0x30] sm:$0xff]  ;;  %v7435_v2 = vmov 8   ;;  %v7433_v3 = vmov 0   ;;  %v3927_v4 = vld [vmem:[%s7419_s4 + $0x20] sm:$0xff]  ;;  %v500_v5 = vld [vmem:[%s7417_s2 + $0x18] sm:$0xff]  ;;  %v7431_v8 = vmov 4  }
   0xc   : > { %v499_v1 = vld [vmem:[%s7417_s2 + $0x10] sm:$0xff]  ;;  %3648 = vset.pattern.permute.xlu0 %v7435_v2  ;;  %3634 = vset.pattern.permute.xlu1 %v7433_v3  ;;  %v466_v6 = vld [vmem:[%s7416_s1 + $0x8] sm:$0xff]  ;;  %v3951_v10 = vld [vmem:[%s7419_s4] sm:$0xff]  ;;  %p377_p3 = scmp.lt.s32.totalorder %s3572_s18, 1  ;;  %v7429_v15 = vmov 1   ;;  %v7427_v17 = vmov 2  }
   0xd   : > { %2326 = vperm.xlu0 %3648, %v3916_v0   ;;  %513 = vperm.xlu1 %3634, %v499_v1   ;;  %v498_v7 = vld [vmem:[%s7417_s2 + $0x8] sm:$0xff]  ;;  %v3956_v11 = vld [vmem:[%s7419_s4 + $0x38] sm:$0xff]  ;;  %v467_v12 = vld [vmem:[%s7416_s1 + $0x10] sm:$0xff]  ;;  %v7443_v23 = vmov 3   ;;  %v7441_v38 = vmov 5   ;;  %v7439_v46 = vmov 6  }
   0xe   : > { %626 = vmatprep.mubr.bf16.mxu0 %v7433_v3  ;;  %v3944_v9 = vld [vmem:[%s7419_s4 + $0x28] sm:$0xff]  ;;  %v468_v13 = vld [vmem:[%s7416_s1 + $0x18] sm:$0xff]  ;;  %s8200_s18 = smov (!%p377_p3, %s3572_s18), 1  ;;  %v465_v14 = vld [vmem:[%s7416_s1] sm:$0xff]  ;;  %v7437_v51 = vmov 7   ;;  %vm575_vm0 = vcmask 261120  }
   0xf   : > { %s7694_s26 = sshll.u32 %s8200_s18, 6  ;;  %v497_v16 = vld [vmem:[%s7417_s2] sm:$0xff]  ;;  %v4005_v26 = vld [vmem:[%s7419_s4 + $0x10] sm:$0xff]  ;;  %v4026_v43 = vld [vmem:[%s7419_s4 + $0x8] sm:$0xff]  ;;  %s3837_s30 = smov 17  }
  0x10   : > { %s3990_s12 = scalar_lea.vmem %s7415_s0, %s7694_s26  ;;  %s3838_s13 = smov 16  }
  0x11   : > { %2318 = vperm.xlu0 %3648, %v3927_v4   ;;  %518 = vperm.xlu1 %3634, %v500_v5   ;;  %v388_v18 = vld [vmem:[%s3990_s12] sm:$0xff]  ;;  %v390_v19 = vld [vmem:[%s3990_s12 + $0x10] sm:$0xff]  ;;  %v389_v20 = vld [vmem:[%s3990_s12 + $0x8] sm:$0xff]  ;;  %s3839_s14 = smov 15   ;;  %s3840_s15 = smov 1  }
  0x12   : > { %v391_v21 = vld [vmem:[%s3990_s12 + $0x18] sm:$0xff]  ;;  %v396_v22 = vadd.f32 %v390_v19, %v388_v18  ;;  %v392_v24 = vld [vmem:[%s3990_s12 + $0x20] sm:$0xff]  ;;  %v393_v27 = vld [vmem:[%s3990_s12 + $0x28] sm:$0xff]  ;;  %s3841_s16 = smov 127   ;;  %s3842_s19 = smov 112  }
  0x13   : > { %v405_v25 = vadd.f32 %v391_v21, %v389_v20  ;;  %v394_v29 = vld [vmem:[%s3990_s12 + $0x30] sm:$0xff]  ;;  %v395_v31 = vld [vmem:[%s3990_s12 + $0x38] sm:$0xff]  ;;  %s3843_s20 = smov 113   ;;  %s3844_s21 = smov 111  }
  0x14   : > { %v397_v28 = vadd.f32 %v396_v22, %v392_v24 }
  0x15   : > { %3653 = vset.pattern.permute.xlu0 %v7431_v8  ;;  %476 = vperm.xlu1 %3634, %v466_v6   ;;  %v406_v30 = vadd.f32 %v405_v25, %v393_v27 }
  0x16   : > { %735 = vperm.xlu0 %3653, %v3916_v0   ;;  %v398_v32 = vadd.f32 %v397_v28, %v394_v29 }
  0x17   : > { %v407_v33 = vadd.f32 %v406_v30, %v395_v31 }
  0x18   : > { %v399_v34 = vrot.slane %v398_v32, 4 }
  0x19   : > { %508 = vperm.xlu1 %3634, %v498_v7   ;;  %v408_v35 = vrot.slane %v407_v33, 4 }
  0x1a   : > { %730 = vperm.xlu0 %3653, %v3944_v9   ;;  %v400_v36 = vadd.f32 %v399_v34, %v398_v32 }
  0x1b   : > { %v409_v37 = vadd.f32 %v408_v35, %v407_v33 }
  0x1c   : > { %v401_v39 = vrot.slane %v400_v36, 2 }
  0x1d   : > { %3635 = vset.pattern.permute.xlu1 %v7431_v8  ;;  %v410_v40 = vrot.slane %v409_v37, 2 }
  0x1e   : > { %705 = vperm.xlu0 %3653, %v3951_v10   ;;  %740 = vperm.xlu1 %3635, %v3956_v11   ;;  %v402_v41 = vadd.f32 %v401_v39, %v400_v36 }
  0x1f   : > { %v411_v42 = vadd.f32 %v410_v40, %v409_v37 }
  0x20   : > { %v403_v44 = vrot.slane %v402_v41, 1 }
  0x21   : > { %v412_v45 = vrot.slane %v411_v42, 1 }
  0x22   : > { %3655 = vset.pattern.permute.xlu0 %v7433_v3  ;;  %3636 = vset.pattern.permute.xlu1 %v7433_v3  ;;  %v404_v47 = vadd.f32 %v403_v44, %v402_v41  ;;  %v4106_v44 = vld [vmem:[%s7419_s4 + $0x18] sm:$0xff] }
  0x23   : > { %481 = vperm.xlu0 %3655, %v467_v12   ;;  %919 = vperm.xlu1 %3636, %v3916_v0   ;;  %v413_v48 = vadd.f32 %v412_v45, %v411_v42 }
  0x24   : > { %v415_v49 = vmul.f32 0.03125, %v404_v47 }
  0x25   : > { %v416_v50 = vmul.f32 0.03125, %v413_v48 }
  0x26   : > { %v4037_v52 = vsub.f32 %v388_v18, %v415_v49  ;;  %v4039_v53 = vsub.f32 %v390_v19, %v415_v49  ;;  %v4047_v56 = vsub.f32 %v392_v24, %v415_v49  ;;  %v4062_v62 = vsub.f32 %v394_v29, %v415_v49 }
  0x27   : > { %486 = vperm.xlu0 %3655, %v468_v13   ;;  %3637 = vset.pattern.permute.xlu1 %v7429_v15  ;;  %v4043_v54 = vsub.f32 %v389_v20, %v416_v50  ;;  %v4045_v55 = vsub.f32 %v391_v21, %v416_v50  ;;  %v4055_v59 = vsub.f32 %v393_v27, %v416_v50 }
  0x28   : > { %1124 = vperm.xlu1 %3637, %v3956_v11   ;;  %v425_v57 = vmul.f32 %v4037_v52, %v4037_v52  ;;  %v427_v58 = vmul.f32 %v4039_v53, %v4039_v53  ;;  %v429_v63 = vmul.f32 %v4047_v56, %v4047_v56  ;;  %v4066_v5 = vsub.f32 %v395_v31, %v416_v50 }
  0x29   : > { %v426_v60 = vmul.f32 %v4043_v54, %v4043_v54  ;;  %v428_v61 = vmul.f32 %v4045_v55, %v4045_v55  ;;  %v430_v6 = vmul.f32 %v4055_v59, %v4055_v59  ;;  %v431_v12 = vmul.f32 %v4062_v62, %v4062_v62 }
  0x2a   : > { %v433_v1 = vadd.f32 %v427_v58, %v425_v57 }
  0x2b   : > { %471 = vperm.xlu0 %3655, %v465_v14   ;;  %v442_v7 = vadd.f32 %v428_v61, %v426_v60  ;;  %v432_v14 = vmul.f32 %v4066_v5, %v4066_v5 }
  0x2c   : > { %3638 = vset.pattern.permute.xlu1 %v7427_v17  ;;  %v434_v13 = vadd.f32 %v433_v1, %v429_v63 }
  0x2d   : > { %1321 = vperm.xlu1 %3638, %v3916_v0  }
  0x2e   : > { %v435_v18 = vadd.f32 %v434_v13, %v431_v12 }
  0x2f   : > { %503 = vperm.xlu0 %3655, %v497_v16   ;;  %v443_v16 = vadd.f32 %v442_v7, %v430_v6 }
  0x30   : > { %v436_v20 = vrot.slane %v435_v18, 4 }
  0x31   : > { %3639 = vset.pattern.permute.xlu1 %v7443_v23  ;;  %v444_v19 = vadd.f32 %v443_v16, %v432_v14 }
  0x32   : > { %1526 = vperm.xlu1 %3639, %v3956_v11   ;;  %v437_v21 = vadd.f32 %v436_v20, %v435_v18 }
  0x33   : > { %923 = vperm.xlu0 %3655, %v3956_v11  }
  0x34   : > { %v438_v24 = vrot.slane %v437_v21, 2 }
  0x36   : > { %3640 = vset.pattern.permute.xlu1 %v7431_v8  ;;  %v439_v27 = vadd.f32 %v438_v24, %v437_v21 }
  0x37   : > { %903 = vperm.xlu0 %3655, %v4005_v26   ;;  %725 = vperm.xlu1 %3640, %v3927_v4  }
  0x38   : > { %v440_v29 = vrot.slane %v439_v27, 1 }
  0x3a   : > { %v441_v31 = vadd.f32 %v440_v29, %v439_v27 }
  0x3b   : > { %3661 = vset.pattern.permute.xlu0 %v7429_v15  ;;  %3641 = vset.pattern.permute.xlu1 %v7433_v3 }
  0x3c   : > { %1120 = vperm.xlu0 %3661, %v3916_v0   ;;  %911 = vperm.xlu1 %3641, %v3927_v4   ;;  %v451_v33 = vmul.f32 0.03125, %v441_v31 }
  0x3e   : > { %v453_v36 = vadd.f32 1e-06, %v451_v33  ;;  %v3725_v33 = vld [vmem:[%s7418_s3 + $0x8] sm:$0xff]  }
  0x40   : > { %1116 = vperm.xlu0 %3661, %v3944_v9   ;;  %915 = vperm.xlu1 %3641, %v3944_v9   ;;  %3734 = vrsqrt.f32 %v453_v36  ;;  %v3727_v36 = vld [vmem:[%s7418_s3 + $0x18] sm:$0xff]  }
  0x44   : > { %3642 = vset.pattern.permute.xlu1 %v7441_v38  ;;  %1100 = vperm.xlu0 %3661, %v4026_v43  }
  0x45   : > { %1727 = vperm.xlu1 %3642, %v3956_v11  }
  0x48   : > { %1104 = vperm.xlu0 %3661, %v4005_v26  }
  0x49   : > { %3643 = vset.pattern.permute.xlu1 %v7429_v15 }
  0x4a   : > { %1112 = vperm.xlu1 %3643, %v3927_v4  }
  0x4c   : > { %3664 = vset.pattern.permute.xlu0 %v7427_v17 }
  0x4d   : > { %1325 = vperm.xlu0 %3664, %v3956_v11   ;;  %v3735_v47 = vpop.eup %3734 }
  0x4e   : > { %3644 = vset.pattern.permute.xlu1 %v7439_v46  ;;  %v461_v50 = vmul.f32 %v3735_v47, %v4047_v56  ;;  %v463_v60 = vmul.f32 %v3735_v47, %v4062_v62  ;;  %v459_v12 = vmul.f32 %v3735_v47, %v4039_v53 }
  0x4f   : > { %1928 = vperm.xlu1 %3644, %v3956_v11  }
  0x51   : > { %1317 = vperm.xlu0 %3664, %v3944_v9  }
  0x53   : > { %3645 = vset.pattern.permute.xlu1 %v7427_v17 }
  0x54   : > { %1313 = vperm.xlu1 %3645, %v3927_v4  }
  0x55   : > { %1297 = vperm.xlu0 %3664, %v3951_v10  }
  0x58   : > { %3646 = vset.pattern.permute.xlu1 %v7437_v51 }
  0x59   : > { %2129 = vperm.xlu1 %3646, %v3956_v11  }
  0x5d   : > { %3647 = vset.pattern.permute.xlu1 %v7443_v23 }
  0x5e   : > { %1514 = vperm.xlu1 %3647, %v3927_v4  }
  0x62   : > { %3649 = vset.pattern.permute.xlu1 %v7435_v2 }
  0x63   : > { %2330 = vperm.xlu1 %3649, %v3956_v11   ;;  %v445_v11 = vrot.slane %v444_v19, 4 }
  0x65   : > { %v446_v22 = vadd.f32 %v445_v11, %v444_v19 }
  0x67   : > { %3650 = vset.pattern.permute.xlu1 %v7441_v38  ;;  %v447_v25 = vrot.slane %v446_v22, 2 }
  0x68   : > { %1715 = vperm.xlu1 %3650, %v3927_v4  }
  0x69   : > { %v448_v28 = vadd.f32 %v447_v25, %v446_v22 }
  0x6b   : > { %v449_v30 = vrot.slane %v448_v28, 1 }
  0x6c   : > { %3651 = vset.pattern.permute.xlu1 %v7439_v46 }
  0x6d   : > { %1920 = vperm.xlu1 %3651, %v3944_v9   ;;  %v450_v32 = vadd.f32 %v449_v30, %v448_v28 }
  0x6f   : > { %v452_v34 = vmul.f32 0.03125, %v450_v32  ;;  %v3724_v32 = vld [vmem:[%s7418_s3] sm:$0xff]  }
  0x71   : > { %3652 = vset.pattern.permute.xlu1 %v7437_v51  ;;  %v454_v37 = vadd.f32 1e-06, %v452_v34  ;;  %v3726_v34 = vld [vmem:[%s7418_s3 + $0x10] sm:$0xff]  }
  0x72   : > { %2117 = vperm.xlu1 %3652, %v3927_v4  }
  0x73   : > { %3736 = vrsqrt.f32 %v454_v37 }
  0x76   : > { %3654 = vset.pattern.permute.xlu1 %v7435_v2 }
  0x77   : > { %2322 = vperm.xlu1 %3654, %v3944_v9  }
  0x7b   : > { %3656 = vset.pattern.permute.xlu1 %v7431_v8 }
  0x7c   : > { %710 = vperm.xlu1 %3656, %v4026_v43  }
  0x80   : > { %3657 = vset.pattern.permute.xlu1 %v7433_v3  ;;  %v3737_v48 = vpop.eup %3736 }
  0x81   : > { %895 = vperm.xlu1 %3657, %v3951_v10   ;;  %v462_v57 = vmul.f32 %v3737_v48, %v4055_v59  ;;  %v464_v61 = vmul.f32 %v3737_v48, %v4066_v5  ;;  %v460_v13 = vmul.f32 %v3737_v48, %v4045_v55  ;;  %v457_v59 = vmul.f32 %v3735_v47, %v4037_v52 }
  0x82   : > { %v458_v62 = vmul.f32 %v3737_v48, %v4043_v54 }
  0x85   : > { %899 = vperm.xlu1 %3657, %v4026_v43  }
  0x88   : > { %v4089_v35 = vpop.permute.xlu0 %2326  ;;  %v514_v42 = vpop.permute.xlu1 %513 }
  0x89   : > { %7715 = vst [vmem:[#allocation2_spill] sm:$0xff] %v4089_v35  ;;  %3658 = vset.pattern.permute.xlu1 %v7429_v15 }
  0x8a   : > { %1096 = vperm.xlu1 %3658, %v3951_v10  }
  0x8c   : > { %v4093_v39 = vpop.permute.xlu0 %2318  ;;  %v519_v49 = vpop.permute.xlu1 %518 }
  0x8d   : > { %7716 = vst [vmem:[#allocation3_spill] sm:$0xff] %v4093_v39 }
  0x8e   : > { %3659 = vset.pattern.permute.xlu1 %v7427_v17 }
  0x8f   : > { %1301 = vperm.xlu1 %3659, %v4026_v43  }
  0x90   : > { %v477_v6 = vpop.permute.xlu1 %476 }
  0x91   : > { %v4097_v40 = vpop.permute.xlu0 %735  ;;  %v491_v11 = vmul.f32 %v477_v6, %v459_v12  ;;  %v492_v21 = vmul.f32 %v477_v6, %v460_v13 }
  0x93   : > { %3660 = vset.pattern.permute.xlu1 %v7443_v23 }
  0x94   : > { %1498 = vperm.xlu1 %3660, %v3951_v10   ;;  %v509_v55 = vpop.permute.xlu1 %508 }
  0x95   : > { %v4100_v41 = vpop.permute.xlu0 %730  ;;  %v523_v54 = vadd.f32 %v509_v55, %v491_v11  ;;  %v524_v27 = vadd.f32 %v509_v55, %v492_v21 }
  0x98   : > { %3662 = vset.pattern.permute.xlu1 %v7433_v3 }
  0x99   : > { %v4108_v45 = vpop.permute.xlu0 %705  ;;  %907 = vperm.xlu1 %3662, %v4106_v44   ;;  %v4147_v37 = vpop.permute.xlu1 %740 }
  0x9a   : > { %7717 = vst [vmem:[#allocation4_spill] sm:$0xff] %v4108_v45  ;;  %7718 = vst [vmem:[#allocation5_spill] sm:$0xff] %v4147_v37 }
  0x9d   : > { %3663 = vset.pattern.permute.xlu1 %v7441_v38 }
  0x9e   : > { %v482_v58 = vpop.permute.xlu0 %481  ;;  %1699 = vperm.xlu1 %3663, %v3951_v10  }
  0x9f   : > { %v493_v63 = vmul.f32 %v482_v58, %v461_v50  ;;  %v494_v1 = vmul.f32 %v482_v58, %v462_v57 }
  0xa1   : > { %v526_v5 = vadd.f32 %v514_v42, %v494_v1  ;;  %v525_v18 = vadd.f32 %v514_v42, %v493_v63  ;;  %v4149_v42 = vpop.permute.xlu1 %919 }
  0xa2   : > { %v487_v7 = vpop.permute.xlu0 %486  ;;  %3665 = vset.pattern.permute.xlu1 %v7429_v15  ;;  %7719 = vst [vmem:[#allocation6_spill] sm:$0xff] %v4149_v42 }
  0xa3   : > { %v495_v56 = vmul.f32 %v487_v7, %v463_v60  ;;  %v496_v14 = vmul.f32 %v487_v7, %v464_v61  ;;  %1108 = vperm.xlu1 %3665, %v4106_v44  }
  0xa5   : > { %v528_v16 = vadd.f32 %v519_v49, %v496_v14  ;;  %v527_v19 = vadd.f32 %v519_v49, %v495_v56  ;;  %v4151_v47 = vpop.permute.xlu1 %1124 }
  0xa6   : > { %v472_v20 = vpop.permute.xlu0 %471  ;;  %7720 = vst [vmem:[#allocation7_spill] sm:$0xff] %v4151_v47 }
  0xa7   : > { %v544_v53 = vpack.c.bf16 %v528_v16, %v526_v5  ;;  %v543_v22 = vpack.c.bf16 %v527_v19, %v525_v18  ;;  %3666 = vset.pattern.permute.xlu1 %v7439_v46  ;;  %v489_v24 = vmul.f32 %v472_v20, %v457_v59  ;;  %v490_v25 = vmul.f32 %v472_v20, %v458_v62 }
  0xa8   : > { %1900 = vperm.xlu1 %3666, %v3951_v10  }
  0xa9   : > { %606 = vmatprep.subr.bf16.mxu0 %v544_v53  ;;  %v4153_v48 = vpop.permute.xlu1 %1321 }
  0xaa   : > { %v504_v52 = vpop.permute.xlu0 %503  ;;  %607 = vmatpush1.bf16.msra.mxu0 %v543_v22  ;;  %7721 = vst [vmem:[#allocation8_spill] sm:$0xff] %v4153_v48  ;;  %v7788_v48 = vmov 6  }
  0xab   : > { %v521_v28 = vadd.f32 %v504_v52, %v489_v24  ;;  %v522_v29 = vadd.f32 %v504_v52, %v490_v25 }
  0xac   : > { %3668 = vset.pattern.permute.xlu1 %v7427_v17 }
  0xad   : > { %v542_v30 = vpack.c.bf16 %v524_v27, %v522_v29  ;;  %v541_v31 = vpack.c.bf16 %v523_v54, %v521_v28  ;;  %v4155_v49 = vpop.permute.xlu1 %1526 }
  0xae   : > { %7722 = vst [vmem:[#allocation9_spill] sm:$0xff] %v4155_v49  ;;  %v4277_v52 = vpop.permute.xlu0 %923 }
  0xaf   : > { %608 = vmatprep.subr.bf16.mxu0 %v542_v30  ;;  %7739 = vst [vmem:[#allocation26_spill] sm:$0xff] %v4277_v52 }
  0xb0   : > { %609 = vmatpush1.bf16.msra.mxu0 %v541_v31 }
  0xb2   : > { %v4157_v50 = vpop.permute.xlu1 %725  ;;  %v4289_v28 = vpop.permute.xlu0 %903 }
  0xb3   : > { %3587 = vmatmul.mubr.msk.bf16.vlgmr.msra.gmra.mxu0 %vm575_vm0, %v3724_v32  ;;  %7741 = vst [vmem:[#allocation28_spill] sm:$0xff] %v4289_v28 }
  0xb4   : > { %636 = vmatprep.mubr.bf16.mxu0 %v7433_v3 }
  0xb7   : > { %v4159_v57 = vpop.permute.xlu1 %911  ;;  %v4299_v30 = vpop.permute.xlu0 %1120 }
  0xb8   : > { %7743 = vst [vmem:[#allocation30_spill] sm:$0xff] %v4299_v30 }
  0xbb   : > { %3588 = vmatmul.mubr.msk.bf16.gmra.mxu0 %vm575_vm0, %v3725_v33  ;;  %v4161_v58 = vpop.permute.xlu1 %915  ;;  %v4309_v32 = vpop.permute.xlu0 %1116 }
  0xbc   : > { %646 = vmatprep.mubr.bf16.mxu0 %v7433_v3 }
  0xc0   : > { %v4163_v60 = vpop.permute.xlu1 %1727 }
  0xc1   : > { %7723 = vst [vmem:[#allocation10_spill] sm:$0xff] %v4163_v60 }
  0xc3   : > { %3589 = vmatmul.mubr.msk.bf16.gmra.mxu0 %vm575_vm0, %v3726_v34  ;;  %v4319_v34 = vpop.permute.xlu0 %1100 }
  0xc4   : > { %656 = vmatprep.mubr.bf16.mxu0 %v7433_v3  ;;  %7746 = vst [vmem:[#allocation33_spill] sm:$0xff] %v4319_v34 }
  0xc5   : > { %v4165_v61 = vpop.permute.xlu1 %1112 }
  0xc7   : > { %v4331_v15 = vpop.permute.xlu0 %1104 }
  0xc8   : > { %7748 = vst [vmem:[#allocation35_spill] sm:$0xff] %v4331_v15 }
  0xca   : > { %v4173_v6 = vpop.permute.xlu1 %1928 }
  0xcb   : > { %3590 = vmatmul.mubr.msk.bf16.gmra.mxu0 %vm575_vm0, %v3727_v36  ;;  %7726 = vst [vmem:[#allocation13_spill] sm:$0xff] %v4173_v6  ;;  %v4341_v2 = vpop.permute.xlu0 %1325 }
  0xcc   : > { %666 = vmatprep.mubr.bf16.mxu0 %v7433_v3  ;;  %7750 = vst [vmem:[#allocation37_spill] sm:$0xff] %v4341_v2 }
  0xcf   : > { %v4183_v12 = vpop.permute.xlu1 %1313  ;;  %v4351_v46 = vpop.permute.xlu0 %1317 }
  0xd0   : > { %7752 = vst [vmem:[#allocation39_spill] sm:$0xff] %v4351_v46 }
  0xd3   : > { %v4361_v23 = vpop.permute.xlu0 %1297 }
  0xd4   : > { %v4193_v56 = vpop.permute.xlu1 %2129  ;;  %7754 = vst [vmem:[#allocation41_spill] sm:$0xff] %v4361_v23 }
  0xd5   : > { %7729 = vst [vmem:[#allocation16_spill] sm:$0xff] %v4193_v56 }
  0xd9   : > { %v4203_v59 = vpop.permute.xlu1 %1514 }
  0xde   : > { %v4215_v16 = vpop.permute.xlu1 %2330 }
  0xdf   : > { %7733 = vst [vmem:[#allocation20_spill] sm:$0xff] %v4215_v16 }
  0xe3   : > { %v4225_v19 = vpop.permute.xlu1 %1715 }
  0xe8   : > { %v4237_v21 = vpop.permute.xlu1 %1920 }
  0xe9   : > { %7735 = vst [vmem:[#allocation22_spill] sm:$0xff] %v4237_v21 }
  0xed   : > { %v4245_v53 = vpop.permute.xlu1 %2117 }
  0xf2   : > { %v4255_v55 = vpop.permute.xlu1 %2322 }
  0xf3   : > { %7736 = vst [vmem:[#allocation23_spill] sm:$0xff] %v4255_v55 }
  0xf7   : > { %v4263_v24 = vpop.permute.xlu1 %710 }
  0xf8   : > { %7737 = vst [vmem:[#allocation24_spill] sm:$0xff] %v4263_v24 }
  0xfc   : > { %v4271_v25 = vpop.permute.xlu1 %895 }
  0xfd   : > { %7738 = vst [vmem:[#allocation25_spill] sm:$0xff] %v4271_v25 }
 0x100   : > { %v4281_v54 = vpop.permute.xlu1 %899 }
 0x101   : > { %7740 = vst [vmem:[#allocation27_spill] sm:$0xff] %v4281_v54 }
 0x105   : > { %v4293_v29 = vpop.permute.xlu1 %1096 }
 0x106   : > { %7742 = vst [vmem:[#allocation29_spill] sm:$0xff] %v4293_v29  ;;  %v7772_v29 = vmov 3  }
 0x10a   : > { %v4303_v31 = vpop.permute.xlu1 %1301 }
 0x10b   : > { %7744 = vst [vmem:[#allocation31_spill] sm:$0xff] %v4303_v31 }
 0x10f   : > { %v4313_v33 = vpop.permute.xlu1 %1498 }
 0x110   : > { %7745 = vst [vmem:[#allocation32_spill] sm:$0xff] %v4313_v33 }
 0x114   : > { %v4323_v36 = vpop.permute.xlu1 %907 }
 0x115   : > { %7747 = vst [vmem:[#allocation34_spill] sm:$0xff] %v4323_v36 }
 0x119   : > { %v4335_v8 = vpop.permute.xlu1 %1699 }
 0x11a   : > { %7749 = vst [vmem:[#allocation36_spill] sm:$0xff] %v4335_v8 }
 0x11e   : > { %v4347_v51 = vpop.permute.xlu1 %1108 }
 0x11f   : > { %7751 = vst [vmem:[#allocation38_spill] sm:$0xff] %v4347_v51 }
 0x123   : > { %v4357_v38 = vpop.permute.xlu1 %1900 }
 0x124   : > { %7753 = vst [vmem:[#allocation40_spill] sm:$0xff] %v4357_v38 }
 0x173   : > { %v4167_v63 = vpop.f32.mrf.mxu0 }
 0x174   : > { %7724 = vst [vmem:[#allocation11_spill] sm:$0xff] %v4167_v63  ;;  %787 = vrot.lane.b32.xlu1 %v4167_v63, %s3837_s30 }
 0x175   : > { %v4171_v1 = vpop.f32.mrf.mxu0 }
 0x176   : > { %7725 = vst [vmem:[#allocation12_spill] sm:$0xff] %v4171_v1  ;;  %1014 = vrot.lane.b32.xlu0 %v4171_v1, %s3838_s13 }
 0x177   : > { %v4179_v7 = vpop.f32.mrf.mxu0 }
 0x178   : > { %990 = vrot.lane.b32.xlu1 %v4167_v63, %s3838_s13  ;;  %7727 = vst [vmem:[#allocation14_spill] sm:$0xff] %v4179_v7 }
 0x179   : > { %v4191_v13 = vpop.f32.mrf.mxu0 }
 0x17a   : > { %1193 = vrot.lane.b32.xlu0 %v4179_v7, %s3839_s14  ;;  %7728 = vst [vmem:[#allocation15_spill] sm:$0xff] %v4191_v13 }
 0x17b   : > { %v4199_v14 = vpop.f32.mrf.mxu0 }
 0x17c   : > { %1191 = vrot.lane.b32.xlu1 %v4167_v63, %s3839_s14  ;;  %7730 = vst [vmem:[#allocation17_spill] sm:$0xff] %v4199_v14 }
 0x17d   : > { %v4207_v62 = vpop.f32.mrf.mxu0 }
 0x17e   : > { %1394 = vrot.lane.b32.xlu0 %v4179_v7, %s3840_s15  ;;  %7731 = vst [vmem:[#allocation18_spill] sm:$0xff] %v4207_v62 }
 0x17f   : > { %v4213_v5 = vpop.f32.mrf.mxu0 }
 0x180   : > { %1392 = vrot.lane.b32.xlu1 %v4167_v63, %s3840_s15  ;;  %7732 = vst [vmem:[#allocation19_spill] sm:$0xff] %v4213_v5 }
 0x181   : > { %v4221_v18 = vpop.f32.mrf.mxu0 }
 0x182   : > { %1595 = vrot.lane.b32.xlu0 %v4179_v7, %s3841_s16  ;;  %7734 = vst [vmem:[#allocation21_spill] sm:$0xff] %v4221_v18 }
 0x183   : > { %v4229_v20 = vpop.f32.mrf.mxu0 }
 0x184   : > { %1593 = vrot.lane.b32.xlu1 %v4167_v63, %s3841_s16 }
 0x185   : > { %v4235_v11 = vpop.f32.mrf.mxu0 }
 0x186   : > { %1217 = vrot.lane.b32.xlu0 %v4191_v13, %s3839_s14  ;;  %v772_v46 = vmul.f32 %v4157_v50, %v4235_v11 }
 0x187   : > { %v4249_v22 = vpop.f32.mrf.mxu0 }
 0x188   : > { %811 = vrot.lane.b32.xlu1 %v4171_v1, %s3837_s30 }
 0x189   : > { %v4285_v27 = vpop.f32.mrf.mxu0 }
 0x18a   : > { %1418 = vrot.lane.b32.xlu0 %v4191_v13, %s3840_s15 }
 0x18b   : > { %v4327_v17 = vpop.f32.mrf.mxu0 }
 0x18c   : > { %1215 = vrot.lane.b32.xlu1 %v4171_v1, %s3839_s14 }
 0x18d   : > { %v4337_v3 = vpop.f32.mrf.mxu0 }
 0x18e   : > { %1619 = vrot.lane.b32.xlu0 %v4191_v13, %s3841_s16 }
 0x18f   : > { %v4389_v24 = vpop.f32.mrf.mxu0 }
 0x190   : > { %1416 = vrot.lane.b32.xlu1 %v4171_v1, %s3840_s15  ;;  %7761 = vst [vmem:[#allocation48_spill] sm:$0xff] %v4389_v24 }
 0x191   : > { %v4399_v38 = vpop.f32.mrf.mxu0 }
 0x192   : > { %815 = vrot.lane.b32.xlu0 %v4207_v62, %s3837_s30  ;;  %7764 = vst [vmem:[#allocation51_spill] sm:$0xff] %v4399_v38 }
 0x194   : > { %1617 = vrot.lane.b32.xlu1 %v4171_v1, %s3841_s16 }
 0x196   : > { %1601 = vrot.lane.b32.xlu0 %v4229_v20, %s3841_s16 }
 0x198   : > { %789 = vrot.lane.b32.xlu1 %v4179_v7, %s3837_s30 }
 0x19a   : > { %1625 = vrot.lane.b32.xlu0 %v4235_v11, %s3841_s16 }
 0x19c   : > { %992 = vrot.lane.b32.xlu1 %v4179_v7, %s3838_s13 }
 0x19e   : > { %2027 = vrot.lane.b32.xlu0 %v4235_v11, %s3842_s19 }
 0x1a0   : > { %813 = vrot.lane.b32.xlu1 %v4191_v13, %s3837_s30 }
 0x1a2   : > { %797 = vrot.lane.b32.xlu0 %v4249_v22, %s3837_s30 }
 0x1a4   : > { %1016 = vrot.lane.b32.xlu1 %v4191_v13, %s3838_s13 }
 0x1a6   : > { %1000 = vrot.lane.b32.xlu0 %v4249_v22, %s3838_s13 }
 0x1a8   : > { %791 = vrot.lane.b32.xlu1 %v4199_v14, %s3837_s30 }
 0x1aa   : > { %1201 = vrot.lane.b32.xlu0 %v4249_v22, %s3839_s14 }
 0x1ac   : > { %793 = vrot.lane.b32.xlu1 %v4213_v5, %s3837_s30 }
 0x1ae   : > { %1402 = vrot.lane.b32.xlu0 %v4249_v22, %s3840_s15 }
 0x1b0   : > { %817 = vrot.lane.b32.xlu1 %v4221_v18, %s3837_s30 }
 0x1b2   : > { %1804 = vrot.lane.b32.xlu0 %v4249_v22, %s3843_s20 }
 0x1b4   : > { %795 = vrot.lane.b32.xlu1 %v4229_v20, %s3837_s30 }
 0x1b6   : > { %2206 = vrot.lane.b32.xlu0 %v4249_v22, %s3844_s21 }
 0x1b8   : > { %998 = vrot.lane.b32.xlu1 %v4229_v20, %s3838_s13 }
 0x1ba   : > { %821 = vrot.lane.b32.xlu0 %v4285_v27, %s3837_s30 }
 0x1bc   : > { %1199 = vrot.lane.b32.xlu1 %v4229_v20, %s3839_s14 }
 0x1be   : > { %1024 = vrot.lane.b32.xlu0 %v4285_v27, %s3838_s13 }
 0x1c0   : > { %1400 = vrot.lane.b32.xlu1 %v4229_v20, %s3840_s15 }
 0x1c2   : > { %1225 = vrot.lane.b32.xlu0 %v4285_v27, %s3839_s14 }
 0x1c4   : > { %1802 = vrot.lane.b32.xlu1 %v4229_v20, %s3843_s20 }
 0x1c6   : > { %1426 = vrot.lane.b32.xlu0 %v4285_v27, %s3840_s15 }
 0x1c8   : > { %2003 = vrot.lane.b32.xlu1 %v4229_v20, %s3842_s19 }
 0x1ca   : > { %1828 = vrot.lane.b32.xlu0 %v4285_v27, %s3843_s20 }
 0x1cc   : > { %2204 = vrot.lane.b32.xlu1 %v4229_v20, %s3844_s21 }
 0x1ce   : > { %2230 = vrot.lane.b32.xlu0 %v4285_v27, %s3844_s21 }
 0x1d0   : > { %819 = vrot.lane.b32.xlu1 %v4235_v11, %s3837_s30 }
 0x1d2   : > { %1404 = vrot.lane.b32.xlu0 %v4327_v17, %s3840_s15 }
 0x1d4   : > { %1022 = vrot.lane.b32.xlu1 %v4235_v11, %s3838_s13 }
 0x1d6   : > { %823 = vrot.lane.b32.xlu0 %v4337_v3, %s3837_s30 }
 0x1d8   : > { %1223 = vrot.lane.b32.xlu1 %v4235_v11, %s3839_s14 }
 0x1da   : > { %1227 = vrot.lane.b32.xlu0 %v4337_v3, %s3839_s14 }
 0x1dc   : > { %1424 = vrot.lane.b32.xlu1 %v4235_v11, %s3840_s15 }
 0x1de   : > { %1428 = vrot.lane.b32.xlu0 %v4337_v3, %s3840_s15 }
 0x1e0   : > { %1826 = vrot.lane.b32.xlu1 %v4235_v11, %s3843_s20 }
 0x1e2   : > { %1629 = vrot.lane.b32.xlu0 %v4337_v3, %s3841_s16 }
 0x1e4   : > { %2228 = vrot.lane.b32.xlu1 %v4235_v11, %s3844_s21  ;;  %v4821_v11 = vmul.f32 %v4100_v41, %v4285_v27 }
 0x1e6   : > { %v4365_v51 = vpop.permute.xlu1 %787  ;;  %1830 = vrot.lane.b32.xlu0 %v4337_v3, %s3843_s20 }
 0x1e7   : > { %7755 = vst [vmem:[#allocation42_spill] sm:$0xff] %v4365_v51 }
 0x1e8   : > { %v4369_v15 = vpop.permute.xlu0 %1014  ;;  %1603 = vrot.lane.b32.xlu1 %v4249_v22, %s3841_s16 }
 0x1e9   : > { %7756 = vst [vmem:[#allocation43_spill] sm:$0xff] %v4369_v15 }
 0x1ea   : > { %v4373_v36 = vpop.permute.xlu1 %990  ;;  %2031 = vrot.lane.b32.xlu0 %v4337_v3, %s3842_s19 }
 0x1eb   : > { %7757 = vst [vmem:[#allocation44_spill] sm:$0xff] %v4373_v36 }
 0x1ec   : > { %v4377_v28 = vpop.permute.xlu0 %1193  ;;  %2005 = vrot.lane.b32.xlu1 %v4249_v22, %s3842_s19 }
 0x1ed   : > { %7758 = vst [vmem:[#allocation45_spill] sm:$0xff] %v4377_v28 }
 0x1ee   : > { %v4381_v31 = vpop.permute.xlu1 %1191  ;;  %2232 = vrot.lane.b32.xlu0 %v4337_v3, %s3844_s21 }
 0x1ef   : > { %7759 = vst [vmem:[#allocation46_spill] sm:$0xff] %v4381_v31 }
 0x1f0   : > { %v4385_v34 = vpop.permute.xlu0 %1394  ;;  %1627 = vrot.lane.b32.xlu1 %v4285_v27, %s3841_s16 }
 0x1f1   : > { %7760 = vst [vmem:[#allocation47_spill] sm:$0xff] %v4385_v34 }
 0x1f2   : > { %v4391_v54 = vpop.permute.xlu1 %1392  ;;  %1004 = vrot.lane.b32.xlu0 %v4389_v24, %s3838_s13 }
 0x1f3   : > { %7762 = vst [vmem:[#allocation49_spill] sm:$0xff] %v4391_v54 }
 0x1f4   : > { %v4395_v28 = vpop.permute.xlu0 %1595  ;;  %2029 = vrot.lane.b32.xlu1 %v4285_v27, %s3842_s19 }
 0x1f5   : > { %7763 = vst [vmem:[#allocation50_spill] sm:$0xff] %v4395_v28 }
 0x1f6   : > { %v4401_v8 = vpop.permute.xlu1 %1593  ;;  %1028 = vrot.lane.b32.xlu0 %v4399_v38, %s3838_s13 }
 0x1f7   : > { %7765 = vst [vmem:[#allocation52_spill] sm:$0xff] %v4401_v8 }
 0x1f8   : > { %v4405_v34 = vpop.permute.xlu0 %1217  ;;  %799 = vrot.lane.b32.xlu1 %v4327_v17, %s3837_s30 }
 0x1f9   : > { %7766 = vst [vmem:[#allocation53_spill] sm:$0xff] %v4405_v34 }
 0x1fa   : > { %v4409_v33 = vpop.permute.xlu1 %811  ;;  %1018 = vrot.lane.b32.xlu0 %v4207_v62, %s3838_s13 }
 0x1fb   : > { %7767 = vst [vmem:[#allocation54_spill] sm:$0xff] %v4409_v33 }
 0x1fc   : > { %v4413_v28 = vpop.permute.xlu0 %1418  ;;  %1002 = vrot.lane.b32.xlu1 %v4327_v17, %s3838_s13 }
 0x1fd   : > { %7768 = vst [vmem:[#allocation55_spill] sm:$0xff] %v4413_v28 }
 0x1fe   : > { %v4417_v23 = vpop.permute.xlu1 %1215  ;;  %1305 = vperm.xlu0 %3664, %v4005_v26  }
 0x1ff   : > { %7769 = vst [vmem:[#allocation56_spill] sm:$0xff] %v4417_v23 }
 0x200   : > { %v4420_v8 = vpop.permute.xlu0 %1619  ;;  %1203 = vrot.lane.b32.xlu1 %v4327_v17, %s3839_s14 }
 0x201   : > { %7770 = vst [vmem:[#allocation57_spill] sm:$0xff] %v4420_v8 }
 0x202   : > { %v4424_v34 = vpop.permute.xlu1 %1416  ;;  %3667 = vset.pattern.permute.xlu0 %v7772_v29 }
 0x203   : > { %7771 = vst [vmem:[#allocation58_spill] sm:$0xff] %v4424_v34  ;;  %1522 = vperm.xlu0 %3667, %v3916_v0  }
 0x204   : > { %v4428_v54 = vpop.permute.xlu0 %815  ;;  %1605 = vrot.lane.b32.xlu1 %v4327_v17, %s3841_s16 }
 0x205   : > { %7773 = vst [vmem:[#allocation59_spill] sm:$0xff] %v4428_v54 }
 0x206   : > { %v4432_v28 = vpop.permute.xlu1 %1617 }
 0x207   : > { %7774 = vst [vmem:[#allocation60_spill] sm:$0xff] %v4432_v28  ;;  %1518 = vperm.xlu0 %3667, %v3944_v9  }
 0x208   : > { %v4435_v31 = vpop.permute.xlu0 %1601  ;;  %1806 = vrot.lane.b32.xlu1 %v4327_v17, %s3843_s20 }
 0x20a   : > { %v4439_v8 = vpop.permute.xlu1 %789 }
 0x20b   : > { %7775 = vst [vmem:[#allocation61_spill] sm:$0xff] %v4439_v8  ;;  %1502 = vperm.xlu0 %3667, %v4026_v43  }
 0x20c   : > { %v4442_v34 = vpop.permute.xlu0 %1625  ;;  %2007 = vrot.lane.b32.xlu1 %v4327_v17, %s3842_s19 }
 0x20e   : > { %v4446_v54 = vpop.permute.xlu1 %992 }
 0x20f   : > { %7776 = vst [vmem:[#allocation62_spill] sm:$0xff] %v4446_v54  ;;  %1796 = vrot.lane.b32.xlu0 %v4179_v7, %s3843_s20 }
 0x210   : > { %v4450_v28 = vpop.permute.xlu0 %2027  ;;  %2208 = vrot.lane.b32.xlu1 %v4327_v17, %s3844_s21 }
 0x212   : > { %v4454_v23 = vpop.permute.xlu1 %813 }
 0x213   : > { %7777 = vst [vmem:[#allocation63_spill] sm:$0xff] %v4454_v23  ;;  %1820 = vrot.lane.b32.xlu0 %v4191_v13, %s3843_s20 }
 0x214   : > { %v4458_v8 = vpop.permute.xlu0 %797  ;;  %1026 = vrot.lane.b32.xlu1 %v4337_v3, %s3838_s13 }
 0x216   : > { %v4462_v45 = vpop.permute.xlu1 %1016 }
 0x217   : > { %7778 = vst [vmem:[#allocation64_spill] sm:$0xff] %v4462_v45  ;;  %1219 = vrot.lane.b32.xlu0 %v4207_v62, %s3839_s14  ;;  %v7781_v45 = vmov 5  }
 0x218   : > { %v4466_v54 = vpop.permute.xlu0 %1000  ;;  %801 = vrot.lane.b32.xlu1 %v4389_v24, %s3837_s30 }
 0x21a   : > { %v4470_v25 = vpop.permute.xlu1 %791 }
 0x21b   : > { %7779 = vst [vmem:[#allocation65_spill] sm:$0xff] %v4470_v25  ;;  %1506 = vperm.xlu0 %3667, %v4005_v26  }
 0x21c   : > { %v4473_v23 = vpop.permute.xlu0 %1201  ;;  %1205 = vrot.lane.b32.xlu1 %v4389_v24, %s3839_s14 }
 0x21e   : > { %v4477_v36 = vpop.permute.xlu1 %793 }
 0x21f   : > { %7780 = vst [vmem:[#allocation66_spill] sm:$0xff] %v4477_v36  ;;  %3670 = vset.pattern.permute.xlu0 %v7781_v45 }
 0x220   : > { %v4480_v15 = vpop.permute.xlu0 %1402  ;;  %1406 = vrot.lane.b32.xlu1 %v4389_v24, %s3840_s15  ;;  %1723 = vperm.xlu0 %3670, %v3916_v0  }
 0x221   : > { %7782 = vst [vmem:[#allocation67_spill] sm:$0xff] %v4480_v15 }
 0x222   : > { %v4485_v51 = vpop.permute.xlu1 %817 }
 0x223   : > { %7783 = vst [vmem:[#allocation68_spill] sm:$0xff] %v4485_v51 }
 0x224   : > { %v4487_v25 = vpop.permute.xlu0 %1804  ;;  %1607 = vrot.lane.b32.xlu1 %v4389_v24, %s3841_s16  ;;  %1719 = vperm.xlu0 %3670, %v3944_v9  }
 0x225   : > { %7784 = vst [vmem:[#allocation69_spill] sm:$0xff] %v4487_v25 }
 0x226   : > { %v4492_v33 = vpop.permute.xlu1 %795 }
 0x228   : > { %v4494_v36 = vpop.permute.xlu0 %2206  ;;  %1808 = vrot.lane.b32.xlu1 %v4389_v24, %s3843_s20  ;;  %1703 = vperm.xlu0 %3670, %v4026_v43  }
 0x229   : > { %7785 = vst [vmem:[#allocation70_spill] sm:$0xff] %v4494_v36 }
 0x22a   : > { %v4499_v16 = vpop.permute.xlu1 %998 }
 0x22c   : > { %v4501_v56 = vpop.permute.xlu0 %821  ;;  %2009 = vrot.lane.b32.xlu1 %v4389_v24, %s3842_s19  ;;  %1997 = vrot.lane.b32.xlu0 %v4179_v7, %s3842_s19 }
 0x22e   : > { %v4507_v51 = vpop.permute.xlu1 %1199 }
 0x230   : > { %v4509_v6 = vpop.permute.xlu0 %1024  ;;  %2210 = vrot.lane.b32.xlu1 %v4389_v24, %s3844_s21  ;;  %2021 = vrot.lane.b32.xlu0 %v4191_v13, %s3842_s19  ;;  %v4806_v24 = vmul.f32 %v4100_v41, %v4249_v22 }
 0x232   : > { %v4515_v60 = vpop.permute.xlu1 %1400 }
 0x234   : > { %v4517_v49 = vpop.permute.xlu0 %1225  ;;  %1420 = vrot.lane.b32.xlu0 %v4207_v62, %s3840_s15  ;;  %825 = vrot.lane.b32.xlu1 %v4399_v38, %s3837_s30 }
 0x236   : > { %v4523_v2 = vpop.permute.xlu1 %1802 }
 0x238   : > { %v4525_v47 = vpop.permute.xlu0 %1426  ;;  %1707 = vperm.xlu0 %3670, %v4005_v26   ;;  %1229 = vrot.lane.b32.xlu1 %v4399_v38, %s3839_s14 }
 0x239   : > { %7786 = vst [vmem:[#allocation71_spill] sm:$0xff] %v4525_v47 }
 0x23a   : > { %v4530_v35 = vpop.permute.xlu1 %2003 }
 0x23c   : > { %v4532_v52 = vpop.permute.xlu0 %1828  ;;  %3673 = vset.pattern.permute.xlu0 %v7788_v48  ;;  %1430 = vrot.lane.b32.xlu1 %v4399_v38, %s3840_s15 }
 0x23d   : > { %7787 = vst [vmem:[#allocation72_spill] sm:$0xff] %v4532_v52  ;;  %1924 = vperm.xlu0 %3673, %v3916_v0  }
 0x23e   : > { %v4538_v30 = vpop.permute.xlu1 %2204 }
 0x240   : > { %v4540_v55 = vpop.permute.xlu0 %2230  ;;  %1631 = vrot.lane.b32.xlu1 %v4399_v38, %s3841_s16 }
 0x241   : > { %7789 = vst [vmem:[#allocation73_spill] sm:$0xff] %v4540_v55  ;;  %1916 = vperm.xlu0 %3673, %v3927_v4  }
 0x242   : > { %v4545_v26 = vpop.permute.xlu1 %819 }
 0x244   : > { %v4547_v42 = vpop.permute.xlu0 %1404  ;;  %1832 = vrot.lane.b32.xlu1 %v4399_v38, %s3843_s20 }
 0x245   : > { %7790 = vst [vmem:[#allocation74_spill] sm:$0xff] %v4547_v42  ;;  %1904 = vperm.xlu0 %3673, %v4026_v43  }
 0x246   : > { %v4552_v21 = vpop.permute.xlu1 %1022 }
 0x248   : > { %v4554_v36 = vpop.permute.xlu0 %823  ;;  %2033 = vrot.lane.b32.xlu1 %v4399_v38, %s3842_s19 }
 0x249   : > { %7791 = vst [vmem:[#allocation75_spill] sm:$0xff] %v4554_v36  ;;  %2198 = vrot.lane.b32.xlu0 %v4179_v7, %s3844_s21  ;;  %v7798_v36 = vmov 7  }
 0x24a   : > { %v4560_v4 = vpop.permute.xlu1 %1223 }
 0x24c   : > { %v4562_v55 = vpop.permute.xlu0 %1227  ;;  %2234 = vrot.lane.b32.xlu1 %v4399_v38, %s3844_s21 }
 0x24d   : > { %7792 = vst [vmem:[#allocation76_spill] sm:$0xff] %v4562_v55  ;;  %2222 = vrot.lane.b32.xlu0 %v4191_v13, %s3844_s21 }
 0x24e   : > { %v4568_v42 = vpop.permute.xlu1 %1424 }
 0x250   : > { %v4570_v47 = vpop.permute.xlu0 %1428  ;;  %994 = vrot.lane.b32.xlu1 %v4199_v14, %s3838_s13 }
 0x251   : > { %7793 = vst [vmem:[#allocation77_spill] sm:$0xff] %v4570_v47  ;;  %1599 = vrot.lane.b32.xlu0 %v4213_v5, %s3841_s16 }
 0x252   : > { %v4576_v7 = vpop.permute.xlu1 %1826 }
 0x254   : > { %v4578_v15 = vpop.permute.xlu0 %1629  ;;  %996 = vrot.lane.b32.xlu1 %v4213_v5, %s3838_s13 }
 0x255   : > { %7794 = vst [vmem:[#allocation78_spill] sm:$0xff] %v4578_v15  ;;  %1623 = vrot.lane.b32.xlu0 %v4221_v18, %s3841_s16 }
 0x256   : > { %v4584_v13 = vpop.permute.xlu1 %2228 }
 0x258   : > { %v4586_v55 = vpop.permute.xlu0 %1830  ;;  %1020 = vrot.lane.b32.xlu1 %v4221_v18, %s3838_s13 }
 0x259   : > { %7795 = vst [vmem:[#allocation79_spill] sm:$0xff] %v4586_v55  ;;  %1912 = vperm.xlu0 %3673, %v4106_v44  }
 0x25a   : > { %v4591_v47 = vpop.permute.xlu1 %1603 }
 0x25b   : > { %7796 = vst [vmem:[#allocation80_spill] sm:$0xff] %v4591_v47 }
 0x25c   : > { %1309 = vperm.xlu1 %3668, %v4106_v44   ;;  %v4594_v15 = vpop.permute.xlu0 %2031 }
 0x25d   : > { %7797 = vst [vmem:[#allocation81_spill] sm:$0xff] %v4594_v15  ;;  %3676 = vset.pattern.permute.xlu0 %v7798_v36 }
 0x25e   : > { %v4597_v39 = vpop.permute.xlu1 %2005  ;;  %2125 = vperm.xlu0 %3676, %v3916_v0  }
 0x25f   : > { %7799 = vst [vmem:[#allocation82_spill] sm:$0xff] %v4597_v39 }
 0x260   : > { %1794 = vrot.lane.b32.xlu1 %v4167_v63, %s3843_s20  ;;  %v4606_v47 = vpop.permute.xlu0 %2232 }
 0x261   : > { %3669 = vset.pattern.permute.xlu1 %v7798_v36  ;;  %7801 = vst [vmem:[#allocation84_spill] sm:$0xff] %v4606_v47 }
 0x262   : > { %v4603_v55 = vpop.permute.xlu1 %1627  ;;  %2121 = vperm.xlu0 %3676, %v3944_v9  }
 0x263   : > { %7800 = vst [vmem:[#allocation83_spill] sm:$0xff] %v4603_v55 }
 0x264   : > { %1818 = vrot.lane.b32.xlu1 %v4171_v1, %s3843_s20  ;;  %v4614_v0 = vpop.permute.xlu0 %1004 }
 0x265   : > { %7803 = vst [vmem:[#allocation86_spill] sm:$0xff] %v4614_v0 }
 0x266   : > { %v4610_v15 = vpop.permute.xlu1 %2029  ;;  %2105 = vperm.xlu0 %3676, %v4026_v43  }
 0x267   : > { %7802 = vst [vmem:[#allocation85_spill] sm:$0xff] %v4610_v15 }
 0x268   : > { %2101 = vperm.xlu1 %3669, %v3951_v10   ;;  %v4623_v47 = vpop.permute.xlu0 %1028 }
 0x269   : > { %7806 = vst [vmem:[#allocation89_spill] sm:$0xff] %v4623_v47  ;;  %v7812_v47 = vmov 8  }
 0x26a   : > { %v4616_v39 = vpop.permute.xlu1 %799 }
 0x26b   : > { %7804 = vst [vmem:[#allocation87_spill] sm:$0xff] %v4616_v39 }
 0x26c   : > { %1195 = vrot.lane.b32.xlu1 %v4199_v14, %s3839_s14  ;;  %v4631_v43 = vpop.permute.xlu0 %1018 }
 0x26d   : > { %3671 = vset.pattern.permute.xlu1 %v7772_v29  ;;  %7808 = vst [vmem:[#allocation91_spill] sm:$0xff] %v4631_v43  ;;  %v3728_v43 = vld [vmem:[%s7418_s3 + $0x20] sm:$0xff]  }
 0x26e   : > { %v4621_v9 = vpop.permute.xlu1 %1002  ;;  %3591 = vmatmul.mubr.msk.bf16.gmra.mxu0 %vm575_vm0, %v3728_v43 }
 0x26f   : > { %7805 = vst [vmem:[#allocation88_spill] sm:$0xff] %v4621_v9 }
 0x270   : > { %1197 = vrot.lane.b32.xlu1 %v4213_v5, %s3839_s14 }
 0x272   : > { %v4627_v15 = vpop.permute.xlu1 %1203 }
 0x273   : > { %7807 = vst [vmem:[#allocation90_spill] sm:$0xff] %v4627_v15 }
 0x274   : > { %1221 = vrot.lane.b32.xlu1 %v4221_v18, %s3839_s14 }
 0x276   : > { %v4633_v0 = vpop.permute.xlu1 %1605 }
 0x277   : > { %7809 = vst [vmem:[#allocation92_spill] sm:$0xff] %v4633_v0 }
 0x278   : > { %1510 = vperm.xlu1 %3671, %v4106_v44  }
 0x279   : > { %v4636_v55 = vpop.permute.xlu0 %1305 }
 0x27a   : > { %7810 = vst [vmem:[#allocation93_spill] sm:$0xff] %v4636_v55  ;;  %v4638_v29 = vpop.permute.xlu1 %1806 }
 0x27b   : > { %7811 = vst [vmem:[#allocation94_spill] sm:$0xff] %v4638_v29 }
 0x27c   : > { %1995 = vrot.lane.b32.xlu1 %v4167_v63, %s3842_s19 }
 0x27d   : > { %3672 = vset.pattern.permute.xlu1 %v7812_v47  ;;  %v7817_v47 = vmov 0  }
 0x27e   : > { %v4643_v9 = vpop.permute.xlu1 %2007  ;;  %v4645_v15 = vpop.permute.xlu0 %1522  ;;  %676 = vmatprep.mubr.bf16.mxu0 %v7817_v47 }
 0x27f   : > { %7813 = vst [vmem:[#allocation95_spill] sm:$0xff] %v4643_v9  ;;  %7814 = vst [vmem:[#allocation96_spill] sm:$0xff] %v4645_v15 }
 0x280   : > { %2019 = vrot.lane.b32.xlu1 %v4171_v1, %s3842_s19 }
 0x282   : > { %v4652_v0 = vpop.permute.xlu1 %2208  ;;  %v4654_v55 = vpop.permute.xlu0 %1518 }
 0x283   : > { %7815 = vst [vmem:[#allocation97_spill] sm:$0xff] %v4652_v0  ;;  %7816 = vst [vmem:[#allocation98_spill] sm:$0xff] %v4654_v55  ;;  %v3729_v0 = vld [vmem:[%s7418_s3 + $0x28] sm:$0xff]  }
 0x284   : > { %2302 = vperm.xlu1 %3672, %v3951_v10   ;;  %3592 = vmatmul.mubr.msk.bf16.gmra.mxu0 %vm575_vm0, %v3729_v0 }
 0x285   : > { %2800 = vmatprep.mubr.bf16.mxu0 %v7817_v47  ;;  %v835_v47 = vlaneseq }
 0x286   : > { %v4659_v9 = vpop.permute.xlu1 %1026  ;;  %v4661_v15 = vpop.permute.xlu0 %1502 }
 0x287   : > { %7818 = vst [vmem:[#allocation99_spill] sm:$0xff] %v4659_v9  ;;  %7819 = vst [vmem:[#allocation100_spill] sm:$0xff] %v4661_v15 }
 0x288   : > { %1396 = vrot.lane.b32.xlu1 %v4199_v14, %s3840_s15 }
 0x289   : > { %3674 = vset.pattern.permute.xlu1 %v7781_v45 }
 0x28a   : > { %v4669_v55 = vpop.permute.xlu1 %801  ;;  %v4671_v43 = vpop.permute.xlu0 %1796 }
 0x28b   : > { %7820 = vst [vmem:[#allocation101_spill] sm:$0xff] %v4669_v55  ;;  %7821 = vst [vmem:[#allocation102_spill] sm:$0xff] %v4671_v43 }
 0x28c   : > { %1398 = vrot.lane.b32.xlu1 %v4213_v5, %s3840_s15 }
 0x28e   : > { %v4677_v10 = vpop.permute.xlu1 %1205  ;;  %v4679_v15 = vpop.permute.xlu0 %1820 }
 0x28f   : > { %7822 = vst [vmem:[#allocation103_spill] sm:$0xff] %v4677_v10  ;;  %7823 = vst [vmem:[#allocation104_spill] sm:$0xff] %v4679_v15 }
 0x290   : > { %1422 = vrot.lane.b32.xlu1 %v4221_v18, %s3840_s15 }
 0x292   : > { %v4683_v45 = vpop.permute.xlu1 %1406  ;;  %v4685_v29 = vpop.permute.xlu0 %1219 }
 0x293   : > { %7824 = vst [vmem:[#allocation105_spill] sm:$0xff] %v4683_v45  ;;  %7825 = vst [vmem:[#allocation106_spill] sm:$0xff] %v4685_v29  ;;  %v4701_v29 = vshrl.u32 %v835_v47, 7 }
 0x294   : > { %1711 = vperm.xlu1 %3674, %v4106_v44  }
 0x295   : > { %v1668_v45 = vsub.s32 5, %v4701_v29 }
 0x296   : > { %v4688_v43 = vpop.permute.xlu1 %1607  ;;  %v4690_v0 = vpop.permute.xlu0 %1506 }
 0x297   : > { %7826 = vst [vmem:[#allocation107_spill] sm:$0xff] %v4688_v43  ;;  %7827 = vst [vmem:[#allocation108_spill] sm:$0xff] %v4690_v0  ;;  %v4709_v0 = vand.u32 127, %v835_v47  ;;  %v1266_v43 = vsub.s32 2, %v4701_v29  ;;  %v864_v47 = vsub.s32 0, %v4701_v29 }
 0x298   : > { %2196 = vrot.lane.b32.xlu1 %v4167_v63, %s3844_s21 }
 0x299   : > { %3675 = vset.pattern.permute.xlu1 %v7788_v48  ;;  %v1065_v48 = vsub.s32 1, %v4701_v29  ;;  %vm837_vm1 = vcmp.lt.s32.totalorder %v4709_v0, 17  ;;  %vm1038_vm2 = vcmp.lt.s32.totalorder %v4709_v0, 16  ;;  %vm1239_vm3 = vcmp.lt.s32.totalorder %v4709_v0, 15 }
 0x29a   : > { %v4695_v15 = vpop.permute.xlu1 %1808  ;;  %vm1440_vm4 = vcmp.lt.s32.totalorder %v4709_v0, 1  ;;  %vm1641_vm5 = vcmp.lt.s32.totalorder %v4709_v0, 127  ;;  %vm2043_vm6 = vcmp.lt.s32.totalorder %v4709_v0, 112  ;;  %vm1842_vm7 = vcmp.lt.s32.totalorder %v4709_v0, 113 }
 0x29b   : > { %7828 = vst [vmem:[#allocation109_spill] sm:$0xff] %v4695_v15  ;;  %v4697_v5 = vpop.permute.xlu0 %1723  ;;  %v4717_v15 = vld [vmem:[%s7422_s7] sm:$0xff]  ;;  %v1658_v41 = vsel %vm1641_vm5, %v4442_v34, %v4435_v31  ;;  %vm2244_vm8 = vcmp.lt.s32.totalorder %v4709_v0, 111 }
 0x29c   : > { %7829 = vst [vmem:[#allocation110_spill] sm:$0xff] %v4697_v5  ;;  %2220 = vrot.lane.b32.xlu1 %v4171_v1, %s3844_s21  ;;  %v4748_v55 = vrot.slane %v4717_v15, %v1266_v43 }
 0x29e   : > { %v4703_v44 = vpop.permute.xlu1 %2009  ;;  %7838 = vst [vmem:[#allocation119_spill] sm:$0xff] %v4748_v55 }
 0x29f   : > { %7830 = vst [vmem:[#allocation111_spill] sm:$0xff] %v4703_v44  ;;  %v4705_v18 = vpop.permute.xlu0 %1719  ;;  %v4724_v44 = vld [vmem:[%s7422_s7 + $0x8] sm:$0xff] }
 0x2a0   : > { %7831 = vst [vmem:[#allocation112_spill] sm:$0xff] %v4705_v18  ;;  %1597 = vrot.lane.b32.xlu1 %v4199_v14, %s3841_s16  ;;  %v4740_v5 = vrot.slane %v4724_v44, %v1065_v48  ;;  %v4751_v18 = vrot.slane %v4724_v44, %v1266_v43  ;;  %v4768_v43 = vrot.slane %v4717_v15, %v864_v47 }
 0x2a1   : > { %v4771_v9 = vrot.slane %v4724_v44, %v864_v47  ;;  %v1055_v47 = vsel %vm1038_vm2, %v4552_v21, %v4499_v16 }
 0x2a2   : > { %v4712_v63 = vpop.permute.xlu1 %2210  ;;  %7836 = vst [vmem:[#allocation117_spill] sm:$0xff] %v4740_v5  ;;  %7839 = vst [vmem:[#allocation120_spill] sm:$0xff] %v4751_v18 }
 0x2a3   : > { %7832 = vst [vmem:[#allocation113_spill] sm:$0xff] %v4712_v63  ;;  %v4719_v1 = vpop.permute.xlu0 %1703  ;;  %v1467_v63 = vsub.s32 3, %v4701_v29  ;;  %7841 = vst [vmem:[#allocation122_spill] sm:$0xff] %v4768_v43 }
 0x2a4   : > { %7833 = vst [vmem:[#allocation114_spill] sm:$0xff] %v4719_v1  ;;  %1621 = vrot.lane.b32.xlu1 %v4207_v62, %s3841_s16  ;;  %v4734_v1 = vrot.slane %v4717_v15, %v1065_v48  ;;  %v842_v48 = vsel %vm837_vm1, %v4492_v33, %v4545_v26  ;;  %7842 = vst [vmem:[#allocation123_spill] sm:$0xff] %v4771_v9 }
 0x2a5   : > { %v4774_v39 = vrot.slane %v4717_v15, %v1467_v63  ;;  %v4777_v25 = vrot.slane %v4724_v44, %v1467_v63  ;;  %v771_v63 = vmul.f32 %v4157_v50, %v4229_v20  ;;  %v879_v38 = vmul.f32 %v4771_v9, %v842_v48 }
 0x2a6   : > { %7834 = vst [vmem:[#allocation115_spill] sm:$0xff] %v4734_v1  ;;  %v4737_v10 = vpop.permute.xlu1 %825  ;;  %v1244_v20 = vsel %vm1239_vm3, %v4507_v51, %v4560_v4  ;;  %v1256_v50 = vsel %vm1239_vm3, %v4560_v4, %v4507_v51  ;;  %v1646_v51 = vsel %vm1641_vm5, %v4435_v31, %v4442_v34 }
 0x2a7   : > { %7835 = vst [vmem:[#allocation116_spill] sm:$0xff] %v4737_v10  ;;  %v4745_v62 = vpop.permute.xlu0 %1997  ;;  %v854_v10 = vsel %vm837_vm1, %v4545_v26, %v4492_v33  ;;  %7843 = vst [vmem:[#allocation124_spill] sm:$0xff] %v4774_v39  ;;  %v4780_v33 = vrot.slane %v4717_v15, %v1668_v45  ;;  %v4783_v26 = vrot.slane %v4724_v44, %v1668_v45 }
 0x2a8   : > { %7837 = vst [vmem:[#allocation118_spill] sm:$0xff] %v4745_v62  ;;  %v4764_v62 = vld [vmem:[%s7419_s4 + $0x10] sm:$0xff]  ;;  %7844 = vst [vmem:[#allocation125_spill] sm:$0xff] %v4777_v25  ;;  %v878_v45 = vmul.f32 %v4768_v43, %v854_v10  ;;  %v4827_v10 = vmul.f32 %v4097_v40, %v4327_v17  ;;  %v1457_v17 = vsel %vm1440_vm4, %v4568_v42, %v4515_v60 }
 0x2a9   : > { %7840 = vst [vmem:[#allocation121_spill] sm:$0xff] %v4764_v62  ;;  %1908 = vperm.xlu1 %3675, %v4764_v62   ;;  %7845 = vst [vmem:[#allocation126_spill] sm:$0xff] %v4780_v33  ;;  %v1043_v62 = vsel %vm1038_vm2, %v4499_v16, %v4552_v21  ;;  %v2070_v16 = vsub.s32 7, %v4701_v29  ;;  %v1079_v21 = vmul.f32 %v4734_v1, %v1055_v47 }
 0x2aa   : > { %7846 = vst [vmem:[#allocation127_spill] sm:$0xff] %v4783_v26  ;;  %v4793_v52 = vpop.permute.xlu1 %1229  ;;  %v1080_v22 = vmul.f32 %v4740_v5, %v1043_v62  ;;  %v1445_v62 = vsel %vm1440_vm4, %v4515_v60, %v4568_v42  ;;  %v950_v4 = vmul.f32 %v4159_v57, %v878_v45  ;;  %v951_v48 = vmul.f32 %v4159_v57, %v879_v38 }
 0x2ab   : > { %v4801_v37 = vpop.permute.xlu0 %2021  ;;  %v1280_v31 = vmul.f32 %v4748_v55, %v1256_v50  ;;  %v1281_v34 = vmul.f32 %v4751_v18, %v1244_v20  ;;  %v1869_v42 = vsub.s32 6, %v4701_v29  ;;  %v4864_v60 = vmul.f32 %v4097_v40, %v4337_v3 }
 0x2ac   : > { %7847 = vst [vmem:[#allocation128_spill] sm:$0xff] %v4801_v37  ;;  %v4859_v37 = vrot.slane %v4724_v44, %v2070_v16  ;;  %v1151_v38 = vmul.f32 %v4165_v61, %v1079_v21  ;;  %v1152_v57 = vmul.f32 %v4165_v61, %v1080_v22  ;;  %v1481_v45 = vmul.f32 %v4774_v39, %v1457_v17 }
 0x2ad   : > { %1798 = vrot.lane.b32.xlu1 %v4199_v14, %s3843_s20  ;;  %v1482_v20 = vmul.f32 %v4777_v25, %v1445_v62  ;;  %v1682_v50 = vmul.f32 %v4780_v33, %v1646_v51  ;;  %v843_v3 = vsel %vm837_vm1, %v4458_v8, %v4501_v56  ;;  %v855_v40 = vsel %vm837_vm1, %v4501_v56, %v4458_v8 }
 0x2ae   : > { %3678 = vset.pattern.permute.xlu1 %v7798_v36  ;;  %v4846_v27 = vpop.permute.xlu1 %1430  ;;  %v4856_v36 = vrot.slane %v4717_v15, %v2070_v16  ;;  %v1683_v16 = vmul.f32 %v4783_v26, %v1658_v41  ;;  %v974_v29 = vadd.f32 %v950_v4, %v771_v63  ;;  %v975_v21 = vadd.f32 %v951_v48, %v772_v46 }
 0x2af   : > { %v4853_v47 = vpop.permute.xlu0 %1420  ;;  %v1352_v22 = vmul.f32 %v4183_v12, %v1280_v31  ;;  %v1353_v51 = vmul.f32 %v4183_v12, %v1281_v34  ;;  %v1044_v41 = vsel %vm1038_vm2, %v4466_v54, %v4509_v6  ;;  %v1056_v8 = vsel %vm1038_vm2, %v4509_v6, %v4466_v54 }
 0x2b0   : > { %7848 = vst [vmem:[#allocation129_spill] sm:$0xff] %v4853_v47  ;;  %v4896_v56 = vrot.slane %v4717_v15, %v1869_v42  ;;  %v4899_v46 = vrot.slane %v4724_v44, %v1869_v42  ;;  %v1175_v63 = vadd.f32 %v1151_v38, %v974_v29  ;;  %v1176_v12 = vadd.f32 %v1152_v57, %v975_v21 }
 0x2b1   : > { %v1553_v17 = vmul.f32 %v4203_v59, %v1481_v45  ;;  %v1554_v4 = vmul.f32 %v4203_v59, %v1482_v20  ;;  %v1754_v48 = vmul.f32 %v4225_v19, %v1682_v50  ;;  %v1755_v31 = vmul.f32 %v4225_v19, %v1683_v16 }
 0x2b2   : > { %v4881_v61 = vpop.permute.xlu1 %1631  ;;  %7850 = vst [vmem:[#allocation131_spill] sm:$0xff] %v4896_v56  ;;  %v880_v34 = vmul.f32 %v4768_v43, %v855_v40  ;;  %v881_v6 = vmul.f32 %v4771_v9, %v843_v3  ;;  %v2048_v15 = vsel %vm2043_vm6, %v4530_v35, %v4450_v28  ;;  %v2060_v59 = vsel %vm2043_vm6, %v4450_v28, %v4530_v35 }
 0x2b3   : > { %v4885_v62 = vpop.permute.xlu0 %1707  ;;  %v1376_v44 = vadd.f32 %v1352_v22, %v1175_v63  ;;  %v1377_v42 = vadd.f32 %v1353_v51, %v1176_v12  ;;  %v1081_v19 = vmul.f32 %v4734_v1, %v1056_v8  ;;  %v1082_v38 = vmul.f32 %v4740_v5, %v1044_v41  ;;  %v4960_v12 = vld [vmem:[%s7422_s7 + $0x10] ss:$0 sm:$0xff] }
 0x2b4   : > { %7849 = vst [vmem:[#allocation130_spill] sm:$0xff] %v4885_v62  ;;  %v1847_v57 = vsel %vm1842_vm7, %v4523_v2, %v4576_v7  ;;  %v1859_v45 = vsel %vm1842_vm7, %v4576_v7, %v4523_v2  ;;  %v1245_v35 = vsel %vm1239_vm3, %v4473_v23, %v4517_v49  ;;  %v1257_v28 = vsel %vm1239_vm3, %v4517_v49, %v4473_v23 }
 0x2b5   : > { %v1577_v50 = vadd.f32 %v1553_v17, %v1376_v44  ;;  %v1578_v16 = vadd.f32 %v1554_v4, %v1377_v42  ;;  %v952_v3 = vmul.f32 %v4161_v58, %v880_v34  ;;  %v953_v40 = vmul.f32 %v4161_v58, %v881_v6 }
 0x2b6   : > { %v4907_v54 = vpop.permute.xlu1 %1832  ;;  %v2084_v2 = vmul.f32 %v4856_v36, %v2048_v15  ;;  %v2085_v7 = vmul.f32 %v4859_v37, %v2060_v59  ;;  %v1883_v29 = vmul.f32 %v4896_v56, %v1847_v57  ;;  %v1884_v21 = vmul.f32 %v4899_v46, %v1859_v45 }
 0x2b7   : > { %v2249_v22 = vsel %vm2244_vm8, %v4538_v30, %v4584_v13  ;;  %v2261_v23 = vsel %vm2244_vm8, %v4584_v13, %v4538_v30  ;;  %v1153_v58 = vmul.f32 %v4309_v32, %v1081_v19  ;;  %v1154_v51 = vmul.f32 %v4309_v32, %v1082_v38  ;;  %v4965_v13 = vld [vmem:[%s7422_s7 + $0x18] ss:$0 sm:$0xff] }
 0x2b8   : > { %v4927_v20 = vpop.permute.xlu0 %1924  ;;  %v1282_v41 = vmul.f32 %v4748_v55, %v1257_v28  ;;  %v1283_v8 = vmul.f32 %v4751_v18, %v1245_v35  ;;  %v1778_v30 = vadd.f32 %v1754_v48, %v1577_v50  ;;  %v1779_v17 = vadd.f32 %v1755_v31, %v1578_v16  ;;  %v7851_v48 = vld [vmem:[#allocation48_spill] sm:$0xff]  ;;  %v7852_v31 = vld [vmem:[#allocation5_spill] sm:$0xff]  ;;  %v7853_v28 = vld [vmem:[#allocation51_spill] sm:$0xff] }
 0x2b9   : > { %v976_v32 = vadd.f32 %v952_v3, %v4806_v24  ;;  %v977_v6 = vadd.f32 %v953_v40, %v4821_v11  ;;  %v2285_v15 = vmul.f32 %v4960_v12, %v2249_v22  ;;  %v2286_v59 = vmul.f32 %v4965_v13, %v2261_v23  ;;  %v7855_v50 = vld [vmem:[#allocation39_spill] sm:$0xff] }
 0x2ba   : > { %v4951_v49 = vpop.permute.xlu1 %2033  ;;  %v2156_v44 = vmul.f32 %v4245_v53, %v2084_v2  ;;  %v2157_v42 = vmul.f32 %v4245_v53, %v2085_v7  ;;  %v4975_v35 = vmul.f32 %v7852_v31, %v7851_v48  ;;  %v4979_v24 = vmul.f32 %v7852_v31, %v7853_v28  ;;  %v7857_v7 = vld [vmem:[#allocation72_spill] sm:$0xff]  ;;  %v7859_v22 = vld [vmem:[#allocation3_spill] sm:$0xff] }
 0x2bb   : > { %v1177_v57 = vadd.f32 %v1153_v58, %v976_v32  ;;  %v1178_v45 = vadd.f32 %v1154_v51, %v977_v6  ;;  %v1354_v16 = vmul.f32 %v7855_v50, %v1282_v41  ;;  %v1355_v3 = vmul.f32 %v7855_v50, %v1283_v8  ;;  %v7860_v51 = vld [vmem:[#allocation87_spill] sm:$0xff]  ;;  %v7865_v32 = vld [vmem:[#allocation70_spill] sm:$0xff] }
 0x2bc   : > { %v1917_v63 = vpop.permute.xlu0 %1916  ;;  %v2357_v23 = vmul.f32 %v7859_v22, %v2285_v15  ;;  %v2358_v58 = vmul.f32 %v7859_v22, %v2286_v59  ;;  %v7863_v8 = vld [vmem:[#allocation71_spill] sm:$0xff] }
 0x2bd   : > { %v1955_v4 = vmul.f32 %v1917_v63, %v1883_v29  ;;  %v1956_v34 = vmul.f32 %v1917_v63, %v1884_v21  ;;  %v7858_v29 = vld [vmem:[#allocation69_spill] sm:$0xff]  ;;  %v7861_v63 = vld [vmem:[#allocation75_spill] sm:$0xff]  ;;  %v1379_v62 = vadd.f32 %v1355_v3, %v1178_v45 }
 0x2be   : > { %v4985_v2 = vpop.permute.xlu1 %2234  ;;  %v1848_v21 = vsel %vm1842_vm7, %v7858_v29, %v7857_v7  ;;  %v856_v41 = vsel %vm837_vm1, %v7861_v63, %v7860_v51  ;;  %v844_v15 = vsel %vm837_vm1, %v7860_v51, %v7861_v63 }
 0x2bf   : > { %v1979_v19 = vadd.f32 %v1955_v4, %v1778_v30  ;;  %v1980_v38 = vadd.f32 %v1956_v34, %v1779_v17  ;;  %7856 = vst [vmem:[#allocation5_spill] sm:$0xff] %v4985_v2  ;;  %v7862_v30 = vld [vmem:[#allocation67_spill] sm:$0xff]  ;;  %v1860_v4 = vsel %vm1842_vm7, %v7857_v7, %v7858_v29  ;;  %v7864_v34 = vld [vmem:[#allocation73_spill] sm:$0xff]  ;;  %v1885_v50 = vmul.f32 %v4896_v56, %v1848_v21 }
 0x2c0   : > { %v4981_v11 = vpop.permute.xlu0 %1904  ;;  %v1458_v17 = vsel %vm1440_vm4, %v7863_v8, %v7862_v30  ;;  %v2250_v6 = vsel %vm2244_vm8, %v7865_v32, %v7864_v34  ;;  %v2262_v59 = vsel %vm2244_vm8, %v7864_v34, %v7865_v32  ;;  %v1446_v28 = vsel %vm1440_vm4, %v7862_v30, %v7863_v8  ;;  %v7898_v2 = vld [vmem:[#allocation101_spill] sm:$0xff] }
 0x2c1   : > { %7854 = vst [vmem:[#allocation48_spill] sm:$0xff] %v4981_v11  ;;  %v2180_v40 = vadd.f32 %v2156_v44, %v1979_v19  ;;  %v2181_v53 = vadd.f32 %v2157_v42, %v1980_v38  ;;  %v7866_v44 = vld [vmem:[#allocation88_spill] sm:$0xff]  ;;  %v7867_v42 = vld [vmem:[#allocation99_spill] sm:$0xff]  ;;  %v882_v7 = vmul.f32 %v4768_v43, %v856_v41  ;;  %v1886_v22 = vmul.f32 %v4899_v46, %v1860_v4 }
 0x2c2   : > { %v1057_v19 = vsel %vm1038_vm2, %v7867_v42, %v7866_v44  ;;  %v1045_v29 = vsel %vm1038_vm2, %v7866_v44, %v7867_v42  ;;  %v2287_v21 = vmul.f32 %v4960_v12, %v2250_v6  ;;  %v2288_v51 = vmul.f32 %v4965_v13, %v2262_v59  ;;  %v5047_v41 = vpop.permute.xlu1 %994  ;;  %v7875_v42 = vld [vmem:[#allocation77_spill] sm:$0xff]  ;;  %v7876_v59 = vld [vmem:[#allocation6_spill] sm:$0xff]  ;;  %v7897_v11 = vld [vmem:[#allocation112_spill] sm:$0xff] }
 0x2c3   : > { %v5023_v48 = vadd.f32 %v2357_v23, %v2180_v40  ;;  %v5025_v31 = vadd.f32 %v2358_v58, %v2181_v53  ;;  %v883_v40 = vmul.f32 %v4771_v9, %v844_v15  ;;  %v1483_v58 = vmul.f32 %v4774_v39, %v1458_v17  ;;  %7871 = vst [vmem:[#allocation69_spill] sm:$0xff] %v5047_v41  ;;  %v7873_v15 = vld [vmem:[#allocation22_spill] sm:$0xff] }
 0x2c4   : > { %v5021_v38 = vpop.permute.xlu0 %2198  ;;  %v1083_v63 = vmul.f32 %v4734_v1, %v1057_v19  ;;  %v1484_v30 = vmul.f32 %v4777_v25, %v1446_v28  ;;  %v1378_v8 = vadd.f32 %v1354_v16, %v1177_v57  ;;  %v1084_v4 = vmul.f32 %v4740_v5, %v1045_v29  ;;  %v7874_v17 = vld [vmem:[#allocation74_spill] sm:$0xff]  ;;  %v7877_v16 = vld [vmem:[#allocation76_spill] sm:$0xff] }
 0x2c5   : > { %7868 = vst [vmem:[#allocation51_spill] sm:$0xff] %v5021_v38  ;;  %7869 = vst [vmem:[#allocation39_spill] sm:$0xff] %v5023_v48  ;;  %v2425_v53 = vmul.f32 %v5023_v48, %v5023_v48  ;;  %v2426_v23 = vmul.f32 %v5025_v31, %v5025_v31  ;;  %v5054_v44 = vmul.f32 %v7873_v15, %v1885_v50  ;;  %v7878_v28 = vld [vmem:[#allocation90_spill] sm:$0xff] }
 0x2c6   : > { %7870 = vst [vmem:[#allocation72_spill] sm:$0xff] %v5025_v31  ;;  %v1459_v6 = vsel %vm1440_vm4, %v7875_v42, %v7874_v17  ;;  %v954_v19 = vmul.f32 %v7876_v59, %v882_v7  ;;  %v5062_v47 = vmul.f32 %v7873_v15, %v1886_v22  ;;  %v955_v57 = vmul.f32 %v7876_v59, %v883_v40  ;;  %v7880_v7 = vld [vmem:[#allocation30_spill] sm:$0xff]  ;;  %v7881_v15 = vld [vmem:[#allocation83_spill] sm:$0xff]  ;;  %v7882_v59 = vld [vmem:[#allocation80_spill] sm:$0xff]  ;;  %v5103_v41 = vpop.permute.xlu1 %996 }
 0x2c7   : > { %v2433_v32 = vadd.f32 %v2426_v23, %v2425_v53  ;;  %v1246_v29 = vsel %vm1239_vm3, %v7878_v28, %v7877_v16  ;;  %v1258_v50 = vsel %vm1239_vm3, %v7877_v16, %v7878_v28  ;;  %v7879_v53 = vld [vmem:[#allocation23_spill] sm:$0xff]  ;;  %v1447_v3 = vsel %vm1440_vm4, %v7874_v17, %v7875_v42  ;;  %v7884_v28 = vld [vmem:[#allocation85_spill] sm:$0xff]  ;;  %v7885_v17 = vld [vmem:[#allocation82_spill] sm:$0xff]  ;;  %7886 = vst [vmem:[#allocation75_spill] sm:$0xff] %v5103_v41 }
 0x2c8   : > { %v5051_v34 = vpop.permute.xlu0 %2222  ;;  %v5074_v23 = vmul.f32 %v7879_v53, %v2287_v21  ;;  %v5077_v45 = vmul.f32 %v7879_v53, %v2288_v51  ;;  %v1155_v22 = vmul.f32 %v7880_v7, %v1083_v63  ;;  %v1485_v40 = vmul.f32 %v4774_v39, %v1459_v6 }
 0x2c9   : > { %7872 = vst [vmem:[#allocation3_spill] sm:$0xff] %v5051_v34  ;;  %2434 = vadd.xlane.f32.xlu0 %v2433_v32  ;;  %v1647_v32 = vsel %vm1641_vm5, %v7882_v59, %v7881_v15  ;;  %v1659_v21 = vsel %vm1641_vm5, %v7881_v15, %v7882_v59  ;;  %v1156_v51 = vmul.f32 %v7880_v7, %v1084_v4  ;;  %v7887_v4 = vld [vmem:[#allocation78_spill] sm:$0xff]  ;;  %v7888_v7 = vld [vmem:[#allocation92_spill] sm:$0xff] }
 0x2ca   : > { %v2049_v63 = vsel %vm2043_vm6, %v7885_v17, %v7884_v28  ;;  %v978_v42 = vadd.f32 %v954_v19, %v4827_v10  ;;  %v1284_v6 = vmul.f32 %v4748_v55, %v1258_v50  ;;  %v1285_v53 = vmul.f32 %v4751_v18, %v1246_v29  ;;  %v7889_v50 = vld [vmem:[#allocation79_spill] sm:$0xff] }
 0x2cb   : > { %v1486_v48 = vmul.f32 %v4777_v25, %v1447_v3  ;;  %v979_v15 = vadd.f32 %v955_v57, %v4864_v60  ;;  %v1648_v59 = vsel %vm1641_vm5, %v7888_v7, %v7887_v4  ;;  %v1660_v10 = vsel %vm1641_vm5, %v7887_v4, %v7888_v7  ;;  %v7892_v7 = vld [vmem:[#allocation8_spill] sm:$0xff] }
 0x2cc   : > { %v5094_v16 = vpop.permute.xlu0 %1599  ;;  %v1684_v19 = vmul.f32 %v4780_v33, %v1647_v32  ;;  %v1685_v29 = vmul.f32 %v4783_v26, %v1659_v21  ;;  %v1179_v60 = vadd.f32 %v1155_v22, %v978_v42  ;;  %v2061_v57 = vsel %vm2043_vm6, %v7884_v28, %v7885_v17  ;;  %v7893_v17 = vld [vmem:[#allocation81_spill] sm:$0xff] }
 0x2cd   : > { %7883 = vst [vmem:[#allocation87_spill] sm:$0xff] %v5094_v16  ;;  %v7890_v16 = vld [vmem:[#allocation94_spill] sm:$0xff]  ;;  %v5126_v41 = vmul.f32 %v4856_v36, %v2049_v63  ;;  %v1180_v21 = vadd.f32 %v1156_v51, %v979_v15  ;;  %v1356_v31 = vmul.f32 %v7892_v7, %v1284_v6  ;;  %v1357_v22 = vmul.f32 %v7892_v7, %v1285_v53  ;;  %v7894_v63 = vld [vmem:[#allocation95_spill] sm:$0xff]  ;;  %v7896_v15 = vld [vmem:[#allocation96_spill] sm:$0xff] }
 0x2ce   : > { %v1849_v3 = vsel %vm1842_vm7, %v7890_v16, %v7889_v50  ;;  %v1861_v32 = vsel %vm1842_vm7, %v7889_v50, %v7890_v16  ;;  %v1686_v42 = vmul.f32 %v4780_v33, %v1648_v59  ;;  %v1687_v38 = vmul.f32 %v4783_v26, %v1660_v10  ;;  %v7895_v16 = vld [vmem:[#allocation98_spill] sm:$0xff] }
 0x2cf   : > { %v1887_v28 = vmul.f32 %v4896_v56, %v1849_v3  ;;  %v2050_v34 = vsel %vm2043_vm6, %v7894_v63, %v7893_v17  ;;  %v2062_v51 = vsel %vm2043_vm6, %v7893_v17, %v7894_v63  ;;  %v1555_v6 = vmul.f32 %v7895_v16, %v1483_v58  ;;  %v5151_v3 = vpop.permute.xlu1 %1020  ;;  %v7899_v56 = vld [vmem:[#allocation116_spill] sm:$0xff] }
 0x2d0   : > { %v5132_v4 = vpop.permute.xlu0 %1623  ;;  %v1888_v53 = vmul.f32 %v4899_v46, %v1861_v32  ;;  %v1557_v59 = vmul.f32 %v7896_v15, %v1485_v40  ;;  %v1556_v10 = vmul.f32 %v7895_v16, %v1484_v30  ;;  %v1380_v50 = vadd.f32 %v1356_v31, %v1179_v60  ;;  %v7901_v30 = vld [vmem:[#allocation84_spill] sm:$0xff]  ;;  %v7902_v31 = vld [vmem:[#allocation97_spill] sm:$0xff] }
 0x2d1   : > { %7891 = vst [vmem:[#allocation67_spill] sm:$0xff] %v5132_v4  ;;  %v1558_v7 = vmul.f32 %v7896_v15, %v1486_v48  ;;  %v1381_v4 = vadd.f32 %v1357_v22, %v1180_v21  ;;  %v1756_v14 = vmul.f32 %v7897_v11, %v1684_v19  ;;  %v857_v17 = vsel %vm837_vm1, %v7899_v56, %v7898_v2  ;;  %v7903_v19 = vld [vmem:[#allocation110_spill] sm:$0xff] }
 0x2d2   : > { %v2088_v32 = vmul.f32 %v4856_v36, %v2050_v34  ;;  %v2089_v40 = vmul.f32 %v4859_v37, %v2062_v51  ;;  %v2251_v60 = vsel %vm2244_vm8, %v7902_v31, %v7901_v30  ;;  %v1757_v48 = vmul.f32 %v7897_v11, %v1685_v29 }
 0x2d3   : > { %v1579_v21 = vadd.f32 %v1555_v6, %v1378_v8  ;;  %v1758_v22 = vmul.f32 %v7903_v19, %v1686_v42  ;;  %v1759_v63 = vmul.f32 %v7903_v19, %v1687_v38  ;;  %v845_v16 = vsel %vm837_vm1, %v7898_v2, %v7899_v56  ;;  %v7905_v56 = vld [vmem:[#allocation86_spill] sm:$0xff]  ;;  %v7906_v2 = vld [vmem:[#allocation89_spill] sm:$0xff] }
 0x2d4   : > { %v5159_v58 = vpop.permute.xlu0 %1912  ;;  %v2263_v34 = vsel %vm2244_vm8, %v7901_v30, %v7902_v31  ;;  %v1580_v51 = vadd.f32 %v1556_v10, %v1379_v62  ;;  %v1581_v15 = vadd.f32 %v1557_v59, %v1380_v50  ;;  %v1582_v8 = vadd.f32 %v1558_v7, %v1381_v4 }
 0x2d5   : > { %7900 = vst [vmem:[#allocation71_spill] sm:$0xff] %v5159_v58  ;;  %v884_v58 = vmul.f32 %v4768_v43, %v857_v17  ;;  %v1780_v29 = vadd.f32 %v1756_v14, %v1579_v21  ;;  %v1959_v38 = vmul.f32 %v4927_v20, %v1887_v28  ;;  %v1960_v42 = vmul.f32 %v4927_v20, %v1888_v53  ;;  %v7907_v28 = vld [vmem:[#allocation26_spill] sm:$0xff] }
 0x2d6   : > { %v2087_v6 = vmul.f32 %v4859_v37, %v2061_v57  ;;  %v1058_v19 = vsel %vm1038_vm2, %v7906_v2, %v7905_v56  ;;  %v1781_v30 = vadd.f32 %v1757_v48, %v1580_v51  ;;  %v885_v62 = vmul.f32 %v4771_v9, %v845_v16 }
 0x2d7   : > { %v5179_v11 = vpop.permute.xlu1 %1309  ;;  %v1782_v10 = vadd.f32 %v1758_v22, %v1581_v15  ;;  %v1783_v50 = vadd.f32 %v1759_v63, %v1582_v8  ;;  %v1046_v14 = vsel %vm1038_vm2, %v7905_v56, %v7906_v2  ;;  %v2289_v20 = vmul.f32 %v4960_v12, %v2251_v60  ;;  %v7908_v22 = vld [vmem:[#allocation103_spill] sm:$0xff] }
 0x2d8   : > { %7904 = vst [vmem:[#allocation73_spill] sm:$0xff] %v5179_v11  ;;  %v2290_v57 = vmul.f32 %v4965_v13, %v2263_v34  ;;  %v956_v53 = vmul.f32 %v7907_v28, %v884_v58  ;;  %v1085_v31 = vmul.f32 %v4734_v1, %v1058_v19  ;;  %v1247_v63 = vsel %vm1239_vm3, %v7908_v22, %v4793_v52 }
 0x2d9   : > { %v2126_v59 = vpop.permute.xlu0 %2125  ;;  %v1983_v48 = vadd.f32 %v1959_v38, %v1782_v10  ;;  %v1984_v21 = vadd.f32 %v1960_v42, %v1783_v50  ;;  %v1259_v58 = vsel %vm1239_vm3, %v4793_v52, %v7908_v22  ;;  %v1982_v60 = vadd.f32 %v5062_v47, %v1781_v30  ;;  %v7910_v52 = vld [vmem:[#allocation105_spill] sm:$0xff]  ;;  %v7911_v30 = vld [vmem:[#allocation18_spill] sm:$0xff] }
 0x2da   : > { %v2160_v17 = vmul.f32 %v2126_v59, %v2088_v32  ;;  %v2161_v4 = vmul.f32 %v2126_v59, %v2089_v40  ;;  %v1981_v32 = vadd.f32 %v5054_v44, %v1780_v29  ;;  %v957_v40 = vmul.f32 %v7907_v28, %v885_v62  ;;  %v7909_v29 = vld [vmem:[#allocation2_spill] sm:$0xff]  ;;  %v7912_v62 = vld [vmem:[#allocation7_spill] sm:$0xff] }
 0x2db   : > { %v5196_v7 = vpop.permute.xlu1 %1794  ;;  %v1086_v8 = vmul.f32 %v4740_v5, %v1046_v14  ;;  %v2361_v38 = vmul.f32 %v7909_v29, %v2289_v20  ;;  %v2362_v42 = vmul.f32 %v7909_v29, %v2290_v57  ;;  %v980_v56 = vadd.f32 %v956_v53, %v4975_v35 }
 0x2dc   : > { %v2184_v34 = vadd.f32 %v2160_v17, %v1983_v48  ;;  %v2185_v51 = vadd.f32 %v2161_v4, %v1984_v21  ;;  %v1448_v47 = vsel %vm1440_vm4, %v7910_v52, %v4846_v27  ;;  %v1157_v59 = vmul.f32 %v7912_v62, %v1085_v31  ;;  %v7913_v31 = vld [vmem:[#allocation107_spill] sm:$0xff] }
 0x2dd   : > { %v2122_v16 = vpop.permute.xlu0 %2121  ;;  %v981_v35 = vadd.f32 %v957_v40, %v4979_v24  ;;  %v1286_v10 = vmul.f32 %v4748_v55, %v1259_v58  ;;  %v1287_v50 = vmul.f32 %v4751_v18, %v1247_v63  ;;  %v1158_v20 = vmul.f32 %v7912_v62, %v1086_v8  ;;  %v7914_v40 = vld [vmem:[#allocation37_spill] sm:$0xff] }
 0x2de   : > { %v2158_v15 = vmul.f32 %v2122_v16, %v5126_v41  ;;  %v2159_v44 = vmul.f32 %v2122_v16, %v2087_v6  ;;  %v1460_v41 = vsel %vm1440_vm4, %v4846_v27, %v7910_v52  ;;  %v5231_v17 = vadd.f32 %v2361_v38, %v2184_v34  ;;  %v7915_v58 = vld [vmem:[#allocation109_spill] sm:$0xff] }
 0x2df   : > { %v5215_v2 = vpop.permute.xlu1 %1818  ;;  %1822 = vrot.lane.b32.xlu0 %v7911_v30, %s3843_s20  ;;  %v5233_v4 = vadd.f32 %v2362_v42, %v2185_v51  ;;  %v1181_v57 = vadd.f32 %v1157_v59, %v980_v56  ;;  %v1487_v28 = vmul.f32 %v4774_v39, %v1460_v41  ;;  %v1488_v24 = vmul.f32 %v4777_v25, %v1448_v47  ;;  %v7916_v8 = vld [vmem:[#allocation9_spill] sm:$0xff]  ;;  %v7917_v42 = vld [vmem:[#allocation111_spill] sm:$0xff] }
 0x2e0   : > { %v2182_v6 = vadd.f32 %v2158_v15, %v1981_v32  ;;  %v2183_v19 = vadd.f32 %v2159_v44, %v1982_v60  ;;  %v1649_v48 = vsel %vm1641_vm5, %v7913_v31, %v4881_v61  ;;  %v1182_v32 = vadd.f32 %v1158_v20, %v981_v35  ;;  %v7918_v47 = vld [vmem:[#allocation131_spill] sm:$0xff]  ;;  %v7919_v59 = vld [vmem:[#allocation5_spill] sm:$0xff]  ;;  %v7921_v20 = vld [vmem:[#allocation10_spill] sm:$0xff] }
 0x2e1   : > { %v1358_v22 = vmul.f32 %v7914_v40, %v1286_v10  ;;  %v1359_v63 = vmul.f32 %v7914_v40, %v1287_v50  ;;  %v1850_v60 = vsel %vm1842_vm7, %v7915_v58, %v4907_v54  ;;  %v2429_v34 = vmul.f32 %v5231_v17, %v5231_v17  ;;  %v7920_v35 = vld [vmem:[#allocation113_spill] sm:$0xff] }
 0x2e2   : > { %v5236_v14 = vadd.f32 %v5074_v23, %v2182_v6  ;;  %v5239_v27 = vadd.f32 %v5077_v45, %v2183_v19  ;;  %v1661_v23 = vsel %vm1641_vm5, %v4881_v61, %v7913_v31  ;;  %v1862_v61 = vsel %vm1842_vm7, %v4907_v54, %v7915_v58 }
 0x2e3   : > { %v5244_v53 = vpop.permute.xlu1 %2101  ;;  %v2430_v51 = vmul.f32 %v5233_v4, %v5233_v4  ;;  %v1688_v15 = vmul.f32 %v4780_v33, %v1649_v48  ;;  %v1689_v44 = vmul.f32 %v4783_v26, %v1661_v23  ;;  %v1559_v29 = vmul.f32 %v7916_v8, %v1487_v28 }
 0x2e4   : > { %v2427_v45 = vmul.f32 %v5236_v14, %v5236_v14  ;;  %v2428_v21 = vmul.f32 %v5239_v27, %v5239_v27  ;;  %v1560_v38 = vmul.f32 %v7916_v8, %v1488_v24  ;;  %v2051_v54 = vsel %vm2043_vm6, %v7917_v42, %v4951_v49 }
 0x2e5   : > { %v2063_v56 = vsel %vm2043_vm6, %v4951_v49, %v7917_v42  ;;  %v1382_v52 = vadd.f32 %v1358_v22, %v1181_v57  ;;  %v1889_v41 = vmul.f32 %v7918_v47, %v1850_v60  ;;  %v1890_v6 = vmul.f32 %v4899_v46, %v1862_v61  ;;  %v7923_v60 = vld [vmem:[#allocation16_spill] sm:$0xff] }
 0x2e6   : > { %v2436_v16 = vadd.f32 %v2428_v21, %v2427_v45  ;;  %v1383_v62 = vadd.f32 %v1359_v63, %v1182_v32  ;;  %v2252_v10 = vsel %vm2244_vm8, %v7920_v35, %v7919_v59  ;;  %v2264_v50 = vsel %vm2244_vm8, %v7919_v59, %v7920_v35  ;;  %v7922_v45 = vld [vmem:[#allocation13_spill] sm:$0xff]  ;;  %v7926_v59 = vld [vmem:[#allocation19_spill] sm:$0xff] }
 0x2e7   : > { %v5286_v19 = vpop.permute.xlu1 %1195  ;;  %v2439_v49 = vadd.f32 %v2430_v51, %v2429_v34  ;;  %v1760_v57 = vmul.f32 %v7921_v20, %v1688_v15  ;;  %v1761_v28 = vmul.f32 %v7921_v20, %v1689_v44  ;;  %v2090_v24 = vmul.f32 %v4856_v36, %v2051_v54  ;;  %v7924_v44 = vld [vmem:[#allocation20_spill] sm:$0xff] }
 0x2e8   : > { %2437 = vadd.xlane.f32.xlu1 %v2436_v16  ;;  %v2091_v31 = vmul.f32 %v4859_v37, %v2063_v56  ;;  %v1583_v48 = vadd.f32 %v1559_v29, %v1382_v52  ;;  %v1584_v23 = vadd.f32 %v1560_v38, %v1383_v62  ;;  %v1961_v21 = vmul.f32 %v7922_v45, %v1889_v41 }
 0x2e9   : > { %v1962_v32 = vmul.f32 %v7922_v45, %v1890_v6  ;;  %v2291_v40 = vmul.f32 %v4960_v12, %v2252_v10  ;;  %v2292_v22 = vmul.f32 %v4965_v13, %v2264_v50  ;;  %v2162_v61 = vmul.f32 %v7923_v60, %v2090_v24  ;;  %v7927_v50 = vld [vmem:[#allocation21_spill] sm:$0xff] }
 0x2ea   : > { %v1784_v63 = vadd.f32 %v1760_v57, %v1583_v48  ;;  %v1785_v58 = vadd.f32 %v1761_v28, %v1584_v23  ;;  %v2163_v16 = vmul.f32 %v7923_v60, %v2091_v31  ;;  %v7928_v57 = vld [vmem:[#allocation17_spill] sm:$0xff]  ;;  %v7929_v28 = vmov 8  }
 0x2eb   : > { %v5306_v34 = vpop.permute.xlu1 %1197  ;;  %v2363_v8 = vmul.f32 %v7924_v44, %v2291_v40  ;;  %v2364_v29 = vmul.f32 %v7924_v44, %v2292_v22  ;;  %v7930_v31 = vld [vmem:[#allocation121_spill] sm:$0xff]  ;;  %v7931_v23 = vmov 4   ;;  %v7932_v40 = vld [vmem:[#allocation54_spill] sm:$0xff] }
 0x2ec   : > { %2440 = vadd.xlane.f32.xlu1 %v2439_v49  ;;  %v1985_v51 = vadd.f32 %v1961_v21, %v1784_v63  ;;  %v1986_v15 = vadd.f32 %v1962_v32, %v1785_v58  ;;  %v5331_v49 = vld [vmem:[%s7419_s4 + $0x18] sm:$0xff]  ;;  %v3804_v21 = vld [vmem:[%s7419_s4 + $0x8] sm:$0xff]  ;;  %v7933_v22 = vld [vmem:[#allocation42_spill] sm:$0xff] }
 0x2ed   : > { %v838_v63 = vsel %vm837_vm1, %v7933_v22, %v7932_v40  ;;  %v850_v58 = vsel %vm837_vm1, %v7932_v40, %v7933_v22 }
 0x2ee   : > { %v2186_v38 = vadd.f32 %v2162_v61, %v1985_v51  ;;  %v2187_v42 = vadd.f32 %v2163_v16, %v1986_v15  ;;  %v870_v60 = vmul.f32 %v4768_v43, %v850_v58  ;;  %v871_v61 = vmul.f32 %v4771_v9, %v838_v63  ;;  %v7935_v51 = vld [vmem:[#allocation43_spill] sm:$0xff]  ;;  %v7936_v15 = vld [vmem:[#allocation44_spill] sm:$0xff]  ;;  %v7942_v58 = vld [vmem:[#allocation46_spill] sm:$0xff] }
 0x2ef   : > { %v5310_v54 = vpop.permute.xlu1 %1221  ;;  %v1039_v44 = vsel %vm1038_vm2, %v7936_v15, %v7935_v51  ;;  %v7941_v63 = vld [vmem:[#allocation56_spill] sm:$0xff] }
 0x2f0   : > { %v5312_v56 = vadd.f32 %v2363_v8, %v2186_v38  ;;  %v5314_v52 = vadd.f32 %v2364_v29, %v2187_v42  ;;  %v1051_v8 = vsel %vm1038_vm2, %v7935_v51, %v7936_v15  ;;  %v7937_v29 = vld [vmem:[#allocation25_spill] sm:$0xff]  ;;  %v1072_v22 = vmul.f32 %v4740_v5, %v1039_v44 }
 0x2f1   : > { %v942_v38 = vmul.f32 %v7937_v29, %v870_v60  ;;  %v943_v42 = vmul.f32 %v7937_v29, %v871_v61  ;;  %v1071_v40 = vmul.f32 %v4734_v1, %v1051_v8  ;;  %v1240_v51 = vsel %vm1239_vm3, %v7942_v58, %v7941_v63  ;;  %v7943_v29 = vld [vmem:[#allocation58_spill] sm:$0xff] }
 0x2f2   : > { %v2431_v41 = vmul.f32 %v5312_v56, %v5312_v56  ;;  %v2432_v6 = vmul.f32 %v5314_v52, %v5314_v52  ;;  %v1252_v60 = vsel %vm1239_vm3, %v7941_v63, %v7942_v58  ;;  %v1273_v58 = vmul.f32 %v4751_v18, %v1240_v51 }
 0x2f3   : > { %v5320_v62 = vpop.permute.xlu1 %1510  ;;  %v1272_v63 = vmul.f32 %v4748_v55, %v1252_v60 }
 0x2f4   : > { %7925 = vst [vmem:[#allocation70_spill] sm:$0xff] %v5320_v62  ;;  %v2442_v35 = vadd.f32 %v2432_v6, %v2431_v41  ;;  %v7938_v41 = vld [vmem:[#allocation11_spill] sm:$0xff]  ;;  %v7939_v6 = vld [vmem:[#allocation4_spill] sm:$0xff] }
 0x2f7   : > { %v5324_v10 = vpop.permute.xlu1 %1995 }
 0x2fb   : > { %v5334_v20 = vpop.permute.xlu1 %2019 }
 0x2fd   : > { %1800 = vrot.lane.b32.xlu1 %v7926_v59, %s3843_s20 }
 0x2fe   : > { %2443 = vadd.xlane.f32.xlu0 %v2442_v35  ;;  %v763_v35 = vmul.f32 %v7939_v6, %v7938_v41  ;;  %v7944_v41 = vld [vmem:[#allocation49_spill] sm:$0xff] }
 0x2ff   : > { %v5339_v24 = vpop.permute.xlu1 %2302  ;;  %v1441_v44 = vsel %vm1440_vm4, %v7944_v41, %v7943_v29  ;;  %v1453_v8 = vsel %vm1440_vm4, %v7943_v29, %v7944_v41 }
 0x300   : > { %v966_v61 = vadd.f32 %v942_v38, %v763_v35  ;;  %v1473_v35 = vmul.f32 %v4774_v39, %v1453_v8 }
 0x301   : > { %1824 = vrot.lane.b32.xlu1 %v7927_v50, %s3843_s20 }
 0x303   : > { %v5344_v48 = vpop.permute.xlu1 %1396 }
 0x305   : > { %2113 = vperm.xlu1 %3678, %v5331_v49  }
 0x307   : > { %v5350_v45 = vpop.permute.xlu1 %1398 }
 0x309   : > { %1999 = vrot.lane.b32.xlu1 %v7928_v57, %s3842_s19 }
 0x30a   : > { %3679 = vset.pattern.permute.xlu1 %v7929_v28 }
 0x30b   : > { %v5362_v32 = vpop.permute.xlu1 %1422 }
 0x30d   : > { %2023 = vrot.lane.b32.xlu1 %v7911_v30, %s3842_s19 }
 0x30f   : > { %v5376_v16 = vpop.permute.xlu1 %1711 }
 0x310   : > { %7934 = vst [vmem:[#allocation88_spill] sm:$0xff] %v5376_v16 }
 0x311   : > { %2310 = vperm.xlu1 %3679, %v7930_v31  }
 0x314   : > { %2109 = vperm.xlu0 %3676, %v7930_v31   ;;  %v7940_v31 = vld [vmem:[#allocation12_spill] sm:$0xff] }
 0x315   : > { %2200 = vrot.lane.b32.xlu1 %v7928_v57, %s3844_s21 }
 0x316   : > { %3680 = vset.pattern.permute.xlu1 %v7931_v23  ;;  %v7947_v23 = vld [vmem:[#allocation60_spill] sm:$0xff] }
 0x318   : > { %3677 = vset.pattern.permute.xlu0 %v7929_v28  ;;  %v7946_v28 = vld [vmem:[#allocation29_spill] sm:$0xff] }
 0x319   : > { %2202 = vrot.lane.b32.xlu1 %v7926_v59, %s3844_s21  ;;  %2306 = vperm.xlu0 %3677, %v3804_v21   ;;  %v764_v21 = vmul.f32 %v7939_v6, %v7940_v31  ;;  %v2197_v6 = vpop.permute.xlu1 %2196  ;;  %v7945_v31 = vmov 0   ;;  %v1143_v38 = vmul.f32 %v7946_v28, %v1071_v40 }
 0x31b   : > { %v967_v15 = vadd.f32 %v943_v42, %v764_v21  ;;  %v1144_v42 = vmul.f32 %v7946_v28, %v1072_v22  ;;  %v1474_v21 = vmul.f32 %v4777_v25, %v1441_v44  ;;  %v1167_v41 = vadd.f32 %v1143_v38, %v966_v61  ;;  %v7950_v61 = vld [vmem:[#allocation32_spill] sm:$0xff] }
 0x31c   : > { %v1843_v22 = vsel %vm1842_vm7, %v5196_v7, %v5215_v2  ;;  %v1855_v44 = vsel %vm1842_vm7, %v5215_v2, %v5196_v7 }
 0x31d   : > { %2226 = vrot.lane.b32.xlu1 %v7927_v50, %s3844_s21  ;;  %2001 = vrot.lane.b32.xlu0 %v7926_v59, %s3842_s19  ;;  %v1168_v51 = vadd.f32 %v1144_v42, %v967_v15  ;;  %v7949_v59 = vld [vmem:[#allocation41_spill] sm:$0xff]  ;;  %v1545_v15 = vmul.f32 %v7950_v61, %v1473_v35  ;;  %v1875_v7 = vmul.f32 %v7918_v47, %v1843_v22 }
 0x31e   : > { %v1344_v40 = vmul.f32 %v7949_v59, %v1272_v63  ;;  %v1345_v28 = vmul.f32 %v7949_v59, %v1273_v58  ;;  %v1546_v63 = vmul.f32 %v7950_v61, %v1474_v21  ;;  %v2044_v59 = vsel %vm2043_vm6, %v5324_v10, %v5334_v20 }
 0x31f   : > { %v2056_v58 = vsel %vm2043_vm6, %v5334_v20, %v5324_v10  ;;  %v1876_v2 = vmul.f32 %v4899_v46, %v1855_v44  ;;  %v2076_v16 = vmul.f32 %v4856_v36, %v2044_v59 }
 0x320   : > { %v1368_v38 = vadd.f32 %v1344_v40, %v1167_v41  ;;  %v1369_v42 = vadd.f32 %v1345_v28, %v1168_v51  ;;  %v2077_v10 = vmul.f32 %v4859_v37, %v2056_v58 }
 0x321   : > { %2025 = vrot.lane.b32.xlu0 %v7927_v50, %s3842_s19  ;;  %v7948_v50 = vld [vmem:[#allocation52_spill] sm:$0xff] }
 0x322   : > { %v1642_v29 = vsel %vm1641_vm5, %v7948_v50, %v7947_v23  ;;  %v1654_v60 = vsel %vm1641_vm5, %v7947_v23, %v7948_v50  ;;  %v2221_v23 = vpop.permute.xlu1 %2220  ;;  %v1569_v20 = vadd.f32 %v1545_v15, %v1368_v38  ;;  %v1570_v22 = vadd.f32 %v1546_v63, %v1369_v42 }
 0x323   : > { %v1674_v8 = vmul.f32 %v4780_v33, %v1642_v29  ;;  %v1675_v50 = vmul.f32 %v4783_v26, %v1654_v60  ;;  %v2245_v35 = vsel %vm2244_vm8, %v2197_v6, %v2221_v23  ;;  %v2257_v21 = vsel %vm2244_vm8, %v2221_v23, %v2197_v6  ;;  %v7951_v29 = vld [vmem:[#allocation36_spill] sm:$0xff] }
 0x324   : > { %v2277_v51 = vmul.f32 %v4960_v12, %v2245_v35  ;;  %v2278_v40 = vmul.f32 %v4965_v13, %v2257_v21 }
 0x325   : > { %2314 = vperm.xlu0 %3677, %v5331_v49   ;;  %v1746_v60 = vmul.f32 %v7951_v29, %v1674_v8  ;;  %v1747_v61 = vmul.f32 %v7951_v29, %v1675_v50  ;;  %v2148_v8 = vmul.f32 %v5244_v53, %v2076_v16  ;;  %v2149_v50 = vmul.f32 %v5244_v53, %v2077_v10  ;;  %v5484_v29 = vpop.permute.xlu0 %2105 }
 0x326   : > { %v2349_v58 = vmul.f32 %v5339_v24, %v2277_v51  ;;  %v2350_v15 = vmul.f32 %v5339_v24, %v2278_v40  ;;  %v5476_v53 = vpop.permute.xlu1 %1597 }
 0x327   : > { %v1770_v28 = vadd.f32 %v1746_v60, %v1569_v20  ;;  %v1771_v6 = vadd.f32 %v1747_v61, %v1570_v22  ;;  %7953 = vst [vmem:[#allocation99_spill] sm:$0xff] %v5476_v53  ;;  %v7956_v60 = vld [vmem:[#allocation63_spill] sm:$0xff]  ;;  %v7957_v61 = vld [vmem:[#allocation61_spill] sm:$0xff]  ;;  %v7971_v53 = vld [vmem:[#allocation50_spill] sm:$0xff] }
 0x328   : > { %v839_v10 = vsel %vm837_vm1, %v7957_v61, %v7956_v60  ;;  %v851_v20 = vsel %vm837_vm1, %v7956_v60, %v7957_v61  ;;  %v7963_v60 = vld [vmem:[#allocation47_spill] sm:$0xff] }
 0x329   : > { %2224 = vrot.lane.b32.xlu0 %v7911_v30, %s3844_s21  ;;  %v7952_v30 = vld [vmem:[#allocation40_spill] sm:$0xff]  ;;  %v7964_v61 = vld [vmem:[#allocation55_spill] sm:$0xff] }
 0x32a   : > { %3682 = vset.pattern.permute.xlu0 %v7945_v31  ;;  %v1947_v44 = vmul.f32 %v7952_v30, %v1875_v7  ;;  %v1948_v41 = vmul.f32 %v7952_v30, %v1876_v2  ;;  %v5478_v35 = vpop.permute.xlu1 %1621 }
 0x32c   : > { %v1971_v23 = vadd.f32 %v1947_v44, %v1770_v28  ;;  %v1972_v59 = vadd.f32 %v1948_v41, %v1771_v6  ;;  %v7958_v44 = vld [vmem:[#allocation64_spill] sm:$0xff]  ;;  %v7959_v41 = vld [vmem:[#allocation62_spill] sm:$0xff]  ;;  %v872_v6 = vmul.f32 %v4768_v43, %v851_v20 }
 0x32d   : > { %v1040_v51 = vsel %vm1038_vm2, %v7959_v41, %v7958_v44  ;;  %v1052_v40 = vsel %vm1038_vm2, %v7958_v44, %v7959_v41  ;;  %v7965_v20 = vld [vmem:[#allocation14_spill] sm:$0xff]  ;;  %v7966_v44 = vld [vmem:[#allocation24_spill] sm:$0xff] }
 0x32e   : > { %v2172_v63 = vadd.f32 %v2148_v8, %v1971_v23  ;;  %v2173_v7 = vadd.f32 %v2149_v50, %v1972_v59  ;;  %v5480_v21 = vpop.permute.xlu1 %1908  ;;  %v873_v8 = vmul.f32 %v4771_v9, %v839_v10  ;;  %v1073_v50 = vmul.f32 %v4734_v1, %v1052_v40 }
 0x32f   : > { %7954 = vst [vmem:[#allocation22_spill] sm:$0xff] %v5480_v21  ;;  %v1074_v23 = vmul.f32 %v4740_v5, %v1040_v51  ;;  %v1454_v10 = vsel %vm1440_vm4, %v7964_v61, %v7963_v60  ;;  %v765_v41 = vmul.f32 %v7966_v44, %v7965_v20  ;;  %v7967_v51 = vld [vmem:[#allocation15_spill] sm:$0xff] }
 0x330   : > { %v5468_v38 = vadd.f32 %v2349_v58, %v2172_v63  ;;  %v5470_v30 = vadd.f32 %v2350_v15, %v2173_v7  ;;  %v7960_v58 = vld [vmem:[#allocation53_spill] sm:$0xff]  ;;  %v766_v40 = vmul.f32 %v7966_v44, %v7967_v51  ;;  %v1475_v44 = vmul.f32 %v4774_v39, %v1454_v10 }
 0x331   : > { %v7961_v15 = vld [vmem:[#allocation45_spill] sm:$0xff] }
 0x332   : > { %v2397_v2 = vmul.f32 %v5468_v38, %v5468_v38  ;;  %v2398_v16 = vmul.f32 %v5470_v30, %v5470_v30  ;;  %v5482_v24 = vpop.permute.xlu1 %1798  ;;  %v1241_v63 = vsel %vm1239_vm3, %v7961_v15, %v7960_v58  ;;  %v1253_v7 = vsel %vm1239_vm3, %v7960_v58, %v7961_v15 }
 0x333   : > { %7955 = vst [vmem:[#allocation74_spill] sm:$0xff] %v5482_v24  ;;  %v1274_v62 = vmul.f32 %v4748_v55, %v1253_v7  ;;  %v1275_v20 = vmul.f32 %v4751_v18, %v1241_v63  ;;  %v7972_v7 = vld [vmem:[#allocation31_spill] sm:$0xff] }
 0x334   : > { %v2405_v42 = vadd.f32 %v2398_v16, %v2397_v2  ;;  %v7962_v2 = vld [vmem:[#allocation27_spill] sm:$0xff] }
 0x335   : > { %v944_v16 = vmul.f32 %v7962_v2, %v872_v6  ;;  %v1442_v6 = vsel %vm1440_vm4, %v7963_v60, %v7964_v61  ;;  %v7973_v61 = vld [vmem:[#allocation100_spill] sm:$0xff] }
 0x336   : > { %v1547_v10 = vmul.f32 %v7973_v61, %v1475_v44 }
 0x337   : > { %v968_v51 = vadd.f32 %v944_v16, %v765_v41  ;;  %v1346_v16 = vmul.f32 %v7972_v7, %v1274_v62 }
 0x348   : > { %2406 = vadd.xlane.f32.xlu0 %v2405_v42  ;;  %v945_v42 = vmul.f32 %v7962_v2, %v873_v8  ;;  %v7969_v8 = vld [vmem:[#allocation33_spill] sm:$0xff] }
 0x349   : > { %v1145_v58 = vmul.f32 %v7969_v8, %v1073_v50  ;;  %v1146_v15 = vmul.f32 %v7969_v8, %v1074_v23 }
 0x34a   : > { %v969_v24 = vadd.f32 %v945_v42, %v766_v40  ;;  %v1347_v42 = vmul.f32 %v7972_v7, %v1275_v20  ;;  %v7974_v40 = vld [vmem:[#allocation104_spill] sm:$0xff] }
 0x352   : > { %v2435_v28 = vpop.xlane.xlu0 %2434 }
 0x353   : > { %v2445_v11 = vmax.f32 %v2435_v28, 1e-24  ;;  %v1170_v28 = vadd.f32 %v1146_v15, %v969_v24 }
 0x355   : > { %v1371_v8 = vadd.f32 %v1347_v42, %v1170_v28 }
 0x356   : > { %v5524_v21 = vpop.permute.xlu0 %1822 }
 0x357   : > { %7968 = vst [vmem:[#allocation77_spill] sm:$0xff] %v5524_v21  ;;  %v7970_v21 = vld [vmem:[#allocation57_spill] sm:$0xff] }
 0x358   : > { %v1643_v60 = vsel %vm1641_vm5, %v7971_v53, %v7970_v21  ;;  %v1655_v50 = vsel %vm1641_vm5, %v7970_v21, %v7971_v53 }
 0x359   : > { %v1676_v62 = vmul.f32 %v4780_v33, %v1643_v60  ;;  %v1677_v21 = vmul.f32 %v4783_v26, %v1655_v50 }
 0x371   : > { %v2438_v22 = vpop.xlane.xlu1 %2437 }
 0x372   : > { %v2446_v57 = vmax.f32 %v2438_v22, 1e-24  ;;  %v1476_v22 = vmul.f32 %v4777_v25, %v1442_v6  ;;  %v7975_v6 = vld [vmem:[#allocation102_spill] sm:$0xff] }
 0x373   : > { %v1844_v53 = vsel %vm1842_vm7, %v7975_v6, %v7974_v40 }
 0x374   : > { %3738 = vrsqrt.f32 %v2446_v57  ;;  %v1548_v41 = vmul.f32 %v7973_v61, %v1476_v22  ;;  %v1856_v57 = vsel %vm1842_vm7, %v7974_v40, %v7975_v6  ;;  %v1877_v20 = vmul.f32 %v7918_v47, %v1844_v53  ;;  %v7980_v61 = vld [vmem:[#allocation3_spill] sm:$0xff] }
 0x375   : > { %v2441_v59 = vpop.xlane.xlu1 %2440  ;;  %v1878_v44 = vmul.f32 %v4899_v46, %v1856_v57  ;;  %v7981_v40 = vld [vmem:[#allocation51_spill] sm:$0xff] }
 0x376   : > { %v2447_v2 = vmax.f32 %v2441_v59, 1e-24  ;;  %v1169_v59 = vadd.f32 %v1145_v58, %v968_v51  ;;  %v7977_v58 = vld [vmem:[#allocation118_spill] sm:$0xff]  ;;  %v2246_v6 = vsel %vm2244_vm8, %v7981_v40, %v7980_v61 }
 0x377   : > { %v7978_v51 = vld [vmem:[#allocation114_spill] sm:$0xff] }
 0x378   : > { %3740 = vrsqrt.f32 %v2447_v2  ;;  %v1370_v24 = vadd.f32 %v1346_v16, %v1169_v59  ;;  %v1748_v22 = vmul.f32 %v7978_v51, %v1676_v62  ;;  %v1749_v60 = vmul.f32 %v7978_v51, %v1677_v21 }
 0x379   : > { %3742 = vrsqrt.f32 %v2445_v11  ;;  %v7976_v11 = vld [vmem:[#allocation128_spill] sm:$0xff] }
 0x37a   : > { %v2045_v15 = vsel %vm2043_vm6, %v7977_v58, %v7976_v11  ;;  %v2057_v2 = vsel %vm2043_vm6, %v7976_v11, %v7977_v58  ;;  %v1571_v50 = vadd.f32 %v1547_v10, %v1370_v24  ;;  %v2258_v10 = vsel %vm2244_vm8, %v7980_v61, %v7981_v40 }
 0x37b   : > { %v2078_v59 = vmul.f32 %v4856_v36, %v2045_v15  ;;  %v2079_v28 = vmul.f32 %v4859_v37, %v2057_v2  ;;  %v2280_v11 = vmul.f32 %v4965_v13, %v2258_v10 }
 0x37d   : > { %v2150_v57 = vmul.f32 %v5484_v29, %v2078_v59  ;;  %v2151_v62 = vmul.f32 %v5484_v29, %v2079_v28 }
 0x381   : > { %v3739_v58 = vpop.eup %3738 }
 0x385   : > { %v3741_v2 = vpop.eup %3740 }
 0x386   : > { %v3743_v61 = vpop.eup %3742  ;;  %v2470_v29 = vmul.f32 %v3741_v2, %v5233_v4  ;;  %v2467_v4 = vmul.f32 %v3739_v58, %v5236_v14  ;;  %v5609_v14 = vld [vmem:[%s7419_s4 + $0x50] sm:$0xff] }
 0x387   : > { %v2444_v23 = vpop.xlane.xlu0 %2443 }
 0x388   : > { %v2448_v63 = vmax.f32 %v2444_v23, 1e-24  ;;  %v1572_v23 = vadd.f32 %v1548_v41, %v1371_v8  ;;  %v1772_v41 = vadd.f32 %v1748_v22, %v1571_v50  ;;  %v2279_v8 = vmul.f32 %v4960_v12, %v2246_v6  ;;  %v7982_v6 = vld [vmem:[#allocation72_spill] sm:$0xff] }
 0x389   : > { %v2469_v12 = vmul.f32 %v3741_v2, %v5231_v17  ;;  %v2466_v10 = vmul.f32 %v3743_v61, %v7982_v6  ;;  %v7983_v17 = vld [vmem:[#allocation39_spill] sm:$0xff] }
 0x38a   : > { %3744 = vrsqrt.f32 %v2448_v63  ;;  %v7979_v63 = vld [vmem:[#allocation48_spill] sm:$0xff]  ;;  %v1773_v53 = vadd.f32 %v1749_v60, %v1572_v23  ;;  %v2468_v23 = vmul.f32 %v3739_v58, %v5239_v27 }
 0x38b   : > { %v1949_v7 = vmul.f32 %v7979_v63, %v1877_v20  ;;  %v1950_v16 = vmul.f32 %v7979_v63, %v1878_v44 }
 0x38d   : > { %v1973_v21 = vadd.f32 %v1949_v7, %v1772_v41  ;;  %v1974_v24 = vadd.f32 %v1950_v16, %v1773_v53  ;;  %v2474_v53 = vpack.c.bf16 %v2468_v23, %v2466_v10  ;;  %v7993_v10 = vld [vmem:[#allocation68_spill] sm:$0xff] }
 0x38f   : > { %v5574_v42 = vpop.permute.xlu0 %2109  ;;  %v2174_v20 = vadd.f32 %v2150_v57, %v1973_v21  ;;  %v2175_v63 = vadd.f32 %v2151_v62, %v1974_v24  ;;  %v5598_v57 = vpop.f32.mrf.mxu0  ;;  %v3805_v62 = vld [vmem:[%s7419_s4 + $0x10] sm:$0xff] }
 0x390   : > { %7984 = vst [vmem:[#allocation6_spill] sm:$0xff] %v5598_v57 }
 0x391   : > { %v5603_v21 = vpop.f32.mrf.mxu0 }
 0x392   : > { %7985 = vst [vmem:[#allocation76_spill] sm:$0xff] %v5603_v21  ;;  %v8008_v21 = vld [vmem:[#allocation74_spill] sm:$0xff] }
 0x393   : > { %v5611_v24 = vpop.f32.mrf.mxu0 }
 0x394   : > { %v2307_v15 = vpop.permute.xlu0 %2306  ;;  %7986 = vst [vmem:[#allocation90_spill] sm:$0xff] %v5611_v24 }
 0x395   : > { %v2351_v44 = vmul.f32 %v2307_v15, %v2279_v8  ;;  %v2352_v51 = vmul.f32 %v2307_v15, %v2280_v11 }
 0x397   : > { %v3745_v22 = vpop.eup %3744  ;;  %v2375_v60 = vadd.f32 %v2351_v44, %v2174_v20  ;;  %v2376_v50 = vadd.f32 %v2352_v51, %v2175_v63 }
 0x398   : > { %v2472_v59 = vmul.f32 %v3745_v22, %v5314_v52  ;;  %v2471_v13 = vmul.f32 %v3745_v22, %v5312_v56  ;;  %v2465_v52 = vmul.f32 %v3743_v61, %v7983_v17  ;;  %v5616_v8 = vpop.permute.xlu0 %2001  ;;  %v2453_v61 = vld [vmem:[%s7420_s5] sm:$0xff]  ;;  %v7996_v17 = vld [vmem:[#allocation69_spill] sm:$0xff] }
 0x399   : > { %v2400_v28 = vmul.f32 %v2376_v50, %v2376_v50  ;;  %v2462_v7 = vpack.c.bf16 %v2376_v50, %v5470_v30  ;;  %v2399_v41 = vmul.f32 %v2375_v60, %v2375_v60  ;;  %v2461_v30 = vpack.c.bf16 %v2375_v60, %v5468_v38  ;;  %v5614_v38 = vpop.f32.mrf.mxu0  ;;  %v5647_v50 = vpop.permute.xlu1 %1800 }
 0x39a   : > { %v2476_v16 = vpack.c.bf16 %v2472_v59, %v2470_v29  ;;  %v2475_v40 = vpack.c.bf16 %v2471_v13, %v2469_v12  ;;  %v2473_v56 = vpack.c.bf16 %v2467_v4, %v2465_v52  ;;  %7987 = vst [vmem:[#allocation23_spill] sm:$0xff] %v5614_v38  ;;  %v7995_v4 = vld [vmem:[#allocation91_spill] sm:$0xff] }
 0x39b   : > { %2509 = vmatprep.mubr.bf16.mxu1 %v2462_v7  ;;  %v2408_v27 = vadd.f32 %v2400_v28, %v2399_v41  ;;  %v5625_v11 = vpop.f32.mrf.mxu0  ;;  %v7991_v7 = vld [vmem:[#allocation59_spill] sm:$0xff]  ;;  %v7994_v41 = vld [vmem:[#allocation66_spill] sm:$0xff]  ;;  %v1041_v52 = vsel %vm1038_vm2, %v7996_v17, %v7995_v4 }
 0x39c   : > { %2489 = vmatprep.subr.bf16.mxu1 %v2476_v16  ;;  %7989 = vst [vmem:[#allocation83_spill] sm:$0xff] %v5625_v11  ;;  %v5627_v58 = vpop.permute.xlu0 %2025  ;;  %v7992_v16 = vld [vmem:[#allocation65_spill] sm:$0xff] }
 0x39d   : > { %2490 = vmatpush1.bf16.xpose.msra.mxu1 %v2475_v40  ;;  %2409 = vadd.xlane.f32.xlu1 %v2408_v27  ;;  %v5630_v15 = vpop.f32.mrf.mxu0  ;;  %v5649_v23 = vpop.permute.xlu1 %1824  ;;  %v840_v40 = vsel %vm837_vm1, %v7992_v16, %v7991_v7  ;;  %v852_v6 = vsel %vm837_vm1, %v7991_v7, %v7992_v16  ;;  %v853_v27 = vsel %vm837_vm1, %v7993_v10, %v7994_v41  ;;  %v7997_v7 = vld [vmem:[#allocation75_spill] sm:$0xff] }
 0x39e   : > { %2491 = vmatprep.subr.bf16.mxu1 %v2474_v53  ;;  %v841_v53 = vsel %vm837_vm1, %v7994_v41, %v7993_v10  ;;  %v1042_v16 = vsel %vm1038_vm2, %v7997_v7, %v5151_v3 }
 0x39f   : > { %v5634_v2 = vpop.f32.mrf.mxu0 }
 0x3a0   : > { %7990 = vst [vmem:[#allocation80_spill] sm:$0xff] %v5634_v2  ;;  %v5636_v20 = vpop.permute.xlu0 %2314 }
 0x3a1   : > { %v5651_v29 = vpop.permute.xlu1 %2113 }
 0x3a4   : > { %v5640_v44 = vpop.permute.xlu0 %2224 }
 0x3a5   : > { %2492 = vmatpush1.bf16.xpose.msra.mxu1 %v2473_v56  ;;  %v5653_v59 = vpop.permute.xlu1 %1999  ;;  %v1053_v56 = vsel %vm1038_vm2, %v7995_v4, %v7996_v17  ;;  %v8000_v17 = vld [vmem:[#allocation35_spill] sm:$0xff] }
 0x3a9   : > { %v5655_v12 = vpop.permute.xlu1 %2023 }
 0x3ac   : > { %2510 = vmatmul.mubr.bf16.vlgmr.msra.gmra.mxu1 %v2461_v30  ;;  %v874_v30 = vmul.f32 %v4768_v43, %v852_v6  ;;  %v7998_v6 = vld [vmem:[#allocation28_spill] sm:$0xff] }
 0x3ad   : > { %v5657_v13 = vpop.permute.xlu1 %2310 }
 0x3ae   : > { %715 = vperm.xlu1 %3680, %v3805_v62   ;;  %v875_v62 = vmul.f32 %v4771_v9, %v840_v40  ;;  %v1054_v40 = vsel %vm1038_vm2, %v5151_v3, %v7997_v7  ;;  %v946_v10 = vmul.f32 %v7998_v6, %v874_v30  ;;  %v8003_v7 = vld [vmem:[#allocation87_spill] sm:$0xff] }
 0x3af   : > { %v1077_v30 = vmul.f32 %v4734_v1, %v1054_v40 }
 0x3b0   : > { %v947_v41 = vmul.f32 %v7998_v6, %v875_v62  ;;  %v1078_v62 = vmul.f32 %v4740_v5, %v1042_v16  ;;  %v8004_v16 = vld [vmem:[#allocation129_spill] sm:$0xff] }
 0x3b1   : > { %v5659_v28 = vpop.permute.xlu1 %2200  ;;  %v1443_v40 = vsel %vm1440_vm4, %v5344_v48, %v8004_v16 }
 0x3b2   : > { %720 = vperm.xlu1 %3680, %v5331_v49   ;;  %v5623_v49 = vld [vmem:[%s7419_s4 + $0x58] sm:$0xff] }
 0x3b3   : > { %7988 = vst [vmem:[#allocation30_spill] sm:$0xff] %v5623_v49 }
 0x3b6   : > { %755 = vperm.xlu1 %3680, %v5609_v14  }
 0x3ba   : > { %3681 = vset.pattern.permute.xlu1 %v7945_v31 }
 0x3bb   : > { %935 = vperm.xlu1 %3681, %v5609_v14  }
 0x3bf   : > { %939 = vperm.xlu1 %3681, %v5623_v49  }
 0x3c3   : > { %807 = vrot.lane.b32.xlu1 %v5625_v11, %s3837_s30  ;;  %v8011_v11 = vld [vmem:[#allocation108_spill] sm:$0xff] }
 0x3c7   : > { %809 = vrot.lane.b32.xlu1 %v5634_v2, %s3837_s30 }
 0x3cb   : > { %831 = vrot.lane.b32.xlu1 %v5630_v15, %s3837_s30 }
 0x3d1   : > { %v2407_v51 = vpop.xlane.xlu0 %2406 }
 0x3d2   : > { %v2417_v63 = vmax.f32 %v2407_v51, 1e-24  ;;  %v876_v51 = vmul.f32 %v4768_v43, %v853_v27 }
 0x3d4   : > { %3746 = vrsqrt.f32 %v2417_v63  ;;  %v877_v63 = vmul.f32 %v4771_v9, %v841_v53  ;;  %v7999_v53 = vld [vmem:[#allocation34_spill] sm:$0xff] }
 0x3d5   : > { %v5704_v27 = vmul.f32 %v7999_v53, %v876_v51  ;;  %v8001_v9 = vld [vmem:[#allocation106_spill] sm:$0xff]  ;;  %v1243_v51 = vsel %vm1239_vm3, %v5306_v34, %v5310_v54 }
 0x3d6   : > { %v5707_v4 = vmul.f32 %v7999_v53, %v877_v63  ;;  %v1242_v43 = vsel %vm1239_vm3, %v5286_v19, %v8001_v9  ;;  %v1254_v3 = vsel %vm1239_vm3, %v8001_v9, %v5286_v19  ;;  %v1255_v63 = vsel %vm1239_vm3, %v5310_v54, %v5306_v34 }
 0x3d7   : > { %v1455_v34 = vsel %vm1440_vm4, %v8004_v16, %v5344_v48  ;;  %v1276_v54 = vmul.f32 %v4748_v55, %v1254_v3  ;;  %v1277_v6 = vmul.f32 %v4751_v18, %v1242_v43  ;;  %v1444_v53 = vsel %vm1440_vm4, %v5350_v45, %v5362_v32  ;;  %v8005_v48 = vld [vmem:[#allocation99_spill] sm:$0xff]  ;;  %v8006_v16 = vld [vmem:[#allocation38_spill] sm:$0xff] }
 0x3d8   : > { %v1644_v3 = vsel %vm1641_vm5, %v8005_v48, %v5478_v35  ;;  %v1656_v43 = vsel %vm1641_vm5, %v5478_v35, %v8005_v48 }
 0x3e1   : > { %v3747_v22 = vpop.eup %3746 }
 0x3e2   : > { %v2457_v60 = vmul.f32 %v3747_v22, %v2453_v61  ;;  %v5689_v61 = vpop.permute.xlu1 %2202  ;;  %v1075_v22 = vmul.f32 %v4734_v1, %v1053_v56  ;;  %v1150_v1 = vmul.f32 %v8006_v16, %v1078_v62 }
 0x3e4   : > { %2528 = vperm.xlu1 %3681, %v2457_v60   ;;  %v1076_v60 = vmul.f32 %v4740_v5, %v1041_v52  ;;  %v1147_v52 = vmul.f32 %v8000_v17, %v1075_v22  ;;  %v1149_v5 = vmul.f32 %v8006_v16, %v1077_v30  ;;  %v8010_v16 = vld [vmem:[#allocation73_spill] sm:$0xff] }
 0x3e6   : > { %v1148_v56 = vmul.f32 %v8000_v17, %v1076_v60  ;;  %v5729_v22 = vpop.permute.xlu1 %2226  ;;  %v8002_v60 = vld [vmem:[#allocation67_spill] sm:$0xff]  ;;  %v1456_v17 = vsel %vm1440_vm4, %v5362_v32, %v5350_v45  ;;  %v1477_v45 = vmul.f32 %v4774_v39, %v1455_v34  ;;  %v1478_v32 = vmul.f32 %v4777_v25, %v1443_v40 }
 0x3e7   : > { %v1645_v9 = vsel %vm1641_vm5, %v8003_v7, %v8002_v60  ;;  %v1657_v19 = vsel %vm1641_vm5, %v8002_v60, %v8003_v7  ;;  %v1278_v60 = vmul.f32 %v4748_v55, %v1255_v63  ;;  %v1279_v7 = vmul.f32 %v4751_v18, %v1243_v51  ;;  %v8007_v55 = vld [vmem:[#allocation77_spill] sm:$0xff] }
 0x3e8   : > { %v1479_v51 = vmul.f32 %v4774_v39, %v1456_v17  ;;  %v1480_v18 = vmul.f32 %v4777_v25, %v1444_v53  ;;  %v1845_v2 = vsel %vm1842_vm7, %v8008_v21, %v8007_v55  ;;  %v1857_v35 = vsel %vm1842_vm7, %v8007_v55, %v8008_v21  ;;  %v8009_v17 = vld [vmem:[#allocation93_spill] sm:$0xff] }
 0x3e9   : > { %v1680_v30 = vmul.f32 %v4780_v33, %v1645_v9  ;;  %v1681_v62 = vmul.f32 %v4783_v26, %v1657_v19  ;;  %v1678_v40 = vmul.f32 %v4780_v33, %v1644_v3  ;;  %v1679_v34 = vmul.f32 %v4783_v26, %v1656_v43  ;;  %v8012_v3 = vld [vmem:[#allocation70_spill] sm:$0xff] }
 0x3ea   : > { %v1348_v53 = vmul.f32 %v8009_v17, %v1276_v54  ;;  %v1349_v48 = vmul.f32 %v8009_v17, %v1277_v6  ;;  %v1350_v25 = vmul.f32 %v8010_v16, %v1278_v60  ;;  %v1351_v39 = vmul.f32 %v8010_v16, %v1279_v7  ;;  %v8013_v54 = vld [vmem:[#allocation17_spill] sm:$0xff]  ;;  %v8014_v6 = vld [vmem:[#allocation18_spill] sm:$0xff]  ;;  %v8015_v60 = vld [vmem:[#allocation88_spill] sm:$0xff] }
 0x3eb   : > { %v1549_v49 = vmul.f32 %v8011_v11, %v1477_v45  ;;  %v1550_v55 = vmul.f32 %v8011_v11, %v1478_v32  ;;  %v1879_v21 = vmul.f32 %v7918_v47, %v1845_v2  ;;  %v1880_v9 = vmul.f32 %v4899_v46, %v1857_v35  ;;  %v8016_v45 = vld [vmem:[#allocation130_spill] sm:$0xff] }
 0x3ec   : > { %v1551_v33 = vmul.f32 %v8012_v3, %v1479_v51  ;;  %v1552_v43 = vmul.f32 %v8012_v3, %v1480_v18  ;;  %v1752_v57 = vmul.f32 %v8015_v60, %v1680_v30  ;;  %v1753_v7 = vmul.f32 %v8015_v60, %v1681_v62  ;;  %v8017_v35 = vld [vmem:[#allocation22_spill] sm:$0xff] }
 0x3ed   : > { %v1750_v16 = vmul.f32 %v8016_v45, %v1678_v40  ;;  %v1751_v11 = vmul.f32 %v8016_v45, %v1679_v34  ;;  %v1846_v2 = vsel %vm1842_vm7, %v5647_v50, %v5649_v23  ;;  %v1858_v18 = vsel %vm1842_vm7, %v5649_v23, %v5647_v50  ;;  %v8018_v50 = vld [vmem:[#allocation19_spill] sm:$0xff]  ;;  %v8019_v23 = vld [vmem:[#allocation21_spill] sm:$0xff] }
 0x3ee   : > { %v1951_v30 = vmul.f32 %v8017_v35, %v1879_v21  ;;  %v1952_v62 = vmul.f32 %v8017_v35, %v1880_v9  ;;  %v2046_v40 = vsel %vm2043_vm6, %v5653_v59, %v5655_v12  ;;  %v2058_v34 = vsel %vm2043_vm6, %v5655_v12, %v5653_v59 }
 0x3ef   : > { %v1882_v21 = vmul.f32 %v4899_v46, %v1858_v18  ;;  %v2247_v9 = vsel %vm2244_vm8, %v5659_v28, %v5640_v44  ;;  %v2259_v59 = vsel %vm2244_vm8, %v5640_v44, %v5659_v28  ;;  %v2081_v60 = vmul.f32 %v4859_v37, %v2058_v34  ;;  %v5850_v18 = vld [vmem:[%s7422_s7 + $0x10] ss:$0 sm:$0xff] }
 0x3f0   : > { %v2047_v45 = vsel %vm2043_vm6, %v5616_v8, %v5627_v58  ;;  %v2059_v44 = vsel %vm2043_vm6, %v5627_v58, %v5616_v8  ;;  %8020 = vst [vmem:[#allocation85_spill] sm:$0xff] %v5850_v18 }
 0x3f1   : > { %v2082_v35 = vmul.f32 %v4856_v36, %v2047_v45 }
 0x426   : > { %v5771_v63 = vpop.xlane.xlu1 %2409 }
 0x42a   : > { %v716_v19 = vpop.permute.xlu1 %715 }
 0x42b   : > { %v767_v26 = vmul.f32 %v716_v19, %v8013_v54  ;;  %v768_v17 = vmul.f32 %v716_v19, %v8014_v6 }
 0x42d   : > { %v970_v32 = vadd.f32 %v946_v10, %v767_v26  ;;  %v971_v51 = vadd.f32 %v947_v41, %v768_v17  ;;  %v1881_v41 = vmul.f32 %v7918_v47, %v1846_v2  ;;  %v2080_v17 = vmul.f32 %v4856_v36, %v2046_v40 }
 0x42e   : > { %v721_v19 = vpop.permute.xlu1 %720  ;;  %v2153_v2 = vmul.f32 %v5574_v42, %v2081_v60  ;;  %v2083_v40 = vmul.f32 %v4859_v37, %v2059_v44 }
 0x42f   : > { %v1171_v3 = vadd.f32 %v1147_v52, %v970_v32  ;;  %v1172_v54 = vadd.f32 %v1148_v56, %v971_v51  ;;  %v769_v26 = vmul.f32 %v721_v19, %v8018_v50  ;;  %v770_v10 = vmul.f32 %v721_v19, %v8019_v23  ;;  %v5856_v51 = vld [vmem:[%s7422_s7 + $0x18] ss:$0 sm:$0xff] }
 0x430   : > { %v2281_v32 = vmul.f32 %v5850_v18, %v2247_v9  ;;  %8021 = vst [vmem:[#allocation82_spill] sm:$0xff] %v5856_v51  ;;  %v2282_v8 = vmul.f32 %v5856_v51, %v2259_v59 }
 0x431   : > { %v1372_v12 = vadd.f32 %v1348_v53, %v1171_v3  ;;  %v1373_v52 = vadd.f32 %v1349_v48, %v1172_v54  ;;  %v972_v56 = vadd.f32 %v5704_v27, %v769_v26  ;;  %v973_v6 = vadd.f32 %v5707_v4, %v770_v10 }
 0x432   : > { %v2152_v4 = vmul.f32 %v5574_v42, %v2080_v17  ;;  %v2248_v42 = vsel %vm2244_vm8, %v5689_v61, %v5729_v22  ;;  %v2353_v54 = vmul.f32 %v5657_v13, %v2281_v32  ;;  %v2354_v50 = vmul.f32 %v5657_v13, %v2282_v8 }
 0x433   : > { %v1573_v28 = vadd.f32 %v1549_v49, %v1372_v12  ;;  %v1574_v53 = vadd.f32 %v1550_v55, %v1373_v52  ;;  %v1173_v48 = vadd.f32 %v1149_v5, %v972_v56  ;;  %v1174_v27 = vadd.f32 %v1150_v1, %v973_v6 }
 0x434   : > { %v2260_v55 = vsel %vm2244_vm8, %v5729_v22, %v5689_v61  ;;  %v2283_v22 = vmul.f32 %v5850_v18, %v2248_v42  ;;  %v8026_v42 = vmov 5  }
 0x435   : > { %v1774_v5 = vadd.f32 %v1750_v16, %v1573_v28  ;;  %v1775_v1 = vadd.f32 %v1751_v11, %v1574_v53  ;;  %v1374_v49 = vadd.f32 %v1350_v25, %v1173_v48  ;;  %v1375_v58 = vadd.f32 %v1351_v39, %v1174_v27  ;;  %v8022_v25 = vld [vmem:[#allocation71_spill] sm:$0xff]  ;;  %v5879_v53 = vpop.f32.mrf.mxu0 }
 0x436   : > { %v1953_v39 = vmul.f32 %v8022_v25, %v1881_v41  ;;  %v1954_v3 = vmul.f32 %v8022_v25, %v1882_v21  ;;  %v2284_v9 = vmul.f32 %v5856_v51, %v2260_v55  ;;  %v2355_v59 = vmul.f32 %v5636_v20, %v2283_v22  ;;  %833 = vrot.lane.b32.xlu1 %v5879_v53, %s3837_s30  ;;  %v2454_v27 = vld [vmem:[%s7420_s5 + $0x8] sm:$0xff]  ;;  %v8027_v55 = vld [vmem:[#allocation6_spill] sm:$0xff] }
 0x437   : > { %v1575_v34 = vadd.f32 %v1551_v33, %v1374_v49  ;;  %v1576_v19 = vadd.f32 %v1552_v43, %v1375_v58  ;;  %v1975_v16 = vadd.f32 %v1951_v30, %v1774_v5  ;;  %v1976_v11 = vadd.f32 %v1952_v62, %v1775_v1 }
 0x438   : > { %v2154_v33 = vmul.f32 %v5651_v29, %v2082_v35  ;;  %v2155_v43 = vmul.f32 %v5651_v29, %v2083_v40  ;;  %v2356_v13 = vmul.f32 %v5636_v20, %v2284_v9  ;;  %v2418_v20 = vmax.f32 %v5771_v63, 1e-24 }
 0x439   : > { %v2176_v26 = vadd.f32 %v2152_v4, %v1975_v16  ;;  %v2177_v23 = vadd.f32 %v2153_v2, %v1976_v11  ;;  %v1777_v10 = vadd.f32 %v1753_v7, %v1576_v19  ;;  %v1776_v61 = vadd.f32 %v1752_v57, %v1575_v34  ;;  %v5891_v2 = vld [vmem:[%s7419_s4 + $0x48] sm:$0xff] }
 0x43a   : > { %3748 = vrsqrt.f32 %v2418_v20  ;;  %v8023_v63 = vmov 1   ;;  %v8024_v49 = vmov 2   ;;  %v8025_v58 = vmov 3  }
 0x43b   : > { %v2377_v30 = vadd.f32 %v2353_v54, %v2176_v26  ;;  %v2378_v62 = vadd.f32 %v2354_v50, %v2177_v23  ;;  %v1978_v41 = vadd.f32 %v1954_v3, %v1777_v10  ;;  %v1977_v21 = vadd.f32 %v1953_v39, %v1776_v61  ;;  %v2455_v39 = vld [vmem:[%s7420_s5 + $0x10] sm:$0xff]  ;;  %v2456_v26 = vld [vmem:[%s7420_s5 + $0x18] sm:$0xff] }
 0x43c   : > { %v8028_v35 = vmov 6   ;;  %v8029_v40 = vmov 7   ;;  %v8042_v20 = vmov 8  }
 0x43d   : > { %v2401_v12 = vmul.f32 %v2377_v30, %v2377_v30  ;;  %v2402_v52 = vmul.f32 %v2378_v62, %v2378_v62  ;;  %v2179_v7 = vadd.f32 %v2155_v43, %v1978_v41  ;;  %v2178_v57 = vadd.f32 %v2154_v33, %v1977_v21  ;;  %v2551_v33 = vld [vmem:[%s7421_s6 + $0x8] sm:$0xff] }
 0x43f   : > { %v2411_v56 = vadd.f32 %v2402_v52, %v2401_v12  ;;  %v2380_v6 = vadd.f32 %v2356_v13, %v2179_v7  ;;  %v2379_v17 = vadd.f32 %v2355_v59, %v2178_v57  ;;  %v8035_v59 = vmov 4   ;;  %v5975_v13 = vld [vmem:[%s7419_s4 + $0x40] sm:$0xff]  ;;  %v8036_v7 = vld [vmem:[#allocation83_spill] sm:$0xff]  ;;  %v8037_v57 = vld [vmem:[#allocation80_spill] sm:$0xff] }
 0x441   : > { %2412 = vadd.xlane.f32.xlu0 %v2411_v56  ;;  %v2464_v60 = vpack.c.bf16 %v2380_v6, %v2378_v62  ;;  %v2463_v45 = vpack.c.bf16 %v2379_v17, %v2377_v30  ;;  %v2403_v44 = vmul.f32 %v2379_v17, %v2379_v17  ;;  %v2404_v29 = vmul.f32 %v2380_v6, %v2380_v6  ;;  %v8033_v62 = vld [vmem:[#allocation30_spill] sm:$0xff] }
 0x443   : > { %2517 = vmatprep.mubr.bf16.mxu1 %v2464_v60  ;;  %v2414_v28 = vadd.f32 %v2404_v29, %v2403_v44 }
 0x444   : > { %2518 = vmatmul.mubr.bf16.gmra.mxu1 %v2463_v45 }
 0x445   : > { %2415 = vadd.xlane.f32.xlu0 %v2414_v28  ;;  %2646 = vmatprep.mubr.bf16.mxu1 %v7945_v31  ;;  %v8041_v28 = vld [vmem:[#allocation76_spill] sm:$0xff] }
 0x447   : > { %v3749_v48 = vpop.eup %3748 }
 0x448   : > { %v2458_v4 = vmul.f32 %v3749_v48, %v2454_v27 }
 0x45b   : > { %2533 = vperm.xlu0 %3682, %v2458_v4  }
 0x45f   : > { %931 = vperm.xlu0 %3682, %v5891_v2  }
 0x463   : > { %1034 = vrot.lane.b32.xlu0 %v5630_v15, %s3838_s13 }
 0x464   : > { %3688 = vset.pattern.permute.xlu0 %v8023_v63 }
 0x467   : > { %805 = vrot.lane.b32.xlu0 %v5611_v24, %s3837_s30 }
 0x46b   : > { %829 = vrot.lane.b32.xlu0 %v5614_v38, %s3837_s30 }
 0x46c   : > { %v5899_v32 = vpop.f32.mrf.mxu1 }
 0x46e   : > { %v2513_v8 = vpop.f32.mrf.mxu1 }
 0x46f   : > { %1132 = vperm.xlu0 %3688, %v5891_v2  }
 0x470   : > { %v2514_v5 = vpop.f32.mrf.mxu1 }
 0x472   : > { %v2516_v1 = vpop.f32.mrf.mxu1 }
 0x473   : > { %3689 = vset.pattern.permute.xlu0 %v8024_v49 }
 0x474   : > { %1337 = vperm.xlu0 %3689, %v5609_v14  }
 0x478   : > { %1235 = vrot.lane.b32.xlu0 %v5630_v15, %s3839_s14 }
 0x47c   : > { %1008 = vrot.lane.b32.xlu0 %v5611_v24, %s3838_s13 }
 0x480   : > { %1032 = vrot.lane.b32.xlu0 %v5614_v38, %s3838_s13 }
 0x484   : > { %1333 = vperm.xlu0 %3689, %v5891_v2  }
 0x488   : > { %3692 = vset.pattern.permute.xlu0 %v8025_v58 }
 0x489   : > { %1538 = vperm.xlu0 %3692, %v5609_v14  }
 0x48d   : > { %1436 = vrot.lane.b32.xlu0 %v5630_v15, %s3840_s15 }
 0x491   : > { %1209 = vrot.lane.b32.xlu0 %v5611_v24, %s3839_s14 }
 0x495   : > { %1233 = vrot.lane.b32.xlu0 %v5614_v38, %s3839_s14 }
 0x499   : > { %1534 = vperm.xlu0 %3692, %v5891_v2  }
 0x49d   : > { %3695 = vset.pattern.permute.xlu0 %v8026_v42 }
 0x49e   : > { %1739 = vperm.xlu0 %3695, %v5609_v14  }
 0x4a2   : > { %1637 = vrot.lane.b32.xlu0 %v5630_v15, %s3841_s16 }
 0x4a6   : > { %1408 = vrot.lane.b32.xlu0 %v8027_v55, %s3840_s15 }
 0x4aa   : > { %1434 = vrot.lane.b32.xlu0 %v5614_v38, %s3840_s15 }
 0x4ae   : > { %1735 = vperm.xlu0 %3695, %v5891_v2  }
 0x4b2   : > { %3698 = vset.pattern.permute.xlu0 %v8028_v35 }
 0x4b3   : > { %1940 = vperm.xlu0 %3698, %v5609_v14  }
 0x4b7   : > { %1838 = vrot.lane.b32.xlu0 %v5630_v15, %s3843_s20 }
 0x4bb   : > { %1611 = vrot.lane.b32.xlu0 %v5611_v24, %s3841_s16 }
 0x4bf   : > { %1635 = vrot.lane.b32.xlu0 %v5614_v38, %s3841_s16 }
 0x4c3   : > { %1936 = vperm.xlu0 %3698, %v5891_v2  }
 0x4c7   : > { %3701 = vset.pattern.permute.xlu0 %v8029_v40 }
 0x4c8   : > { %2141 = vperm.xlu0 %3701, %v5609_v14  }
 0x4ca   : > { %v2413_v34 = vpop.xlane.xlu0 %2412 }
 0x4cb   : > { %v2419_v19 = vmax.f32 %v2413_v34, 1e-24 }
 0x4cc   : > { %2039 = vrot.lane.b32.xlu0 %v5630_v15, %s3842_s19 }
 0x4cd   : > { %3750 = vrsqrt.f32 %v2419_v19 }
 0x4ce   : > { %v2416_v16 = vpop.xlane.xlu0 %2415 }
 0x4cf   : > { %v2420_v11 = vmax.f32 %v2416_v16, 1e-24 }
 0x4d1   : > { %3752 = vrsqrt.f32 %v2420_v11 }
 0x4d6   : > { %v2534_v25 = vpop.permute.xlu0 %2533 }
 0x4d7   : > { %v2547_v22 = vmul.f32 %v2534_v25, %v2514_v5  ;;  %v6050_v5 = vpop.permute.xlu1 %755 }
 0x4d9   : > { %v5963_v30 = vadd.f32 %v2551_v33, %v2547_v22 }
 0x4da   : > { %v3751_v3 = vpop.eup %3750  ;;  %v5947_v54 = vpop.permute.xlu0 %931 }
 0x4db   : > { %8030 = vst [vmem:[#allocation78_spill] sm:$0xff] %v5947_v54  ;;  %v2459_v50 = vmul.f32 %v3751_v3, %v2455_v39  ;;  %v2561_v41 = vsel %vm575_vm0, %v5963_v30, -inf  ;;  %v6057_v34 = vpop.permute.xlu1 %935 }
 0x4dd   : > { %2538 = vperm.xlu1 %3681, %v2459_v50  }
 0x4de   : > { %v3753_v23 = vpop.eup %3752  ;;  %v5952_v10 = vpop.permute.xlu0 %1034 }
 0x4df   : > { %v2460_v61 = vmul.f32 %v3753_v23, %v2456_v26  ;;  %v6065_v16 = vpop.permute.xlu1 %939 }
 0x4e1   : > { %2543 = vperm.xlu1 %3681, %v2460_v61  }
 0x4e2   : > { %v5954_v9 = vpop.permute.xlu0 %805 }
 0x4e3   : > { %8031 = vst [vmem:[#allocation92_spill] sm:$0xff] %v5954_v9  ;;  %v6070_v25 = vpop.permute.xlu1 %807 }
 0x4e5   : > { %3683 = vset.pattern.permute.xlu1 %v8023_v63 }
 0x4e6   : > { %1136 = vperm.xlu1 %3683, %v5609_v14   ;;  %v5961_v43 = vpop.permute.xlu0 %829 }
 0x4e7   : > { %8032 = vst [vmem:[#allocation79_spill] sm:$0xff] %v5961_v43  ;;  %v6079_v3 = vpop.permute.xlu1 %809 }
 0x4ea   : > { %1140 = vperm.xlu1 %3683, %v8033_v62   ;;  %v5968_v21 = vpop.permute.xlu0 %1132 }
 0x4eb   : > { %2562 = vmax.xlane.f32.xlu0 %v2561_v41  ;;  %8034 = vst [vmem:[#allocation94_spill] sm:$0xff] %v5968_v21  ;;  %v6084_v26 = vpop.permute.xlu1 %831 }
 0x4ee   : > { %3684 = vset.pattern.permute.xlu1 %v8035_v59 }
 0x4ef   : > { %750 = vperm.xlu1 %3684, %v5891_v2   ;;  %v5977_v12 = vpop.permute.xlu0 %1337  ;;  %v2529_v61 = vpop.permute.xlu1 %2528 }
 0x4f3   : > { %3685 = vset.pattern.permute.xlu1 %v7945_v31  ;;  %v5981_v52 = vpop.permute.xlu0 %1235  ;;  %v6095_v33 = vpop.permute.xlu1 %833 }
 0x4f4   : > { %927 = vperm.xlu1 %3685, %v5975_v13  }
 0x4f7   : > { %v5988_v56 = vpop.permute.xlu0 %1008 }
 0x4f8   : > { %1010 = vrot.lane.b32.xlu1 %v8036_v7, %s3838_s13  ;;  %8038 = vst [vmem:[#allocation8_spill] sm:$0xff] %v5988_v56 }
 0x4f9   : > { %3686 = vset.pattern.permute.xlu1 %v8024_v49 }
 0x4fb   : > { %v5994_v6 = vpop.permute.xlu0 %1032 }
 0x4fc   : > { %1012 = vrot.lane.b32.xlu1 %v8037_v57, %s3838_s13  ;;  %8039 = vst [vmem:[#allocation81_spill] sm:$0xff] %v5994_v6 }
 0x4ff   : > { %v6007_v44 = vpop.permute.xlu0 %1333 }
 0x500   : > { %1036 = vrot.lane.b32.xlu1 %v5879_v53, %s3838_s13  ;;  %8040 = vst [vmem:[#allocation95_spill] sm:$0xff] %v6007_v44 }
 0x501   : > { %1812 = vrot.lane.b32.xlu0 %v5611_v24, %s3843_s20 }
 0x504   : > { %v5996_v17 = vpop.f32.mrf.mxu1  ;;  %1341 = vperm.xlu1 %3686, %v8033_v62   ;;  %v6013_v48 = vpop.permute.xlu0 %1538 }
 0x505   : > { %1836 = vrot.lane.b32.xlu0 %v5614_v38, %s3843_s20 }
 0x506   : > { %v2521_v60 = vpop.f32.mrf.mxu1 }
 0x508   : > { %v6001_v45 = vpop.f32.mrf.mxu1  ;;  %803 = vrot.lane.b32.xlu1 %v8027_v55, %s3837_s30  ;;  %v6021_v27 = vpop.permute.xlu0 %1436 }
 0x509   : > { %2137 = vperm.xlu0 %3701, %v5891_v2   ;;  %3687 = vset.pattern.permute.xlu1 %v8023_v63 }
 0x50a   : > { %v2524_v29 = vpop.f32.mrf.mxu1 }
 0x50c   : > { %827 = vrot.lane.b32.xlu1 %v8041_v28, %s3837_s30 }
 0x50d   : > { %3704 = vset.pattern.permute.xlu0 %v8042_v20 }
 0x50e   : > { %2342 = vperm.xlu0 %3704, %v5609_v14   ;;  %v6029_v14 = vpop.permute.xlu0 %1209 }
 0x50f   : > { %8043 = vst [vmem:[#allocation98_spill] sm:$0xff] %v6029_v14 }
 0x510   : > { %1128 = vperm.xlu1 %3687, %v5975_v13  }
 0x512   : > { %2240 = vrot.lane.b32.xlu0 %v5630_v15, %s3844_s21  ;;  %v6035_v4 = vpop.permute.xlu0 %1233 }
 0x513   : > { %8044 = vst [vmem:[#allocation96_spill] sm:$0xff] %v6035_v4 }
 0x514   : > { %1211 = vrot.lane.b32.xlu1 %v8036_v7, %s3839_s14 }
 0x515   : > { %3690 = vset.pattern.permute.xlu1 %v8025_v58 }
 0x516   : > { %2011 = vrot.lane.b32.xlu0 %v8027_v55, %s3842_s19  ;;  %v6043_v8 = vpop.permute.xlu0 %1534 }
 0x517   : > { %8045 = vst [vmem:[#allocation112_spill] sm:$0xff] %v6043_v8 }
 0x518   : > { %1213 = vrot.lane.b32.xlu1 %v8037_v57, %s3839_s14 }
 0x51a   : > { %2035 = vrot.lane.b32.xlu0 %v8041_v28, %s3842_s19  ;;  %v6052_v1 = vpop.permute.xlu0 %1739 }
 0x51c   : > { %1237 = vrot.lane.b32.xlu1 %v5879_v53, %s3839_s14 }
 0x51e   : > { %2334 = vperm.xlu0 %3704, %v5975_v13   ;;  %v6059_v19 = vpop.permute.xlu0 %1637 }
 0x520   : > { %1542 = vperm.xlu1 %3690, %v8033_v62  }
 0x522   : > { %3705 = vset.pattern.permute.xlu0 %v8035_v59  ;;  %v6067_v11 = vpop.permute.xlu0 %1408 }
 0x523   : > { %760 = vperm.xlu0 %3705, %v8033_v62   ;;  %8046 = vst [vmem:[#allocation101_spill] sm:$0xff] %v6067_v11 }
 0x524   : > { %1006 = vrot.lane.b32.xlu1 %v8027_v55, %s3838_s13 }
 0x525   : > { %3691 = vset.pattern.permute.xlu1 %v8024_v49 }
 0x526   : > { %v6072_v39 = vpop.permute.xlu0 %1434 }
 0x527   : > { %745 = vperm.xlu0 %3705, %v5975_v13   ;;  %8047 = vst [vmem:[#allocation116_spill] sm:$0xff] %v6072_v39 }
 0x528   : > { %1030 = vrot.lane.b32.xlu1 %v8041_v28, %s3838_s13 }
 0x52a   : > { %v6081_v50 = vpop.permute.xlu0 %1735 }
 0x52b   : > { %2214 = vrot.lane.b32.xlu0 %v5611_v24, %s3844_s21  ;;  %8048 = vst [vmem:[#allocation84_spill] sm:$0xff] %v6081_v50 }
 0x52c   : > { %1329 = vperm.xlu1 %3691, %v5975_v13  }
 0x52e   : > { %v6086_v23 = vpop.permute.xlu0 %1940 }
 0x52f   : > { %8049 = vst [vmem:[#allocation97_spill] sm:$0xff] %v6086_v23  ;;  %v784_v23 = vmul.f32 %v6050_v5, %v5630_v15 }
 0x530   : > { %1412 = vrot.lane.b32.xlu1 %v8036_v7, %s3840_s15 }
 0x531   : > { %3693 = vset.pattern.permute.xlu1 %v8026_v42 }
 0x532   : > { %v6093_v22 = vpop.permute.xlu0 %1838 }
 0x534   : > { %1414 = vrot.lane.b32.xlu1 %v8037_v57, %s3840_s15 }
 0x536   : > { %v6099_v41 = vpop.permute.xlu0 %1611 }
 0x537   : > { %8050 = vst [vmem:[#allocation110_spill] sm:$0xff] %v6099_v41 }
 0x538   : > { %1438 = vrot.lane.b32.xlu1 %v5879_v53, %s3840_s15 }
 0x53c   : > { %1743 = vperm.xlu1 %3693, %v8033_v62  }
 0x540   : > { %1207 = vrot.lane.b32.xlu1 %v8027_v55, %s3839_s14 }
 0x541   : > { %3694 = vset.pattern.permute.xlu1 %v8025_v58  ;;  %v6109_v58 = vpop.permute.xlu0 %1635 }
 0x542   : > { %8051 = vst [vmem:[#allocation86_spill] sm:$0xff] %v6109_v58 }
 0x544   : > { %1231 = vrot.lane.b32.xlu1 %v8041_v28, %s3839_s14 }
 0x545   : > { %v6115_v63 = vpop.permute.xlu0 %1936 }
 0x546   : > { %8052 = vst [vmem:[#allocation89_spill] sm:$0xff] %v6115_v63 }
 0x548   : > { %1530 = vperm.xlu1 %3694, %v5975_v13  }
 0x549   : > { %v6123_v11 = vpop.permute.xlu0 %2141 }
 0x54a   : > { %8053 = vst [vmem:[#allocation26_spill] sm:$0xff] %v6123_v11 }
 0x54c   : > { %1613 = vrot.lane.b32.xlu1 %v8036_v7, %s3841_s16 }
 0x54d   : > { %3696 = vset.pattern.permute.xlu1 %v8028_v35  ;;  %v6131_v50 = vpop.permute.xlu0 %2039 }
 0x550   : > { %1615 = vrot.lane.b32.xlu1 %v8037_v57, %s3841_s16 }
 0x554   : > { %1639 = vrot.lane.b32.xlu1 %v5879_v53, %s3841_s16 }
 0x558   : > { %1944 = vperm.xlu1 %3696, %v8033_v62   ;;  %v6102_v60 = vpop.permute.xlu1 %2538 }
 0x55c   : > { %1410 = vrot.lane.b32.xlu1 %v5611_v24, %s3840_s15  ;;  %v6106_v29 = vpop.permute.xlu1 %2543 }
 0x55d   : > { %3697 = vset.pattern.permute.xlu1 %v8026_v42 }
 0x560   : > { %1432 = vrot.lane.b32.xlu1 %v8041_v28, %s3840_s15 }
 0x561   : > { %v6113_v49 = vpop.permute.xlu1 %1136 }
 0x564   : > { %1731 = vperm.xlu1 %3697, %v5975_v13  }
 0x565   : > { %v6118_v8 = vpop.permute.xlu1 %1140 }
 0x568   : > { %1814 = vrot.lane.b32.xlu1 %v8036_v7, %s3843_s20 }
 0x569   : > { %3699 = vset.pattern.permute.xlu1 %v8029_v40 }
 0x56a   : > { %v6125_v42 = vpop.permute.xlu1 %750 }
 0x56b   : > { %8054 = vst [vmem:[#allocation103_spill] sm:$0xff] %v6125_v42 }
 0x56c   : > { %1816 = vrot.lane.b32.xlu1 %v8037_v57, %s3843_s20 }
 0x56f   : > { %v6129_v39 = vpop.permute.xlu1 %927 }
 0x570   : > { %8055 = vst [vmem:[#allocation2_spill] sm:$0xff] %v6129_v39  ;;  %1840 = vrot.lane.b32.xlu1 %v5879_v53, %s3843_s20 }
 0x573   : > { %v6135_v63 = vpop.permute.xlu1 %1010 }
 0x574   : > { %v2563_v44 = vpop.xlane.xlu0 %2562  ;;  %2145 = vperm.xlu1 %3699, %v8033_v62  }
 0x575   : > { %v2571_v21 = vsub.f32 %v5963_v30, %v2563_v44 }
 0x577   : > { %v2576_v41 = vmul.f32 1.442695, %v2571_v21  ;;  %v6139_v58 = vpop.permute.xlu1 %1012 }
 0x578   : > { %1609 = vrot.lane.b32.xlu1 %v8027_v55, %s3841_s16 }
 0x579   : > { %3754 = vpow2.f32 %v2576_v41  ;;  %3700 = vset.pattern.permute.xlu1 %v8028_v35 }
 0x57b   : > { %v6144_v39 = vpop.permute.xlu1 %1036 }
 0x57c   : > { %1633 = vrot.lane.b32.xlu1 %v8041_v28, %s3841_s16 }
 0x57f   : > { %v6148_v54 = vpop.permute.xlu1 %1341 }
 0x580   : > { %1932 = vperm.xlu1 %3700, %v5975_v13  }
 0x583   : > { %v6151_v4 = vpop.permute.xlu1 %803 }
 0x584   : > { %8056 = vst [vmem:[#allocation105_spill] sm:$0xff] %v6151_v4  ;;  %2015 = vrot.lane.b32.xlu1 %v8036_v7, %s3842_s19 }
 0x585   : > { %3702 = vset.pattern.permute.xlu1 %v8042_v20 }
 0x586   : > { %v6156_v30 = vpop.eup %3754 }
 0x587   : > { %8057 = vst [vmem:[#allocation7_spill] sm:$0xff] %v6156_v30  ;;  %v6158_v21 = vpop.permute.xlu1 %827  ;;  %v2585_v44 = vsel %vm575_vm0, %v6156_v30, 0.0 }
 0x588   : > { %8058 = vst [vmem:[#allocation107_spill] sm:$0xff] %v6158_v21  ;;  %2586 = vadd.xlane.f32.xlu0 %v2585_v44  ;;  %2017 = vrot.lane.b32.xlu1 %v8037_v57, %s3842_s19  ;;  %v2546_v44 = vmul.f32 %v2529_v61, %v5899_v32 }
 0x58b   : > { %v6164_v41 = vpop.permute.xlu1 %1128 }
 0x58c   : > { %8059 = vst [vmem:[#allocation37_spill] sm:$0xff] %v6164_v41  ;;  %2041 = vrot.lane.b32.xlu1 %v5879_v53, %s3842_s19  ;;  %v2550_v41 = vld [vmem:[%s7421_s6] sm:$0xff] }
 0x58d   : > { %v2554_v56 = vadd.f32 %v2550_v41, %v2546_v44 }
 0x58f   : > { %v6168_v35 = vpop.permute.xlu1 %1211  ;;  %v2558_v9 = vsel %vm575_vm0, %v2554_v56, -inf }
 0x590   : > { %v1262_v15 = vsel %vm1239_vm3, %v5981_v52, %v6168_v35 }
 0x593   : > { %v6170_v4 = vpop.permute.xlu1 %1213 }
 0x597   : > { %v6172_v14 = vpop.permute.xlu1 %1237 }
 0x59b   : > { %v6174_v42 = vpop.permute.xlu1 %1542 }
 0x59f   : > { %v6176_v21 = vpop.permute.xlu1 %1006 }
 0x5a0   : > { %8060 = vst [vmem:[#allocation109_spill] sm:$0xff] %v6176_v21 }
 0x5a3   : > { %v6178_v30 = vpop.permute.xlu1 %1030 }
 0x5a4   : > { %8061 = vst [vmem:[#allocation9_spill] sm:$0xff] %v6178_v30  ;;  %v2552_v30 = vld [vmem:[%s7421_s6 + $0x10] sm:$0xff] }
 0x5a7   : > { %v6181_v6 = vpop.permute.xlu1 %1329 }
 0x5a8   : > { %8062 = vst [vmem:[#allocation111_spill] sm:$0xff] %v6181_v6 }
 0x5ab   : > { %v6186_v43 = vpop.permute.xlu1 %1412 }
 0x5af   : > { %v6189_v31 = vpop.permute.xlu1 %1414 }
 0x5b0   : > { %2559 = vmax.xlane.f32.xlu1 %v2558_v9  ;;  %v2548_v9 = vmul.f32 %v6102_v60, %v5996_v17 }
 0x5b3   : > { %v6191_v11 = vpop.permute.xlu1 %1438 }
 0x5b7   : > { %v6193_v21 = vpop.permute.xlu1 %1743 }
 0x5bb   : > { %v6196_v32 = vpop.permute.xlu1 %1207 }
 0x5bc   : > { %8063 = vst [vmem:[#allocation131_spill] sm:$0xff] %v6196_v32  ;;  %v6214_v32 = vadd.f32 %v2552_v30, %v2548_v9 }
 0x5bf   : > { %v6199_v61 = vpop.permute.xlu1 %1231 }
 0x5c0   : > { %8064 = vst [vmem:[#allocation5_spill] sm:$0xff] %v6199_v61  ;;  %v2564_v61 = vsel %vm575_vm0, %v6214_v32, -inf }
 0x5c1   : > { %2346 = vperm.xlu1 %3702, %v8033_v62   ;;  %v2549_v62 = vmul.f32 %v6106_v29, %v6001_v45 }
 0x5c3   : > { %v6201_v41 = vpop.permute.xlu1 %1530 }
 0x5c4   : > { %8065 = vst [vmem:[#allocation113_spill] sm:$0xff] %v6201_v41  ;;  %v2553_v41 = vld [vmem:[%s7421_s6 + $0x18] sm:$0xff] }
 0x5c5   : > { %3703 = vset.pattern.permute.xlu1 %v8029_v40  ;;  %v6223_v51 = vadd.f32 %v2553_v41, %v2549_v62 }
 0x5c7   : > { %v6203_v44 = vpop.permute.xlu1 %1613  ;;  %v2567_v60 = vsel %vm575_vm0, %v6223_v51, -inf }
 0x5cb   : > { %v6205_v6 = vpop.permute.xlu1 %1615 }
 0x5cf   : > { %v6216_v40 = vpop.permute.xlu1 %1639 }
 0x5d3   : > { %v6225_v17 = vpop.permute.xlu1 %1944 }
 0x5d4   : > { %8066 = vst [vmem:[#allocation10_spill] sm:$0xff] %v6225_v17 }
 0x5d7   : > { %v6229_v45 = vpop.permute.xlu1 %1410 }
 0x5d8   : > { %8067 = vst [vmem:[#allocation13_spill] sm:$0xff] %v6229_v45 }
 0x5db   : > { %v6231_v29 = vpop.permute.xlu1 %1432 }
 0x5dc   : > { %8068 = vst [vmem:[#allocation16_spill] sm:$0xff] %v6231_v29 }
 0x5df   : > { %v6233_v30 = vpop.permute.xlu1 %1731 }
 0x5e0   : > { %8069 = vst [vmem:[#allocation20_spill] sm:$0xff] %v6233_v30 }
 0x5e3   : > { %v6239_v41 = vpop.permute.xlu1 %1814 }
 0x5e5   : > { %2565 = vmax.xlane.f32.xlu1 %v2564_v61 }
 0x5e7   : > { %v6242_v61 = vpop.permute.xlu1 %1816 }
 0x5e9   : > { %2568 = vmax.xlane.f32.xlu1 %v2567_v60 }
 0x5eb   : > { %v6249_v9 = vpop.permute.xlu1 %1840 }
 0x5ef   : > { %v6253_v62 = vpop.permute.xlu1 %2145 }
 0x5f0   : > { %8070 = vst [vmem:[#allocation121_spill] sm:$0xff] %v6253_v62 }
 0x5fa   : > { %1810 = vrot.lane.b32.xlu1 %v8027_v55, %s3843_s20 }
 0x5fe   : > { %1834 = vrot.lane.b32.xlu1 %v8041_v28, %s3843_s20 }
 0x602   : > { %2133 = vperm.xlu1 %3703, %v5975_v13   ;;  %v6259_v13 = vpop.permute.xlu1 %1609 }
 0x603   : > { %8071 = vst [vmem:[#allocation54_spill] sm:$0xff] %v6259_v13 }
 0x606   : > { %2216 = vrot.lane.b32.xlu1 %v8036_v7, %s3844_s21  ;;  %v6262_v60 = vpop.permute.xlu1 %1633 }
 0x607   : > { %3706 = vset.pattern.permute.xlu1 %v8042_v20  ;;  %8072 = vst [vmem:[#allocation42_spill] sm:$0xff] %v6262_v60 }
 0x60a   : > { %2218 = vrot.lane.b32.xlu1 %v8037_v57, %s3844_s21  ;;  %v6267_v20 = vpop.permute.xlu1 %1932 }
 0x60b   : > { %8073 = vst [vmem:[#allocation43_spill] sm:$0xff] %v6267_v20 }
 0x60e   : > { %2242 = vrot.lane.b32.xlu1 %v5879_v53, %s3844_s21  ;;  %v6269_v30 = vpop.permute.xlu1 %2015 }
 0x612   : > { %2013 = vrot.lane.b32.xlu1 %v5611_v24, %s3842_s19  ;;  %v6271_v29 = vpop.permute.xlu1 %2017 }
 0x616   : > { %2037 = vrot.lane.b32.xlu1 %v5614_v38, %s3842_s19  ;;  %v6273_v45 = vpop.permute.xlu1 %2041 }
 0x61a   : > { %2338 = vperm.xlu1 %3706, %v5891_v2   ;;  %v6275_v2 = vpop.permute.xlu0 %1812 }
 0x61b   : > { %8074 = vst [vmem:[#allocation44_spill] sm:$0xff] %v6275_v2 }
 0x61e   : > { %2212 = vrot.lane.b32.xlu1 %v8027_v55, %s3844_s21  ;;  %v6277_v60 = vpop.permute.xlu0 %1836 }
 0x61f   : > { %3707 = vset.pattern.permute.xlu1 %v8035_v59  ;;  %8075 = vst [vmem:[#allocation25_spill] sm:$0xff] %v6277_v60  ;;  %v1049_v60 = vsel %vm1038_vm2, %v6135_v63, %v5952_v10 }
 0x622   : > { %v6279_v28 = vpop.permute.xlu0 %2137 }
 0x623   : > { %8076 = vst [vmem:[#allocation11_spill] sm:$0xff] %v6279_v28  ;;  %v8084_v28 = vld [vmem:[#allocation122_spill] sm:$0xff] }
 0x626   : > { %v6285_v20 = vpop.permute.xlu0 %2342 }
 0x627   : > { %8078 = vst [vmem:[#allocation12_spill] sm:$0xff] %v6285_v20 }
 0x62a   : > { %v6287_v62 = vpop.permute.xlu0 %2240 }
 0x62b   : > { %8079 = vst [vmem:[#allocation56_spill] sm:$0xff] %v6287_v62 }
 0x62e   : > { %v6289_v18 = vpop.permute.xlu0 %2011 }
 0x62f   : > { %8080 = vst [vmem:[#allocation46_spill] sm:$0xff] %v6289_v18 }
 0x639   : > { %v2560_v24 = vpop.xlane.xlu1 %2559 }
 0x63a   : > { %v2570_v38 = vsub.f32 %v2554_v56, %v2560_v24  ;;  %v6291_v24 = vpop.permute.xlu0 %2035 }
 0x63b   : > { %8081 = vst [vmem:[#allocation58_spill] sm:$0xff] %v6291_v24  ;;  %v849_v24 = vsel %vm837_vm1, %v6079_v3, %v6095_v33 }
 0x63c   : > { %v2574_v13 = vmul.f32 1.442695, %v2570_v38  ;;  %v860_v38 = vsel %vm837_vm1, %v6084_v26, %v6070_v25 }
 0x63d   : > { %v890_v18 = vmul.f32 %v8084_v28, %v860_v38  ;;  %v783_v38 = vmul.f32 %v6050_v5, %v8036_v7  ;;  %v1250_v5 = vsel %vm1239_vm3, %v6168_v35, %v5981_v52 }
 0x63e   : > { %3756 = vpow2.f32 %v2574_v13  ;;  %v6297_v56 = vpop.permute.xlu0 %2334  ;;  %v848_v13 = vsel %vm837_vm1, %v6070_v25, %v6084_v26  ;;  %v8085_v25 = vld [vmem:[#allocation123_spill] sm:$0xff] }
 0x63f   : > { %8082 = vst [vmem:[#allocation49_spill] sm:$0xff] %v6297_v56  ;;  %v1061_v56 = vsel %vm1038_vm2, %v5952_v10, %v6135_v63  ;;  %v891_v26 = vmul.f32 %v8085_v25, %v848_v13  ;;  %v962_v13 = vmul.f32 %v6057_v34, %v890_v18  ;;  %v1050_v18 = vsel %vm1038_vm2, %v6139_v58, %v6144_v39 }
 0x641   : > { %v963_v10 = vmul.f32 %v6057_v34, %v891_v26 }
 0x642   : > { %v761_v20 = vpop.permute.xlu0 %760 }
 0x643   : > { %v785_v34 = vmul.f32 %v761_v20, %v8037_v57  ;;  %v786_v26 = vmul.f32 %v761_v20, %v5879_v53  ;;  %v8089_v57 = vld [vmem:[#allocation120_spill] sm:$0xff]  ;;  %v1451_v53 = vsel %vm1440_vm4, %v6186_v43, %v6021_v27  ;;  %v1251_v20 = vsel %vm1239_vm3, %v6170_v4, %v6172_v14 }
 0x64b   : > { %v6281_v55 = vpop.eup %3756 }
 0x64c   : > { %8077 = vst [vmem:[#allocation4_spill] sm:$0xff] %v6281_v55  ;;  %v2582_v59 = vsel %vm575_vm0, %v6281_v55, 0.0  ;;  %v6307_v55 = vpop.permute.xlu1 %2346 }
 0x64d   : > { %2583 = vadd.xlane.f32.xlu1 %v2582_v59  ;;  %v861_v59 = vsel %vm837_vm1, %v6095_v33, %v6079_v3  ;;  %8083 = vst [vmem:[#allocation29_spill] sm:$0xff] %v6307_v55  ;;  %v893_v55 = vmul.f32 %v8085_v25, %v849_v24  ;;  %v8086_v3 = vld [vmem:[#allocation115_spill] sm:$0xff]  ;;  %v8087_v24 = vld [vmem:[#allocation117_spill] sm:$0xff] }
 0x64e   : > { %v892_v2 = vmul.f32 %v8084_v28, %v861_v59  ;;  %v1091_v33 = vmul.f32 %v8086_v3, %v1061_v56  ;;  %v1062_v59 = vsel %vm1038_vm2, %v6144_v39, %v6139_v58  ;;  %v1092_v56 = vmul.f32 %v8087_v24, %v1049_v60  ;;  %v8088_v28 = vld [vmem:[#allocation119_spill] sm:$0xff] }
 0x64f   : > { %v1292_v62 = vmul.f32 %v8088_v28, %v1262_v15  ;;  %v1463_v58 = vsel %vm1440_vm4, %v6021_v27, %v6186_v43 }
 0x650   : > { %v964_v7 = vmul.f32 %v6065_v16, %v892_v2  ;;  %v1163_v60 = vmul.f32 %v6113_v49, %v1091_v33  ;;  %v1093_v2 = vmul.f32 %v8086_v3, %v1062_v59  ;;  %v1164_v52 = vmul.f32 %v6113_v49, %v1092_v56 }
 0x651   : > { %v987_v33 = vadd.f32 %v963_v10, %v784_v23  ;;  %v1364_v27 = vmul.f32 %v5977_v12, %v1292_v62  ;;  %v1295_v23 = vmul.f32 %v8089_v57, %v1251_v20  ;;  %v1452_v62 = vsel %vm1440_vm4, %v6189_v31, %v6191_v11  ;;  %v8092_v20 = vld [vmem:[#allocation126_spill] sm:$0xff] }
 0x652   : > { %v988_v49 = vadd.f32 %v964_v7, %v785_v34  ;;  %v1165_v43 = vmul.f32 %v6118_v8, %v1093_v2  ;;  %v1652_v2 = vsel %vm1641_vm5, %v6203_v44, %v6059_v19 }
 0x654   : > { %v1189_v10 = vadd.f32 %v1165_v43, %v988_v49  ;;  %v8093_v49 = vld [vmem:[#allocation127_spill] sm:$0xff]  ;;  %v1866_v43 = vsel %vm1842_vm7, %v6249_v9, %v6242_v61 }
 0x66e   : > { %v2566_v17 = vpop.xlane.xlu1 %2565 }
 0x66f   : > { %v2572_v63 = vsub.f32 %v6214_v32, %v2566_v17  ;;  %v965_v17 = vmul.f32 %v6065_v16, %v893_v55  ;;  %v1094_v55 = vmul.f32 %v8087_v24, %v1050_v18  ;;  %v1293_v16 = vmul.f32 %v8089_v57, %v1250_v5  ;;  %v8091_v18 = vld [vmem:[#allocation125_spill] sm:$0xff] }
 0x670   : > { %v1494_v5 = vmul.f32 %v8091_v18, %v1451_v53 }
 0x671   : > { %v2578_v32 = vmul.f32 1.442695, %v2572_v63  ;;  %v989_v59 = vadd.f32 %v965_v17, %v786_v26  ;;  %v8090_v63 = vld [vmem:[#allocation124_spill] sm:$0xff] }
 0x672   : > { %v2569_v25 = vpop.xlane.xlu1 %2568  ;;  %v1493_v56 = vmul.f32 %v8090_v63, %v1463_v58 }
 0x673   : > { %3758 = vpow2.f32 %v2578_v32  ;;  %v2573_v35 = vsub.f32 %v6223_v51, %v2569_v25  ;;  %v1263_v51 = vsel %vm1239_vm3, %v6172_v14, %v6170_v4  ;;  %v986_v25 = vadd.f32 %v962_v13, %v783_v38 }
 0x674   : > { %v1166_v32 = vmul.f32 %v6118_v8, %v1094_v55  ;;  %v1365_v14 = vmul.f32 %v5977_v12, %v1293_v16  ;;  %v1294_v4 = vmul.f32 %v8088_v28, %v1263_v51  ;;  %v1188_v13 = vadd.f32 %v1164_v52, %v987_v33 }
 0x675   : > { %v2580_v39 = vmul.f32 1.442695, %v2573_v35  ;;  %v1187_v38 = vadd.f32 %v1163_v60, %v986_v25  ;;  %v1565_v34 = vmul.f32 %v6013_v48, %v1493_v56  ;;  %v1464_v12 = vsel %vm1440_vm4, %v6191_v11, %v6189_v31 }
 0x676   : > { %v6378_v15 = vpop.permute.xlu1 %1810  ;;  %v1190_v7 = vadd.f32 %v1166_v32, %v989_v59  ;;  %v1566_v60 = vmul.f32 %v6013_v48, %v1494_v5  ;;  %v1389_v26 = vadd.f32 %v1365_v14, %v1188_v13  ;;  %v1366_v58 = vmul.f32 %v6148_v54, %v1294_v4 }
 0x677   : > { %3760 = vpow2.f32 %v2580_v39  ;;  %v1388_v17 = vadd.f32 %v1364_v27, %v1187_v38  ;;  %v1367_v35 = vmul.f32 %v6148_v54, %v1295_v23  ;;  %v1664_v31 = vsel %vm1641_vm5, %v6059_v19, %v6203_v44 }
 0x678   : > { %v1495_v11 = vmul.f32 %v8090_v63, %v1464_v12  ;;  %v1496_v52 = vmul.f32 %v8091_v18, %v1452_v62  ;;  %v1653_v48 = vsel %vm1641_vm5, %v6205_v6, %v6216_v40  ;;  %v1665_v55 = vsel %vm1641_vm5, %v6216_v40, %v6205_v6  ;;  %v8094_v12 = vld [vmem:[#allocation56_spill] sm:$0xff] }
 0x679   : > { %v1390_v54 = vadd.f32 %v1366_v58, %v1189_v10  ;;  %v1391_v16 = vadd.f32 %v1367_v35, %v1190_v7  ;;  %v1589_v53 = vadd.f32 %v1565_v34, %v1388_v17  ;;  %v1694_v51 = vmul.f32 %v8092_v20, %v1652_v2 }
 0x67a   : > { %v6396_v8 = vpop.permute.xlu1 %1834  ;;  %v1590_v44 = vadd.f32 %v1566_v60, %v1389_v26  ;;  %v1695_v39 = vmul.f32 %v8093_v49, %v1664_v31  ;;  %v1853_v25 = vsel %vm1842_vm7, %v6239_v41, %v6093_v22  ;;  %v1865_v40 = vsel %vm1842_vm7, %v6093_v22, %v6239_v41 }
 0x67b   : > { %v1696_v33 = vmul.f32 %v8092_v20, %v1653_v48  ;;  %v1697_v59 = vmul.f32 %v8093_v49, %v1665_v55  ;;  %v1854_v56 = vsel %vm1842_vm7, %v6242_v61, %v6249_v9  ;;  %v1567_v27 = vmul.f32 %v6174_v42, %v1495_v11  ;;  %v8096_v11 = vld [vmem:[#allocation10_spill] sm:$0xff] }
 0x67c   : > { %v1568_v22 = vmul.f32 %v6174_v42, %v1496_v52  ;;  %v2054_v41 = vsel %vm2043_vm6, %v6269_v30, %v6131_v50  ;;  %v1766_v32 = vmul.f32 %v6052_v1, %v1694_v51  ;;  %v1895_v14 = vmul.f32 %v7918_v47, %v1853_v25 }
 0x67d   : > { %v1896_v4 = vmul.f32 %v4899_v46, %v1865_v40  ;;  %v2066_v61 = vsel %vm2043_vm6, %v6131_v50, %v6269_v30  ;;  %v1897_v9 = vmul.f32 %v7918_v47, %v1854_v56  ;;  %v1898_v23 = vmul.f32 %v4899_v46, %v1866_v43  ;;  %v8098_v40 = vld [vmem:[#allocation82_spill] sm:$0xff] }
 0x67e   : > { %v6420_v19 = vpop.permute.xlu1 %2133  ;;  %v2055_v38 = vsel %vm2043_vm6, %v6271_v29, %v6273_v45  ;;  %v2067_v13 = vsel %vm2043_vm6, %v6273_v45, %v6271_v29  ;;  %v1767_v50 = vmul.f32 %v6052_v1, %v1695_v39  ;;  %v1768_v30 = vmul.f32 %v6193_v21, %v1696_v33  ;;  %v8095_v1 = vld [vmem:[#allocation97_spill] sm:$0xff]  ;;  %v8099_v43 = vld [vmem:[#allocation26_spill] sm:$0xff] }
 0x67f   : > { %v1769_v7 = vmul.f32 %v6193_v21, %v1697_v59  ;;  %v2096_v34 = vmul.f32 %v4856_v36, %v2054_v41  ;;  %v2097_v62 = vmul.f32 %v4859_v37, %v2066_v61  ;;  %v1967_v60 = vmul.f32 %v8095_v1, %v1895_v14  ;;  %v8097_v39 = vld [vmem:[#allocation85_spill] sm:$0xff] }
 0x680   : > { %v6431_v6 = vpop.eup %3758  ;;  %v1968_v2 = vmul.f32 %v8095_v1, %v1896_v4  ;;  %v2098_v21 = vmul.f32 %v4856_v36, %v2055_v38  ;;  %v2099_v26 = vmul.f32 %v4859_v37, %v2067_v13  ;;  %v1591_v35 = vadd.f32 %v1567_v27, %v1390_v54  ;;  %v8100_v54 = vld [vmem:[#allocation121_spill] sm:$0xff] }
 0x681   : > { %v2588_v5 = vsel %vm575_vm0, %v6431_v6, 0.0  ;;  %v1592_v31 = vadd.f32 %v1568_v22, %v1391_v16  ;;  %v1969_v52 = vmul.f32 %v8096_v11, %v1897_v9  ;;  %v1970_v48 = vmul.f32 %v8096_v11, %v1898_v23  ;;  %v8106_v11 = vld [vmem:[#allocation92_spill] sm:$0xff] }
 0x682   : > { %2589 = vadd.xlane.f32.xlu1 %v2588_v5  ;;  %v2217_v42 = vpop.permute.xlu1 %2216  ;;  %v1790_v55 = vadd.f32 %v1766_v32, %v1589_v53  ;;  %v1791_v51 = vadd.f32 %v1767_v50, %v1590_v44  ;;  %v1792_v59 = vadd.f32 %v1768_v30, %v1591_v35  ;;  %v2168_v41 = vmul.f32 %v8099_v43, %v2096_v34  ;;  %v8102_v34 = vld [vmem:[#allocation29_spill] sm:$0xff]  ;;  %v6512_v35 = vld [vmem:[%s7425_s10 + $0x8] sm:$0xff] }
 0x683   : > { %v2255_v17 = vsel %vm2244_vm8, %v2217_v42, %v8094_v12  ;;  %v2267_v45 = vsel %vm2244_vm8, %v8094_v12, %v2217_v42  ;;  %v1793_v56 = vadd.f32 %v1769_v7, %v1592_v31  ;;  %v2169_v5 = vmul.f32 %v8099_v43, %v2097_v62  ;;  %v8101_v42 = vld [vmem:[#allocation12_spill] sm:$0xff] }
 0x684   : > { %v6468_v10 = vpop.eup %3760  ;;  %v2297_v25 = vmul.f32 %v8097_v39, %v2255_v17  ;;  %v2298_v33 = vmul.f32 %v8098_v40, %v2267_v45  ;;  %v1991_v14 = vadd.f32 %v1967_v60, %v1790_v55  ;;  %v1992_v4 = vadd.f32 %v1968_v2, %v1791_v51 }
 0x685   : > { %v2591_v29 = vsel %vm575_vm0, %v6468_v10, 0.0  ;;  %v2170_v16 = vmul.f32 %v8100_v54, %v2098_v21  ;;  %v2171_v27 = vmul.f32 %v8100_v54, %v2099_v26  ;;  %v1993_v61 = vadd.f32 %v1969_v52, %v1792_v59  ;;  %v8103_v26 = vld [vmem:[#allocation76_spill] sm:$0xff]  ;;  %v8107_v52 = vld [vmem:[#allocation79_spill] sm:$0xff] }
 0x686   : > { %2592 = vadd.xlane.f32.xlu0 %v2591_v29  ;;  %v2219_v58 = vpop.permute.xlu1 %2218  ;;  %v1994_v53 = vadd.f32 %v1970_v48, %v1793_v56  ;;  %v2369_v9 = vmul.f32 %v8101_v42, %v2297_v25  ;;  %v2370_v23 = vmul.f32 %v8101_v42, %v2298_v33  ;;  %v2192_v50 = vadd.f32 %v2168_v41, %v1991_v14  ;;  %v8110_v33 = vld [vmem:[#allocation81_spill] sm:$0xff]  ;;  %v8111_v56 = vld [vmem:[#allocation123_spill] sm:$0xff] }
 0x687   : > { %v2193_v30 = vadd.f32 %v2169_v5, %v1992_v4  ;;  %v2194_v7 = vadd.f32 %v2170_v16, %v1993_v61  ;;  %v8105_v31 = vmov 0   ;;  %v859_v48 = vsel %vm837_vm1, %v8107_v52, %v8106_v11  ;;  %v8112_v5 = vld [vmem:[#allocation90_spill] sm:$0xff]  ;;  %v8113_v14 = vld [vmem:[#allocation103_spill] sm:$0xff] }
 0x688   : > { %v2195_v17 = vadd.f32 %v2171_v27, %v1994_v53  ;;  %v2393_v45 = vadd.f32 %v2369_v9, %v2192_v50  ;;  %v847_v51 = vsel %vm837_vm1, %v8106_v11, %v8107_v52  ;;  %v781_v4 = vmul.f32 %v8113_v14, %v8112_v5  ;;  %v8114_v16 = vld [vmem:[#allocation98_spill] sm:$0xff]  ;;  %v8115_v27 = vld [vmem:[#allocation96_spill] sm:$0xff]  ;;  %v8123_v11 = vld [vmem:[#allocation9_spill] sm:$0xff] }
 0x689   : > { %v2394_v1 = vadd.f32 %v2370_v23, %v2193_v30  ;;  %v889_v43 = vmul.f32 %v8111_v56, %v847_v51  ;;  %v8116_v61 = vld [vmem:[#allocation78_spill] sm:$0xff]  ;;  %v8124_v51 = vld [vmem:[#allocation95_spill] sm:$0xff] }
 0x68a   : > { %v2243_v22 = vpop.permute.xlu1 %2242  ;;  %v8117_v23 = vld [vmem:[#allocation86_spill] sm:$0xff] }
 0x68b   : > { %v2256_v44 = vsel %vm2244_vm8, %v2219_v58, %v2243_v22  ;;  %v2268_v32 = vsel %vm2244_vm8, %v2243_v22, %v2219_v58  ;;  %v8104_v58 = vld [vmem:[#allocation23_spill] sm:$0xff]  ;;  %v1261_v22 = vsel %vm1239_vm3, %v8115_v27, %v8114_v16  ;;  %v961_v50 = vmul.f32 %v8116_v61, %v889_v43  ;;  %v746_v43 = vpop.permute.xlu0 %745 }
 0x68c   : > { %v2299_v38 = vmul.f32 %v8097_v39, %v2256_v44  ;;  %v2300_v13 = vmul.f32 %v8098_v40, %v2268_v32  ;;  %v8108_v39 = vld [vmem:[#allocation122_spill] sm:$0xff]  ;;  %v8109_v40 = vld [vmem:[#allocation8_spill] sm:$0xff]  ;;  %v1249_v44 = vsel %vm1239_vm3, %v8114_v16, %v8115_v27  ;;  %v782_v32 = vmul.f32 %v8113_v14, %v8104_v58  ;;  %v8126_v16 = vld [vmem:[#allocation5_spill] sm:$0xff] }
 0x68d   : > { %v888_v25 = vmul.f32 %v8108_v39, %v859_v48  ;;  %v1060_v59 = vsel %vm1038_vm2, %v8110_v33, %v8109_v40  ;;  %v1048_v41 = vsel %vm1038_vm2, %v8109_v40, %v8110_v33  ;;  %v1290_v30 = vmul.f32 %v8088_v28, %v1261_v22 }
 0x68e   : > { %v2371_v62 = vmul.f32 %v8102_v34, %v2299_v38  ;;  %v2372_v12 = vmul.f32 %v8102_v34, %v2300_v13  ;;  %v6520_v55 = vpop.permute.xlu1 %2013  ;;  %v1089_v54 = vmul.f32 %v8086_v3, %v1060_v59  ;;  %v1090_v9 = vmul.f32 %v8087_v24, %v1048_v41  ;;  %v8118_v38 = vld [vmem:[#allocation110_spill] sm:$0xff] }
 0x68f   : > { %v960_v53 = vmul.f32 %v8116_v61, %v888_v25  ;;  %v1651_v13 = vsel %vm1641_vm5, %v8118_v38, %v8117_v23  ;;  %v8119_v34 = vld [vmem:[#allocation94_spill] sm:$0xff]  ;;  %v1362_v25 = vmul.f32 %v8124_v51, %v1290_v30  ;;  %v8127_v61 = vld [vmem:[#allocation84_spill] sm:$0xff] }
 0x690   : > { %v2395_v29 = vadd.f32 %v2371_v62, %v2194_v7  ;;  %v2396_v60 = vadd.f32 %v2372_v12, %v2195_v17  ;;  %v1161_v62 = vmul.f32 %v8119_v34, %v1089_v54  ;;  %v1291_v12 = vmul.f32 %v8089_v57, %v1249_v44  ;;  %v8125_v54 = vld [vmem:[#allocation131_spill] sm:$0xff] }
 0x691   : > { %v984_v7 = vadd.f32 %v960_v53, %v781_v4  ;;  %v1663_v17 = vsel %vm1641_vm5, %v8117_v23, %v8118_v38  ;;  %v1162_v48 = vmul.f32 %v8119_v34, %v1090_v9  ;;  %v1260_v27 = vsel %vm1239_vm3, %v8126_v16, %v8125_v54  ;;  %v8128_v9 = vld [vmem:[#allocation6_spill] sm:$0xff] }
 0x692   : > { %v2607_v2 = vpack.c.bf16 %v2396_v60, %v2394_v1  ;;  %v2606_v21 = vpack.c.bf16 %v2395_v29, %v2393_v45  ;;  %v6550_v42 = vpop.permute.xlu1 %2037  ;;  %v8120_v45 = vld [vmem:[#allocation105_spill] sm:$0xff]  ;;  %v8121_v29 = vld [vmem:[#allocation107_spill] sm:$0xff]  ;;  %v1692_v60 = vmul.f32 %v8092_v20, %v1651_v13  ;;  %v1693_v40 = vmul.f32 %v8093_v49, %v1663_v17  ;;  %v8129_v13 = vld [vmem:[#allocation116_spill] sm:$0xff] }
 0x693   : > { %2236 = vrot.lane.b32.xlu1 %v8103_v26, %s3844_s21  ;;  %v858_v1 = vsel %vm837_vm1, %v8121_v29, %v8120_v45  ;;  %v1185_v33 = vadd.f32 %v1161_v62, %v984_v7  ;;  %v1363_v22 = vmul.f32 %v8124_v51, %v1291_v12  ;;  %v779_v23 = vmul.f32 %v746_v43, %v8128_v9  ;;  %v6643_v9 = vpop.permute.xlu0 %2214 }
 0x694   : > { %2626 = vmatprep.subr.bf16.mxu1 %v2607_v2  ;;  %v985_v2 = vadd.f32 %v961_v50, %v782_v32  ;;  %v886_v59 = vmul.f32 %v8108_v39, %v858_v1  ;;  %v6596_v53 = vmul.f32 %v8127_v61, %v1692_v60  ;;  %v1248_v32 = vsel %vm1239_vm3, %v8125_v54, %v8126_v16  ;;  %v8130_v50 = vld [vmem:[#allocation13_spill] sm:$0xff]  ;;  %v8137_v54 = vld [vmem:[#allocation111_spill] sm:$0xff] }
 0x695   : > { %2627 = vmatpush1.bf16.msra.mxu1 %v2606_v21  ;;  %v846_v21 = vsel %vm837_vm1, %v8120_v45, %v8121_v29  ;;  %v780_v38 = vmul.f32 %v746_v43, %v8103_v26  ;;  %v1450_v30 = vsel %vm1440_vm4, %v8130_v50, %v8129_v13  ;;  %v1462_v7 = vsel %vm1440_vm4, %v8129_v13, %v8130_v50  ;;  %v8131_v45 = vld [vmem:[#allocation2_spill] sm:$0xff]  ;;  %v8132_v1 = vld [vmem:[#allocation37_spill] sm:$0xff]  ;;  %v8140_v50 = vld [vmem:[#allocation112_spill] sm:$0xff] }
 0x696   : > { %v6582_v41 = vpop.permute.xlu1 %2338  ;;  %v887_v5 = vmul.f32 %v8111_v56, %v846_v21  ;;  %v1186_v44 = vadd.f32 %v1162_v48, %v985_v2  ;;  %v1765_v34 = vmul.f32 %v8127_v61, %v1693_v40  ;;  %v1386_v62 = vadd.f32 %v1362_v25, %v1185_v33  ;;  %v8135_v33 = vld [vmem:[#allocation25_spill] sm:$0xff]  ;;  %v8139_v61 = vld [vmem:[#allocation54_spill] sm:$0xff] }
 0x697   : > { %v1288_v17 = vmul.f32 %v8088_v28, %v1260_v27  ;;  %v958_v29 = vmul.f32 %v8131_v45, %v886_v59  ;;  %v1289_v2 = vmul.f32 %v8089_v57, %v1248_v32  ;;  %v1491_v21 = vmul.f32 %v8090_v63, %v1462_v7  ;;  %v8136_v59 = vld [vmem:[#allocation44_spill] sm:$0xff]  ;;  %v8138_v27 = vld [vmem:[#allocation42_spill] sm:$0xff] }
 0x698   : > { %v959_v26 = vmul.f32 %v8131_v45, %v887_v5  ;;  %v1387_v40 = vadd.f32 %v1363_v22, %v1186_v44  ;;  %v1852_v43 = vsel %vm1842_vm7, %v8136_v59, %v8135_v33  ;;  %v1650_v32 = vsel %vm1641_vm5, %v8139_v61, %v8138_v27 }
 0x699   : > { %v982_v5 = vadd.f32 %v958_v29, %v779_v23  ;;  %v1360_v16 = vmul.f32 %v8137_v54, %v1288_v17  ;;  %v1662_v22 = vsel %vm1641_vm5, %v8138_v27, %v8139_v61  ;;  %v1361_v23 = vmul.f32 %v8137_v54, %v1289_v2  ;;  %v8141_v2 = vld [vmem:[#allocation58_spill] sm:$0xff] }
 0x69a   : > { %v2213_v25 = vpop.permute.xlu1 %2212  ;;  %v1863_v17 = vsel %vm1842_vm7, %v6396_v8, %v6378_v15  ;;  %v1864_v29 = vsel %vm1842_vm7, %v8135_v33, %v8136_v59  ;;  %v2587_v33 = vpop.xlane.xlu0 %2586 }
 0x69c   : > { %2238 = vrot.lane.b32.xlu0 %v8104_v58, %s3844_s21  ;;  %v8122_v58 = vld [vmem:[#allocation109_spill] sm:$0xff] }
 0x69d   : > { %v1059_v52 = vsel %vm1038_vm2, %v8123_v11, %v8122_v58  ;;  %v1047_v14 = vsel %vm1038_vm2, %v8122_v58, %v8123_v11  ;;  %v1492_v58 = vmul.f32 %v8091_v18, %v1450_v30  ;;  %v8133_v11 = vld [vmem:[#allocation16_spill] sm:$0xff]  ;;  %v1563_v30 = vmul.f32 %v8140_v50, %v1491_v21  ;;  %v8142_v21 = vld [vmem:[#allocation46_spill] sm:$0xff] }
 0x69e   : > { %v1087_v4 = vmul.f32 %v8086_v3, %v1059_v52  ;;  %v1088_v12 = vmul.f32 %v8087_v24, %v1047_v14  ;;  %v8134_v52 = vld [vmem:[#allocation101_spill] sm:$0xff]  ;;  %v983_v14 = vadd.f32 %v959_v26, %v780_v38  ;;  %v1893_v26 = vmul.f32 %v7918_v47, %v1852_v43 }
 0x69f   : > { %v1449_v48 = vsel %vm1440_vm4, %v8134_v52, %v8133_v11  ;;  %v1461_v51 = vsel %vm1440_vm4, %v8133_v11, %v8134_v52  ;;  %v1564_v7 = vmul.f32 %v8140_v50, %v1492_v58  ;;  %v2052_v58 = vsel %vm2043_vm6, %v8142_v21, %v8141_v2  ;;  %v8143_v52 = vld [vmem:[#allocation113_spill] sm:$0xff] }
 0x6a0   : > { %2904 = vperm.xlu0 %3705, %v6512_v35   ;;  %v1159_v60 = vmul.f32 %v8132_v1, %v1087_v4  ;;  %v1160_v4 = vmul.f32 %v8132_v1, %v1088_v12  ;;  %v1489_v38 = vmul.f32 %v8090_v63, %v1461_v51  ;;  %v1490_v13 = vmul.f32 %v8091_v18, %v1449_v48 }
 0x6a1   : > { %v1851_v12 = vsel %vm1842_vm7, %v6378_v15, %v6396_v8  ;;  %v1690_v1 = vmul.f32 %v8092_v20, %v1650_v32  ;;  %v2064_v15 = vsel %vm2043_vm6, %v8141_v2, %v8142_v21  ;;  %v1892_v43 = vmul.f32 %v4899_v46, %v1863_v17  ;;  %v8144_v32 = vld [vmem:[#allocation20_spill] sm:$0xff]  ;;  %v8146_v21 = vld [vmem:[#allocation89_spill] sm:$0xff] }
 0x6a2   : > { %v1183_v44 = vadd.f32 %v1159_v60, %v982_v5  ;;  %v1691_v60 = vmul.f32 %v8093_v49, %v1662_v22  ;;  %v1184_v8 = vadd.f32 %v1160_v4, %v983_v14  ;;  %v1561_v48 = vmul.f32 %v8143_v52, %v1489_v38  ;;  %v8145_v38 = vld [vmem:[#allocation43_spill] sm:$0xff] }
 0x6a3   : > { %v1562_v51 = vmul.f32 %v8143_v52, %v1490_v13  ;;  %v1891_v59 = vmul.f32 %v7918_v47, %v1851_v12  ;;  %v1587_v54 = vadd.f32 %v1563_v30, %v1386_v62  ;;  %v1588_v27 = vadd.f32 %v1564_v7, %v1387_v40 }
 0x6a4   : > { %3708 = vset.pattern.permute.xlu0 %v8105_v31  ;;  %v1384_v11 = vadd.f32 %v1360_v16, %v1183_v44  ;;  %v1385_v5 = vadd.f32 %v1361_v23, %v1184_v8  ;;  %v1762_v22 = vmul.f32 %v8144_v32, %v1690_v1  ;;  %v1763_v50 = vmul.f32 %v8144_v32, %v1691_v60  ;;  %v6710_v8 = vld [vmem:[%s7422_s7 + $0x18] ss:$0 sm:$0xff] }
 0x6a5   : > { %v2053_v14 = vsel %vm2043_vm6, %v6520_v55, %v6550_v42  ;;  %v2065_v4 = vsel %vm2043_vm6, %v6550_v42, %v6520_v55  ;;  %v1894_v16 = vmul.f32 %v4899_v46, %v1864_v29  ;;  %v2092_v62 = vmul.f32 %v4856_v36, %v2052_v58 }
 0x6a6   : > { %v2093_v40 = vmul.f32 %v4859_v37, %v2064_v15  ;;  %v1585_v44 = vadd.f32 %v1561_v48, %v1384_v11  ;;  %v1586_v23 = vadd.f32 %v1562_v51, %v1385_v5  ;;  %v1963_v13 = vmul.f32 %v8145_v38, %v1891_v59 }
 0x6a7   : > { %v1964_v30 = vmul.f32 %v8145_v38, %v1892_v43  ;;  %v1788_v7 = vadd.f32 %v6596_v53, %v1587_v54  ;;  %v1789_v12 = vadd.f32 %v1765_v34, %v1588_v27  ;;  %v2094_v17 = vmul.f32 %v4856_v36, %v2053_v14  ;;  %v6704_v53 = vld [vmem:[%s7422_s7 + $0x10] ss:$0 sm:$0xff] }
 0x6a8   : > { %v2095_v55 = vmul.f32 %v4859_v37, %v2065_v4  ;;  %v1786_v29 = vadd.f32 %v1762_v22, %v1585_v44  ;;  %v1787_v1 = vadd.f32 %v1763_v50, %v1586_v23  ;;  %v1965_v58 = vmul.f32 %v8146_v21, %v1893_v26  ;;  %v8148_v22 = vld [vmem:[#allocation49_spill] sm:$0xff] }
 0x6a9   : > { %v1966_v15 = vmul.f32 %v8146_v21, %v1894_v16  ;;  %v2164_v26 = vmul.f32 %v6420_v19, %v2092_v62  ;;  %v2165_v48 = vmul.f32 %v6420_v19, %v2093_v40 }
 0x6aa   : > { %v1987_v52 = vadd.f32 %v1963_v13, %v1786_v29  ;;  %v1989_v51 = vadd.f32 %v1965_v58, %v1788_v7  ;;  %v8150_v29 = vld [vmem:[#allocation7_spill] sm:$0xff] }
 0x6ab   : > { %v1990_v32 = vadd.f32 %v1966_v15, %v1789_v12 }
 0x6ac   : > { %v2188_v16 = vadd.f32 %v2164_v26, %v1987_v52 }
 0x6d6   : > { %v2584_v45 = vpop.xlane.xlu1 %2583 }
 0x6d7   : > { %3762 = vrcp.f32 %v2584_v45 }
 0x6d8   : > { %3764 = vrcp.f32 %v2587_v33  ;;  %v8147_v33 = vld [vmem:[#allocation11_spill] sm:$0xff] }
 0x6d9   : > { %v2166_v59 = vmul.f32 %v8147_v33, %v2094_v17  ;;  %v2167_v43 = vmul.f32 %v8147_v33, %v2095_v55  ;;  %v8149_v17 = vld [vmem:[#allocation4_spill] sm:$0xff] }
 0x6db   : > { %v2191_v23 = vadd.f32 %v2167_v43, %v1990_v32  ;;  %v2895_v32 = vld [vmem:[%s7425_s10 + $0x10] sm:$0xff] }
 0x6e4   : > { %v3763_v38 = vpop.eup %3762 }
 0x6e5   : > { %v3765_v12 = vpop.eup %3764  ;;  %v2598_v55 = vmul.f32 %v3763_v38, %v8149_v17  ;;  %v3811_v17 = vld [vmem:[%s3990_s12 + $0x18] sm:$0xff] }
 0x70b   : > { %v2590_v61 = vpop.xlane.xlu1 %2589 }
 0x70f   : > { %v2593_v42 = vpop.xlane.xlu0 %2592  ;;  %v2237_v45 = vpop.permute.xlu1 %2236 }
 0x710   : > { %v2253_v60 = vsel %vm2244_vm8, %v2213_v25, %v2237_v45  ;;  %v2265_v2 = vsel %vm2244_vm8, %v2237_v45, %v2213_v25  ;;  %v1988_v25 = vadd.f32 %v1964_v30, %v1787_v1  ;;  %3766 = vrcp.f32 %v2593_v42 }
 0x711   : > { %v2293_v34 = vmul.f32 %v6704_v53, %v2253_v60  ;;  %v2294_v11 = vmul.f32 %v6710_v8, %v2265_v2  ;;  %3768 = vrcp.f32 %v2590_v61  ;;  %v2190_v61 = vadd.f32 %v2166_v59, %v1989_v51 }
 0x712   : > { %v2189_v62 = vadd.f32 %v2165_v48, %v1988_v25  ;;  %v2599_v1 = vmul.f32 %v3765_v12, %v8150_v29  ;;  %v3813_v29 = vld [vmem:[%s3990_s12 + $0x38] sm:$0xff] }
 0x713   : > { %v2239_v5 = vpop.permute.xlu0 %2238  ;;  %v2365_v50 = vmul.f32 %v8148_v22, %v2293_v34  ;;  %v2366_v19 = vmul.f32 %v8148_v22, %v2294_v11  ;;  %v2896_v22 = vld [vmem:[%s7425_s10 + $0x18] sm:$0xff] }
 0x714   : > { %v2254_v54 = vsel %vm2244_vm8, %v6643_v9, %v2239_v5  ;;  %v2266_v27 = vsel %vm2244_vm8, %v2239_v5, %v6643_v9  ;;  %v2602_v60 = vpack.c.bf16 %v2599_v1, %v2598_v55 }
 0x715   : > { %v2295_v14 = vmul.f32 %v6704_v53, %v2254_v54  ;;  %v2296_v4 = vmul.f32 %v6710_v8, %v2266_v27  ;;  %v2389_v13 = vadd.f32 %v2365_v50, %v2188_v16  ;;  %v2390_v30 = vadd.f32 %v2366_v19, %v2189_v62  ;;  %v3731_v54 = vld [vmem:[%s7423_s8 + $0x8] sm:$0xff]   ;;  %v2893_v27 = vld [vmem:[%s7425_s10] sm:$0xff] }
 0x716   : > { %2899 = vperm.xlu1 %3707, %v2893_v27   ;;  %2958 = vperm.xlu0 %3708, %v2893_v27   ;;  %v8151_v50 = vmov 1   ;;  %v8152_v19 = vmov 2   ;;  %v8155_v16 = vmov 6   ;;  %v8156_v62 = vmov 7  }
 0x717   : > { %v2367_v40 = vmul.f32 %v6582_v41, %v2295_v14  ;;  %v2368_v44 = vmul.f32 %v6582_v41, %v2296_v4  ;;  %v8153_v14 = vmov 3   ;;  %v8154_v4 = vmov 5  }
 0x719   : > { %v2391_v9 = vadd.f32 %v2367_v40, %v2190_v61  ;;  %v2392_v7 = vadd.f32 %v2368_v44, %v2191_v23  ;;  %v8157_v61 = vmov 8  }
 0x71a   : > { %2909 = vperm.xlu1 %3707, %v2895_v32   ;;  %2970 = vperm.xlu0 %3708, %v2896_v22  }
 0x71b   : > { %v2605_v42 = vpack.c.bf16 %v2392_v7, %v2390_v30  ;;  %v2604_v45 = vpack.c.bf16 %v2391_v9, %v2389_v13 }
 0x71d   : > { %2628 = vmatprep.subr.bf16.mxu1 %v2605_v42  ;;  %v3767_v2 = vpop.eup %3766  ;;  %v3812_v42 = vld [vmem:[%s3990_s12 + $0x28] sm:$0xff] }
 0x71e   : > { %2629 = vmatpush1.bf16.msra.mxu1 %v2604_v45  ;;  %v3769_v21 = vpop.eup %3768  ;;  %v2601_v41 = vmul.f32 %v3767_v2, %v6468_v10  ;;  %v3730_v10 = vld [vmem:[%s7423_s8] sm:$0xff]   ;;  %2914 = vperm.xlu1 %3707, %v2896_v22  }
 0x71f   : > { %v2600_v58 = vmul.f32 %v3769_v21, %v6431_v6  ;;  %3711 = vset.pattern.permute.xlu0 %v8151_v50  ;;  %v3815_v21 = vld [vmem:[%s3990_s12 + $0x8] sm:$0xff] }
 0x720   : > { %3026 = vperm.xlu0 %3711, %v6512_v35  }
 0x721   : > { %3595 = vmatmul.mubr.msk.bf16.vlgmr.msra.gmra.mxu1 %vm575_vm0, %v2602_v60  ;;  %v2603_v15 = vpack.c.bf16 %v2601_v41, %v2600_v58  ;;  %v3814_v60 = vld [vmem:[%s3990_s12 + $0x20] sm:$0xff] }
 0x722   : > { %2656 = vmatprep.mubr.bf16.mxu1 %v8105_v31  ;;  %3709 = vset.pattern.permute.xlu1 %v8105_v31 }
 0x723   : > { %2962 = vperm.xlu1 %3709, %v6512_v35  }
 0x724   : > { %3712 = vset.pattern.permute.xlu0 %v8152_v19 }
 0x725   : > { %3086 = vperm.xlu0 %3712, %v2893_v27  }
 0x727   : > { %2966 = vperm.xlu1 %3709, %v2895_v32  }
 0x729   : > { %3596 = vmatmul.mubr.msk.bf16.gmra.mxu1 %vm575_vm0, %v2603_v15  ;;  %3098 = vperm.xlu0 %3712, %v2896_v22   ;;  %v3816_v15 = vld [vmem:[%s3990_s12 + $0x10] sm:$0xff] }
 0x72a   : > { %2723 = vmatprep.mubr.bf16.mxu1 %v8105_v31 }
 0x72b   : > { %3710 = vset.pattern.permute.xlu1 %v8151_v50 }
 0x72c   : > { %3022 = vperm.xlu1 %3710, %v2893_v27  }
 0x72d   : > { %3715 = vset.pattern.permute.xlu0 %v8153_v14 }
 0x72e   : > { %3154 = vperm.xlu0 %3715, %v6512_v35  }
 0x730   : > { %3030 = vperm.xlu1 %3710, %v2895_v32  }
 0x732   : > { %3716 = vset.pattern.permute.xlu0 %v8154_v4 }
 0x733   : > { %3214 = vperm.xlu0 %3716, %v2893_v27  }
 0x734   : > { %3034 = vperm.xlu1 %3710, %v2896_v22  }
 0x737   : > { %3226 = vperm.xlu0 %3716, %v2896_v22  }
 0x738   : > { %3713 = vset.pattern.permute.xlu1 %v8152_v19 }
 0x739   : > { %3090 = vperm.xlu1 %3713, %v6512_v35  }
 0x73b   : > { %3719 = vset.pattern.permute.xlu0 %v8155_v16 }
 0x73c   : > { %3282 = vperm.xlu0 %3719, %v6512_v35  }
 0x73d   : > { %3094 = vperm.xlu1 %3713, %v2895_v32  }
 0x740   : > { %3720 = vset.pattern.permute.xlu0 %v8156_v62 }
 0x741   : > { %3342 = vperm.xlu0 %3720, %v2893_v27   ;;  %3714 = vset.pattern.permute.xlu1 %v8153_v14 }
 0x742   : > { %3150 = vperm.xlu1 %3714, %v2893_v27  }
 0x745   : > { %3354 = vperm.xlu0 %3720, %v2896_v22  }
 0x746   : > { %3158 = vperm.xlu1 %3714, %v2895_v32  }
 0x749   : > { %3723 = vset.pattern.permute.xlu0 %v8157_v61 }
 0x74a   : > { %3410 = vperm.xlu0 %3723, %v6512_v35   ;;  %3162 = vperm.xlu1 %3714, %v2896_v22  }
 0x74e   : > { %3717 = vset.pattern.permute.xlu1 %v8154_v4 }
 0x74f   : > { %3218 = vperm.xlu1 %3717, %v6512_v35  }
 0x753   : > { %3222 = vperm.xlu1 %3717, %v2895_v32  }
 0x757   : > { %3718 = vset.pattern.permute.xlu1 %v8155_v16 }
 0x758   : > { %3278 = vperm.xlu1 %3718, %v2893_v27  }
 0x75c   : > { %3286 = vperm.xlu1 %3718, %v2895_v32  }
 0x760   : > { %3290 = vperm.xlu1 %3718, %v2896_v22  }
 0x764   : > { %3721 = vset.pattern.permute.xlu1 %v8156_v62 }
 0x765   : > { %3346 = vperm.xlu1 %3721, %v6512_v35   ;;  %v3810_v35 = vld [vmem:[%s3990_s12 + $0x30] sm:$0xff] }
 0x769   : > { %3350 = vperm.xlu1 %3721, %v2895_v32  }
 0x76d   : > { %3722 = vset.pattern.permute.xlu1 %v8157_v61 }
 0x76e   : > { %3406 = vperm.xlu1 %3722, %v2893_v27  }
 0x772   : > { %3414 = vperm.xlu1 %3722, %v2895_v32  }
 0x776   : > { %3418 = vperm.xlu1 %3722, %v2896_v22  }
 0x791   : > { %v6795_v16 = vpop.permute.xlu1 %2899 }
 0x795   : > { %v6797_v61 = vpop.permute.xlu1 %2909 }
 0x7e1   : > { %v2648_v34 = vpop.f32.mrf.mxu1 }
 0x7e3   : > { %v2650_v11 = vpop.f32.mrf.mxu1 }
 0x7e5   : > { %v2652_v52 = vpop.f32.mrf.mxu1 }
 0x7e6   : > { %v2671_v6 = vpack.c.bf16 %v2652_v52, %v2648_v34 }
 0x7e7   : > { %v2654_v25 = vpop.f32.mrf.mxu1 }
 0x7e8   : > { %v2672_v5 = vpack.c.bf16 %v2654_v25, %v2650_v11  ;;  %v3817_v25 = vld [vmem:[%s3990_s12] sm:$0xff]  ;;  %s8178_s12 = sshll.u32 %s8200_s18, 6 }
 0x7e9   : > { %v2658_v26 = vpop.f32.mrf.mxu1 }
 0x7eb   : > { %v2660_v48 = vpop.f32.mrf.mxu1 }
 0x7ed   : > { %v2662_v51 = vpop.f32.mrf.mxu1 }
 0x7ee   : > { %v2673_v43 = vpack.c.bf16 %v2662_v51, %v2658_v26  ;;  %v3732_v51 = vld [vmem:[%s7424_s9] sm:$0xff]  }
 0x7ef   : > { %v2664_v33 = vpop.f32.mrf.mxu1 }
 0x7f0   : > { %v2674_v59 = vpack.c.bf16 %v2664_v33, %v2660_v48  ;;  %v3733_v33 = vld [vmem:[%s7424_s9 + $0x8] sm:$0xff]  }
 0x7f2   : > { %2703 = vmatprep.subr.bf16.mxu1 %v2674_v59 }
 0x7f3   : > { %2704 = vmatpush1.bf16.msra.mxu1 %v2673_v43 }
 0x7f4   : > { %2705 = vmatprep.subr.bf16.mxu1 %v2672_v5 }
 0x7f7   : > { %2706 = vmatpush1.bf16.msra.mxu1 %v2671_v6 }
 0x7fa   : > { %3599 = vmatmul.mubr.msk.bf16.vlgmr.msra.gmra.mxu1 %vm575_vm0, %v3730_v10 }
 0x7fb   : > { %2733 = vmatprep.mubr.bf16.mxu1 %v8105_v31 }
 0x802   : > { %3600 = vmatmul.mubr.msk.bf16.gmra.mxu1 %vm575_vm0, %v3731_v54 }
 0x8ba   : > { %v2725_v40 = vpop.f32.mrf.mxu1 }
 0x8bb   : > { %v2726_v26 = vadd.f32 %v3817_v25, %v2725_v40 }
 0x8bc   : > { %v2727_v44 = vpop.f32.mrf.mxu1 }
 0x8bd   : > { %v2728_v41 = vadd.f32 %v3815_v21, %v2727_v44 }
 0x8be   : > { %v2729_v23 = vpop.f32.mrf.mxu1 }
 0x8bf   : > { %v2730_v34 = vadd.f32 %v3816_v15, %v2729_v23 }
 0x8c0   : > { %v2731_v38 = vpop.f32.mrf.mxu1 }
 0x8c1   : > { %v2732_v55 = vadd.f32 %v3811_v17, %v2731_v38  ;;  %v2748_v48 = vpack.c.bf16 %v2730_v34, %v2726_v26 }
 0x8c2   : > { %v2735_v13 = vpop.f32.mrf.mxu1 }
 0x8c3   : > { %v2736_v2 = vadd.f32 %v3814_v60, %v2735_v13  ;;  %v2749_v52 = vpack.c.bf16 %v2732_v55, %v2728_v41 }
 0x8c4   : > { %v2737_v9 = vpop.f32.mrf.mxu1 }
 0x8c5   : > { %v2738_v45 = vadd.f32 %v3812_v42, %v2737_v9 }
 0x8c6   : > { %v2739_v30 = vpop.f32.mrf.mxu1 }
 0x8c7   : > { %v2740_v7 = vadd.f32 %v3810_v35, %v2739_v30  ;;  %v6801_v30 = vpop.permute.xlu1 %2914 }
 0x8c8   : > { %v2741_v12 = vpop.f32.mrf.mxu1  ;;  %8158 = vst [vmem:[#allocation60_spill] sm:$0xff] %v6801_v30 }
 0x8c9   : > { %v2742_v1 = vadd.f32 %v3813_v29, %v2741_v12  ;;  %v2750_v11 = vpack.c.bf16 %v2740_v7, %v2736_v2 }
 0x8cb   : > { %v2751_v58 = vpack.c.bf16 %v2742_v1, %v2738_v45  ;;  %v6811_v17 = vpop.permute.xlu1 %2962 }
 0x8cd   : > { %2780 = vmatprep.subr.bf16.mxu0 %v2751_v58 }
 0x8ce   : > { %2781 = vmatpush1.bf16.msra.mxu0 %v2750_v11 }
 0x8cf   : > { %2782 = vmatprep.subr.bf16.mxu0 %v2749_v52  ;;  %v6822_v29 = vpop.permute.xlu1 %2966 }
 0x8d2   : > { %2783 = vmatpush1.bf16.msra.mxu0 %v2748_v48 }
 0x8d3   : > { %v6835_v15 = vpop.permute.xlu1 %3022 }
 0x8d5   : > { %3603 = vmatmul.mubr.msk.bf16.vlgmr.msra.gmra.mxu0 %vm575_vm0, %v3732_v51 }
 0x8d6   : > { %2810 = vmatprep.mubr.bf16.mxu0 %v8105_v31 }
 0x8d7   : > { %v6846_v25 = vpop.permute.xlu1 %3030 }
 0x8d8   : > { %8159 = vst [vmem:[#allocation52_spill] sm:$0xff] %v6846_v25 }
 0x8dd   : > { %3604 = vmatmul.mubr.msk.bf16.gmra.mxu0 %vm575_vm0, %v3733_v33 }
 0x995   : > { %v2802_v59 = vpop.f32.mrf.mxu0 }
 0x996   : > { %v2821_v43 = vmul.f32 %v2802_v59, %v2802_v59 }
 0x997   : > { %v2804_v5 = vpop.f32.mrf.mxu0 }
 0x998   : > { %v2829_v6 = vmul.f32 %v2821_v43, %v2802_v59  ;;  %v2822_v10 = vmul.f32 %v2804_v5, %v2804_v5 }
 0x999   : > { %v2806_v14 = vpop.f32.mrf.mxu0 }
 0x99a   : > { %v2837_v54 = vmul.f32 0.044715, %v2829_v6  ;;  %v2830_v27 = vmul.f32 %v2822_v10, %v2804_v5  ;;  %v2823_v4 = vmul.f32 %v2806_v14, %v2806_v14 }
 0x99b   : > { %v6803_v35 = vpop.f32.mrf.mxu0 }
 0x99c   : > { %v2845_v32 = vadd.f32 %v2837_v54, %v2802_v59  ;;  %v2838_v50 = vmul.f32 0.044715, %v2830_v27  ;;  %v2831_v62 = vmul.f32 %v2823_v4, %v2806_v14  ;;  %v2824_v12 = vmul.f32 %v6803_v35, %v6803_v35 }
 0x99d   : > { %v6828_v2 = vpop.f32.mrf.mxu0 }
 0x99e   : > { %v2853_v22 = vmul.f32 0.7978846, %v2845_v32  ;;  %v2846_v19 = vadd.f32 %v2838_v50, %v2804_v5  ;;  %v2839_v23 = vmul.f32 0.044715, %v2831_v62  ;;  %v2832_v45 = vmul.f32 %v2824_v12, %v6803_v35 }
 0x99f   : > { %v2825_v58 = vmul.f32 %v6828_v2, %v6828_v2  ;;  %v6859_v43 = vpop.f32.mrf.mxu0 }
 0x9a0   : > { %3770 = vtanh.f32 %v2853_v22  ;;  %v2854_v31 = vmul.f32 0.7978846, %v2846_v19  ;;  %v2847_v9 = vadd.f32 %v2839_v23, %v2806_v14  ;;  %v2840_v60 = vmul.f32 0.044715, %v2832_v45 }
 0x9a1   : > { %v2833_v11 = vmul.f32 %v2825_v58, %v6828_v2  ;;  %v2826_v10 = vmul.f32 %v6859_v43, %v6859_v43  ;;  %v6889_v62 = vpop.f32.mrf.mxu0 }
 0x9a2   : > { %3772 = vtanh.f32 %v2854_v31  ;;  %v2855_v7 = vmul.f32 0.7978846, %v2847_v9  ;;  %v2848_v41 = vadd.f32 %v2840_v60, %v6803_v35 }
 0x9a3   : > { %v2841_v48 = vmul.f32 0.044715, %v2833_v11  ;;  %v2834_v27 = vmul.f32 %v2826_v10, %v6859_v43  ;;  %v2818_v11 = vpop.f32.mrf.mxu0 }
 0x9a4   : > { %3774 = vtanh.f32 %v2855_v7  ;;  %v2856_v34 = vmul.f32 0.7978846, %v2848_v41 }
 0x9a5   : > { %v2849_v33 = vadd.f32 %v2841_v48, %v6828_v2  ;;  %v2842_v19 = vmul.f32 0.044715, %v2834_v27  ;;  %v2828_v48 = vmul.f32 %v2818_v11, %v2818_v11 }
 0x9a6   : > { %3776 = vtanh.f32 %v2856_v34 }
 0x9a7   : > { %v2857_v6 = vmul.f32 0.7978846, %v2849_v33  ;;  %v2850_v31 = vadd.f32 %v2842_v19, %v6859_v43 }
 0x9a9   : > { %3778 = vtanh.f32 %v2857_v6  ;;  %v2858_v23 = vmul.f32 0.7978846, %v2850_v31  ;;  %v2836_v6 = vmul.f32 %v2828_v48, %v2818_v11 }
 0x9ab   : > { %3780 = vtanh.f32 %v2858_v23 }
 0x9ad   : > { %v3771_v40 = vpop.eup %3770 }
 0x9ae   : > { %v2869_v44 = vadd.f32 1.0, %v3771_v40  ;;  %v6891_v40 = vpop.permute.xlu0 %2904 }
 0x9af   : > { %v3773_v55 = vpop.eup %3772 }
 0x9b0   : > { %v2877_v38 = vmul.f32 0.5, %v2869_v44  ;;  %v2870_v42 = vadd.f32 1.0, %v3773_v55 }
 0x9b1   : > { %v3775_v52 = vpop.eup %3774 }
 0x9b2   : > { %v6799_v13 = vmul.f32 %v2877_v38, %v2802_v59  ;;  %v2878_v1 = vmul.f32 0.5, %v2870_v42  ;;  %v2871_v26 = vadd.f32 1.0, %v3775_v52  ;;  %v6853_v59 = vpop.permute.xlu1 %3034  ;;  %v2827_v38 = vmul.f32 %v6889_v62, %v6889_v62  ;;  %v6905_v42 = vpop.permute.xlu0 %2958 }
 0x9b3   : > { %8160 = vst [vmem:[#allocation41_spill] sm:$0xff] %v6853_v59  ;;  %v3777_v32 = vpop.eup %3776 }
 0x9b4   : > { %2989 = vrot.lane.b32.xlu1 %v6799_v13, %s3838_s13  ;;  %2925 = vrot.lane.b32.xlu0 %v6799_v13, %s3837_s30  ;;  %v6830_v21 = vmul.f32 %v2878_v1, %v2804_v5  ;;  %v2879_v51 = vmul.f32 0.5, %v2871_v26  ;;  %v2872_v50 = vadd.f32 1.0, %v3777_v32  ;;  %v2835_v55 = vmul.f32 %v2827_v38, %v6889_v62 }
 0x9b5   : > { %v2844_v32 = vmul.f32 0.044715, %v2836_v6 }
 0x9b6   : > { %v6861_v5 = vmul.f32 %v2879_v51, %v2806_v14  ;;  %v6865_v54 = vpop.permute.xlu1 %3090  ;;  %v2880_v14 = vmul.f32 0.5, %v2872_v50  ;;  %v3779_v9 = vpop.eup %3778  ;;  %v2843_v45 = vmul.f32 0.044715, %v2835_v55 }
 0x9b7   : > { %v2873_v12 = vadd.f32 1.0, %v3779_v9  ;;  %v6917_v60 = vpop.permute.xlu0 %2970  ;;  %v2852_v31 = vadd.f32 %v2844_v32, %v2818_v11 }
 0x9b8   : > { %3053 = vrot.lane.b32.xlu1 %v6799_v13, %s3839_s14  ;;  %3117 = vrot.lane.b32.xlu0 %v6799_v13, %s3840_s15  ;;  %v6894_v44 = vmul.f32 %v2880_v14, %v6803_v35  ;;  %8164 = vst [vmem:[#allocation63_spill] sm:$0xff] %v6917_v60  ;;  %v2851_v58 = vadd.f32 %v2843_v45, %v6889_v62  ;;  %v3781_v51 = vpop.eup %3780 }
 0x9b9   : > { %v2881_v35 = vmul.f32 0.5, %v2873_v12  ;;  %v2874_v33 = vadd.f32 1.0, %v3781_v51  ;;  %v2860_v9 = vmul.f32 0.7978846, %v2852_v31 }
 0x9ba   : > { %v6876_v22 = vpop.permute.xlu1 %3094  ;;  %v2859_v26 = vmul.f32 0.7978846, %v2851_v58 }
 0x9bb   : > { %8161 = vst [vmem:[#allocation32_spill] sm:$0xff] %v6876_v22  ;;  %v6920_v41 = vmul.f32 %v2881_v35, %v6828_v2  ;;  %v6929_v52 = vpop.permute.xlu0 %3026  ;;  %v2882_v27 = vmul.f32 0.5, %v2874_v33 }
 0x9bc   : > { %3181 = vrot.lane.b32.xlu1 %v6799_v13, %s3841_s16  ;;  %3245 = vrot.lane.b32.xlu0 %v6799_v13, %s3843_s20  ;;  %3782 = vtanh.f32 %v2859_v26 }
 0x9bd   : > { %v6952_v14 = vmul.f32 %v2882_v27, %v6859_v43  ;;  %3784 = vtanh.f32 %v2860_v9 }
 0x9be   : > { %v6883_v4 = vpop.permute.xlu1 %3150 }
 0x9bf   : > { %v6937_v10 = vpop.permute.xlu0 %3086  ;;  %8167 = vst [vmem:[#allocation62_spill] sm:$0xff] %v6952_v14 }
 0x9c0   : > { %3309 = vrot.lane.b32.xlu1 %v6799_v13, %s3842_s19  ;;  %3373 = vrot.lane.b32.xlu0 %v6799_v13, %s3844_s21 }
 0x9c2   : > { %v6902_v7 = vpop.permute.xlu1 %3158 }
 0x9c3   : > { %8162 = vst [vmem:[#allocation36_spill] sm:$0xff] %v6902_v7  ;;  %v6949_v19 = vpop.permute.xlu0 %3098 }
 0x9c4   : > { %2997 = vrot.lane.b32.xlu1 %v6830_v21, %s3838_s13  ;;  %2933 = vrot.lane.b32.xlu0 %v6830_v21, %s3837_s30  ;;  %8166 = vst [vmem:[#allocation64_spill] sm:$0xff] %v6949_v19 }
 0x9c6   : > { %v6911_v1 = vpop.permute.xlu1 %3162 }
 0x9c7   : > { %8163 = vst [vmem:[#allocation40_spill] sm:$0xff] %v6911_v1  ;;  %v6958_v23 = vpop.permute.xlu0 %3154 }
 0x9c8   : > { %3061 = vrot.lane.b32.xlu1 %v6830_v21, %s3839_s14  ;;  %3125 = vrot.lane.b32.xlu0 %v6830_v21, %s3840_s15 }
 0x9c9   : > { %v3783_v12 = vpop.eup %3782 }
 0x9ca   : > { %v6923_v34 = vpop.permute.xlu1 %3218  ;;  %v2875_v43 = vadd.f32 1.0, %v3783_v12  ;;  %v3785_v6 = vpop.eup %3784 }
 0x9cb   : > { %v6966_v55 = vpop.permute.xlu0 %3214  ;;  %v2876_v27 = vadd.f32 1.0, %v3785_v6 }
 0x9cc   : > { %3189 = vrot.lane.b32.xlu1 %v6830_v21, %s3841_s16  ;;  %3253 = vrot.lane.b32.xlu0 %v6830_v21, %s3843_s20  ;;  %v2883_v45 = vmul.f32 0.5, %v2875_v43 }
 0x9cd   : > { %v2884_v31 = vmul.f32 0.5, %v2876_v27 }
 0x9ce   : > { %v6935_v2 = vpop.permute.xlu1 %3222  ;;  %v6983_v48 = vmul.f32 %v2883_v45, %v6889_v62 }
 0x9cf   : > { %8165 = vst [vmem:[#allocation61_spill] sm:$0xff] %v6935_v2  ;;  %v6980_v26 = vpop.permute.xlu0 %3226  ;;  %v7013_v43 = vmul.f32 %v2884_v31, %v2818_v11  ;;  %v2917_v2 = vmul.f32 %v6795_v16, %v6799_v13 }
 0x9d0   : > { %3317 = vrot.lane.b32.xlu1 %v6830_v21, %s3842_s19  ;;  %3381 = vrot.lane.b32.xlu0 %v6830_v21, %s3844_s21  ;;  %8170 = vst [vmem:[#allocation27_spill] sm:$0xff] %v6980_v26  ;;  %8171 = vst [vmem:[#allocation47_spill] sm:$0xff] %v6983_v48 }
 0x9d1   : > { %8175 = vst [vmem:[#allocation15_spill] sm:$0xff] %v7013_v43 }
 0x9d2   : > { %v6943_v50 = vpop.permute.xlu1 %3278 }
 0x9d3   : > { %v6989_v51 = vpop.permute.xlu0 %3282 }
 0x9d4   : > { %2991 = vrot.lane.b32.xlu0 %v6861_v5, %s3838_s13  ;;  %2927 = vrot.lane.b32.xlu1 %v6861_v5, %s3837_s30 }
 0x9d6   : > { %v6960_v38 = vpop.permute.xlu1 %3286 }
 0x9d7   : > { %8168 = vst [vmem:[#allocation53_spill] sm:$0xff] %v6960_v38  ;;  %v6997_v62 = vpop.permute.xlu0 %3342 }
 0x9d8   : > { %3055 = vrot.lane.b32.xlu0 %v6861_v5, %s3839_s14  ;;  %3119 = vrot.lane.b32.xlu1 %v6861_v5, %s3840_s15 }
 0x9da   : > { %v6968_v35 = vpop.permute.xlu1 %3290 }
 0x9db   : > { %8169 = vst [vmem:[#allocation45_spill] sm:$0xff] %v6968_v35  ;;  %v7009_v9 = vpop.permute.xlu0 %3354 }
 0x9dc   : > { %3183 = vrot.lane.b32.xlu0 %v6861_v5, %s3841_s16  ;;  %3247 = vrot.lane.b32.xlu1 %v6861_v5, %s3843_s20  ;;  %8173 = vst [vmem:[#allocation14_spill] sm:$0xff] %v7009_v9 }
 0x9de   : > { %v6974_v58 = vpop.permute.xlu1 %3346 }
 0x9df   : > { %v7019_v45 = vpop.permute.xlu0 %3410 }
 0x9e0   : > { %3311 = vrot.lane.b32.xlu0 %v6861_v5, %s3842_s19  ;;  %3375 = vrot.lane.b32.xlu1 %v6861_v5, %s3844_s21  ;;  %8176 = vst [vmem:[#allocation33_spill] sm:$0xff] %v7019_v45 }
 0x9e2   : > { %v6991_v33 = vpop.permute.xlu1 %3350 }
 0x9e3   : > { %8172 = vst [vmem:[#allocation55_spill] sm:$0xff] %v6991_v33 }
 0x9e4   : > { %2999 = vrot.lane.b32.xlu0 %v6894_v44, %s3838_s13  ;;  %2935 = vrot.lane.b32.xlu1 %v6894_v44, %s3837_s30 }
 0x9e6   : > { %v6999_v32 = vpop.permute.xlu1 %3406 }
 0x9e8   : > { %3063 = vrot.lane.b32.xlu0 %v6894_v44, %s3839_s14  ;;  %3127 = vrot.lane.b32.xlu1 %v6894_v44, %s3840_s15 }
 0x9ea   : > { %v7011_v12 = vpop.permute.xlu1 %3414 }
 0x9eb   : > { %8174 = vst [vmem:[#allocation24_spill] sm:$0xff] %v7011_v12 }
 0x9ec   : > { %3191 = vrot.lane.b32.xlu0 %v6894_v44, %s3841_s16  ;;  %3255 = vrot.lane.b32.xlu1 %v6894_v44, %s3843_s20 }
 0x9ee   : > { %v7021_v6 = vpop.permute.xlu1 %3418 }
 0x9ef   : > { %8177 = vst [vmem:[#allocation57_spill] sm:$0xff] %v7021_v6 }
 0x9f0   : > { %3319 = vrot.lane.b32.xlu0 %v6894_v44, %s3842_s19  ;;  %2993 = vrot.lane.b32.xlu1 %v6920_v41, %s3838_s13 }
 0x9f4   : > { %3057 = vrot.lane.b32.xlu1 %v6920_v41, %s3839_s14  ;;  %2929 = vrot.lane.b32.xlu0 %v6920_v41, %s3837_s30 }
 0x9f8   : > { %3185 = vrot.lane.b32.xlu1 %v6920_v41, %s3841_s16  ;;  %3121 = vrot.lane.b32.xlu0 %v6920_v41, %s3840_s15 }
 0x9fc   : > { %3313 = vrot.lane.b32.xlu1 %v6920_v41, %s3842_s19  ;;  %3249 = vrot.lane.b32.xlu0 %v6920_v41, %s3843_s20 }
 0xa00   : > { %3377 = vrot.lane.b32.xlu0 %v6920_v41, %s3844_s21  ;;  %3001 = vrot.lane.b32.xlu1 %v6952_v14, %s3838_s13 }
 0xa04   : > { %3065 = vrot.lane.b32.xlu1 %v6952_v14, %s3839_s14  ;;  %2937 = vrot.lane.b32.xlu0 %v6952_v14, %s3837_s30 }
 0xa08   : > { %3193 = vrot.lane.b32.xlu1 %v6952_v14, %s3841_s16  ;;  %3129 = vrot.lane.b32.xlu0 %v6952_v14, %s3840_s15 }
 0xa0c   : > { %3321 = vrot.lane.b32.xlu1 %v6952_v14, %s3842_s19  ;;  %3257 = vrot.lane.b32.xlu0 %v6952_v14, %s3843_s20 }
 0xa10   : > { %2995 = vrot.lane.b32.xlu0 %v6983_v48, %s3838_s13  ;;  %2931 = vrot.lane.b32.xlu1 %v6983_v48, %s3837_s30 }
 0xa14   : > { %3059 = vrot.lane.b32.xlu0 %v6983_v48, %s3839_s14  ;;  %3123 = vrot.lane.b32.xlu1 %v6983_v48, %s3840_s15 }
 0xa18   : > { %3187 = vrot.lane.b32.xlu0 %v6983_v48, %s3841_s16  ;;  %3251 = vrot.lane.b32.xlu1 %v6983_v48, %s3843_s20 }
 0xa1c   : > { %3315 = vrot.lane.b32.xlu0 %v6983_v48, %s3842_s19  ;;  %3379 = vrot.lane.b32.xlu1 %v6983_v48, %s3844_s21 }
 0xa20   : > { %3003 = vrot.lane.b32.xlu0 %v7013_v43, %s3838_s13  ;;  %2939 = vrot.lane.b32.xlu1 %v7013_v43, %s3837_s30 }
 0xa24   : > { %3067 = vrot.lane.b32.xlu0 %v7013_v43, %s3839_s14  ;;  %3383 = vrot.lane.b32.xlu1 %v6894_v44, %s3844_s21  ;;  %s7193_s14 = scalar_lea.vmem %s7426_s11, %s8178_s12 }
 0xa26   : > { %v2990_v27 = vpop.permute.xlu1 %2989  ;;  %v2926_v12 = vpop.permute.xlu0 %2925 }
 0xa28   : > { %3195 = vrot.lane.b32.xlu0 %v7013_v43, %s3841_s16  ;;  %3131 = vrot.lane.b32.xlu1 %v7013_v43, %s3840_s15 }
 0xa2a   : > { %v3054_v11 = vpop.permute.xlu1 %3053  ;;  %v3118_v31 = vpop.permute.xlu0 %3117 }
 0xa2c   : > { %3323 = vrot.lane.b32.xlu0 %v7013_v43, %s3842_s19  ;;  %3259 = vrot.lane.b32.xlu1 %v7013_v43, %s3843_s20 }
 0xa2e   : > { %v3182_v6 = vpop.permute.xlu1 %3181  ;;  %v3246_v35 = vpop.permute.xlu0 %3245 }
 0xa30   : > { %3385 = vrot.lane.b32.xlu0 %v6952_v14, %s3844_s21  ;;  %3387 = vrot.lane.b32.xlu1 %v7013_v43, %s3844_s21 }
 0xa32   : > { %v3310_v9 = vpop.permute.xlu1 %3309  ;;  %v7039_v1 = vpop.permute.xlu0 %3373 }
 0xa36   : > { %v2998_v26 = vpop.permute.xlu1 %2997  ;;  %v2934_v45 = vpop.permute.xlu0 %2933 }
 0xa37   : > { %v3005_v19 = vsel %vm1038_vm2, %v2990_v27, %v2998_v26  ;;  %v3009_v60 = vsel %vm1038_vm2, %v2998_v26, %v2990_v27  ;;  %v2941_v59 = vsel %vm837_vm1, %v2926_v12, %v2934_v45  ;;  %v2945_v33 = vsel %vm837_vm1, %v2934_v45, %v2926_v12 }
 0xa38   : > { %v3013_v38 = vmul.f32 %v3009_v60, %v8086_v3  ;;  %v3014_v43 = vmul.f32 %v3005_v19, %v8087_v24  ;;  %v2949_v30 = vmul.f32 %v2945_v33, %v8108_v39  ;;  %v2950_v48 = vmul.f32 %v2941_v59, %v8111_v56 }
 0xa39   : > { %v2918_v26 = vmul.f32 %v6795_v16, %v6830_v21 }
 0xa3a   : > { %v3037_v27 = vmul.f32 %v6835_v15, %v3013_v38  ;;  %v3038_v7 = vmul.f32 %v6835_v15, %v3014_v43  ;;  %v2973_v12 = vmul.f32 %v6905_v42, %v2949_v30  ;;  %v2974_v60 = vmul.f32 %v6905_v42, %v2950_v48  ;;  %v3062_v45 = vpop.permute.xlu1 %3061  ;;  %v3126_v19 = vpop.permute.xlu0 %3125 }
 0xa3b   : > { %v3069_v33 = vsel %vm1239_vm3, %v3054_v11, %v3062_v45  ;;  %v3073_v59 = vsel %vm1239_vm3, %v3062_v45, %v3054_v11  ;;  %v3133_v13 = vsel %vm1440_vm4, %v3118_v31, %v3126_v19  ;;  %v3137_v16 = vsel %vm1440_vm4, %v3126_v19, %v3118_v31 }
 0xa3c   : > { %v2981_v21 = vadd.f32 %v2973_v12, %v2917_v2  ;;  %v2982_v15 = vadd.f32 %v2974_v60, %v2918_v26  ;;  %v3077_v30 = vmul.f32 %v3073_v59, %v8088_v28  ;;  %v3078_v42 = vmul.f32 %v3069_v33, %v8089_v57 }
 0xa3d   : > { %v3141_v38 = vmul.f32 %v3137_v16, %v8090_v63  ;;  %v3142_v48 = vmul.f32 %v3133_v13, %v8091_v18 }
 0xa3e   : > { %v3045_v43 = vadd.f32 %v3037_v27, %v2981_v21  ;;  %v3046_v22 = vadd.f32 %v3038_v7, %v2982_v15  ;;  %v3101_v11 = vmul.f32 %v6937_v10, %v3077_v30  ;;  %v3102_v45 = vmul.f32 %v6937_v10, %v3078_v42  ;;  %v3190_v25 = vpop.permute.xlu1 %3189  ;;  %v3254_v14 = vpop.permute.xlu0 %3253 }
 0xa3f   : > { %v3165_v31 = vmul.f32 %v6883_v4, %v3141_v38  ;;  %v3166_v2 = vmul.f32 %v6883_v4, %v3142_v48  ;;  %v3197_v26 = vsel %vm1641_vm5, %v3182_v6, %v3190_v25  ;;  %v3201_v12 = vsel %vm1641_vm5, %v3190_v25, %v3182_v6 }
 0xa40   : > { %v3109_v60 = vadd.f32 %v3101_v11, %v3045_v43  ;;  %v3110_v19 = vadd.f32 %v3102_v45, %v3046_v22  ;;  %v3205_v7 = vmul.f32 %v3197_v26, %v8092_v20  ;;  %v3206_v27 = vmul.f32 %v3201_v12, %v8093_v49 }
 0xa41   : > { %v3261_v10 = vsel %vm1842_vm7, %v3246_v35, %v3254_v14  ;;  %v3265_v33 = vsel %vm1842_vm7, %v3254_v14, %v3246_v35 }
 0xa42   : > { %v3173_v59 = vadd.f32 %v3165_v31, %v3109_v60  ;;  %v3174_v4 = vadd.f32 %v3166_v2, %v3110_v19  ;;  %v3229_v13 = vmul.f32 %v6966_v55, %v3205_v7  ;;  %v3230_v16 = vmul.f32 %v6966_v55, %v3206_v27  ;;  %v3318_v21 = vpop.permute.xlu1 %3317  ;;  %v3382_v25 = vpop.permute.xlu0 %3381 }
 0xa43   : > { %v3269_v22 = vmul.f32 %v3261_v10, %v7918_v47  ;;  %v3270_v6 = vmul.f32 %v3265_v33, %v4899_v46  ;;  %v3325_v15 = vsel %vm2043_vm6, %v3310_v9, %v3318_v21  ;;  %v3329_v30 = vsel %vm2043_vm6, %v3318_v21, %v3310_v9 }
 0xa44   : > { %v3237_v42 = vadd.f32 %v3229_v13, %v3173_v59  ;;  %v3238_v14 = vadd.f32 %v3230_v16, %v3174_v4  ;;  %v3333_v35 = vmul.f32 %v3325_v15, %v4856_v36  ;;  %v3334_v38 = vmul.f32 %v3329_v30, %v4859_v37 }
 0xa45   : > { %v3293_v55 = vmul.f32 %v6943_v50, %v3269_v22  ;;  %v3294_v48 = vmul.f32 %v6943_v50, %v3270_v6  ;;  %v3389_v43 = vsel %vm2244_vm8, %v7039_v1, %v3382_v25  ;;  %v3393_v11 = vsel %vm2244_vm8, %v3382_v25, %v7039_v1 }
 0xa46   : > { %v3357_v9 = vmul.f32 %v6997_v62, %v3333_v35  ;;  %v3358_v45 = vmul.f32 %v6997_v62, %v3334_v38  ;;  %v3397_v31 = vmul.f32 %v6704_v53, %v3389_v43  ;;  %v3398_v2 = vmul.f32 %v6710_v8, %v3393_v11  ;;  %v2992_v26 = vpop.permute.xlu0 %2991  ;;  %v2928_v12 = vpop.permute.xlu1 %2927 }
 0xa47   : > { %v3301_v60 = vadd.f32 %v3293_v55, %v3237_v42  ;;  %v3302_v50 = vadd.f32 %v3294_v48, %v3238_v14 }
 0xa48   : > { %v3421_v27 = vmul.f32 %v6999_v32, %v3397_v31  ;;  %v3422_v10 = vmul.f32 %v6999_v32, %v3398_v2 }
 0xa49   : > { %v3365_v19 = vadd.f32 %v3357_v9, %v3301_v60  ;;  %v3366_v7 = vadd.f32 %v3358_v45, %v3302_v50 }
 0xa4a   : > { %v3056_v33 = vpop.permute.xlu0 %3055  ;;  %v3120_v1 = vpop.permute.xlu1 %3119 }
 0xa4b   : > { %v7111_v59 = vadd.f32 %v3421_v27, %v3365_v19  ;;  %v7113_v4 = vadd.f32 %v3422_v10, %v3366_v7  ;;  %v2920_v19 = vmul.f32 %v6891_v40, %v6894_v44 }
 0xa4d   : > { %v3437_v53 = vmul.f32 %v7111_v59, %v7111_v59  ;;  %v3438_v8 = vmul.f32 %v7113_v4, %v7113_v4 }
 0xa4e   : > { %v3184_v62 = vpop.permute.xlu0 %3183  ;;  %v3248_v13 = vpop.permute.xlu1 %3247 }
 0xa4f   : > { %v3445_v16 = vmul.f32 %v3437_v53, %v7111_v59  ;;  %v3446_v21 = vmul.f32 %v3438_v8, %v7113_v4 }
 0xa51   : > { %v3453_v25 = vmul.f32 0.044715, %v3445_v16  ;;  %v3454_v32 = vmul.f32 0.044715, %v3446_v21 }
 0xa52   : > { %v7121_v22 = vpop.permute.xlu0 %3311  ;;  %v7123_v6 = vpop.permute.xlu1 %3375 }
 0xa53   : > { %v3461_v15 = vadd.f32 %v3453_v25, %v7111_v59  ;;  %v3462_v30 = vadd.f32 %v3454_v32, %v7113_v4 }
 0xa55   : > { %v3469_v42 = vmul.f32 0.7978846, %v3461_v15  ;;  %v3470_v14 = vmul.f32 0.7978846, %v3462_v30 }
 0xa56   : > { %v3000_v35 = vpop.permute.xlu0 %2999  ;;  %v2936_v38 = vpop.permute.xlu1 %2935 }
 0xa57   : > { %3786 = vtanh.f32 %v3469_v42  ;;  %v3006_v55 = vsel %vm1038_vm2, %v2992_v26, %v3000_v35  ;;  %v3010_v48 = vsel %vm1038_vm2, %v3000_v35, %v2992_v26  ;;  %v2942_v43 = vsel %vm837_vm1, %v2928_v12, %v2936_v38 }
 0xa58   : > { %3788 = vtanh.f32 %v3470_v14  ;;  %v3015_v11 = vmul.f32 %v3010_v48, %v8086_v3  ;;  %v3016_v9 = vmul.f32 %v3006_v55, %v8087_v24  ;;  %v2946_v45 = vsel %vm837_vm1, %v2936_v38, %v2928_v12 }
 0xa59   : > { %v2951_v31 = vmul.f32 %v2946_v45, %v8108_v39  ;;  %v2952_v2 = vmul.f32 %v2942_v43, %v8111_v56  ;;  %v2919_v26 = vmul.f32 %v6891_v40, %v6861_v5 }
 0xa5a   : > { %v3039_v60 = vmul.f32 %v6929_v52, %v3015_v11  ;;  %v3040_v50 = vmul.f32 %v6929_v52, %v3016_v9  ;;  %v3064_v7 = vpop.permute.xlu0 %3063  ;;  %v3128_v27 = vpop.permute.xlu1 %3127 }
 0xa5b   : > { %v2975_v10 = vmul.f32 %v6811_v17, %v2951_v31  ;;  %v2976_v12 = vmul.f32 %v6811_v17, %v2952_v2  ;;  %v3070_v53 = vsel %vm1239_vm3, %v3056_v33, %v3064_v7  ;;  %v3074_v8 = vsel %vm1239_vm3, %v3064_v7, %v3056_v33 }
 0xa5c   : > { %v3079_v52 = vmul.f32 %v3074_v8, %v8088_v28  ;;  %v3080_v16 = vmul.f32 %v3070_v53, %v8089_v57  ;;  %v3134_v5 = vsel %vm1440_vm4, %v3120_v1, %v3128_v27  ;;  %v3138_v40 = vsel %vm1440_vm4, %v3128_v27, %v3120_v1 }
 0xa5d   : > { %v2983_v44 = vadd.f32 %v2975_v10, %v2919_v26  ;;  %v2984_v21 = vadd.f32 %v2976_v12, %v2920_v19  ;;  %v3143_v17 = vmul.f32 %v3138_v40, %v8090_v63  ;;  %v3144_v25 = vmul.f32 %v3134_v5, %v8091_v18 }
 0xa5e   : > { %v3103_v32 = vmul.f32 %v6865_v54, %v3079_v52  ;;  %v3104_v33 = vmul.f32 %v6865_v54, %v3080_v16  ;;  %v3192_v15 = vpop.permute.xlu0 %3191  ;;  %v3256_v30 = vpop.permute.xlu1 %3255 }
 0xa5f   : > { %v3047_v42 = vadd.f32 %v3039_v60, %v2983_v44  ;;  %v3048_v14 = vadd.f32 %v3040_v50, %v2984_v21  ;;  %v3167_v35 = vmul.f32 %v6958_v23, %v3143_v17  ;;  %v3168_v38 = vmul.f32 %v6958_v23, %v3144_v25 }
 0xa60   : > { %v3198_v1 = vsel %vm1641_vm5, %v3184_v62, %v3192_v15  ;;  %v3202_v55 = vsel %vm1641_vm5, %v3192_v15, %v3184_v62  ;;  %v3262_v48 = vsel %vm1842_vm7, %v3248_v13, %v3256_v30  ;;  %v3266_v54 = vsel %vm1842_vm7, %v3256_v30, %v3248_v13 }
 0xa61   : > { %v3111_v43 = vadd.f32 %v3103_v32, %v3047_v42  ;;  %v3112_v11 = vadd.f32 %v3104_v33, %v3048_v14  ;;  %v3207_v9 = vmul.f32 %v3198_v1, %v8092_v20  ;;  %v3208_v45 = vmul.f32 %v3202_v55, %v8093_v49 }
 0xa62   : > { %v3271_v23 = vmul.f32 %v3262_v48, %v7918_v47  ;;  %v3272_v31 = vmul.f32 %v3266_v54, %v4899_v46  ;;  %v3320_v2 = vpop.permute.xlu0 %3319  ;;  %v2994_v60 = vpop.permute.xlu1 %2993 }
 0xa63   : > { %v3175_v50 = vadd.f32 %v3167_v35, %v3111_v43  ;;  %v3176_v62 = vadd.f32 %v3168_v38, %v3112_v11  ;;  %v3231_v26 = vmul.f32 %v6923_v34, %v3207_v9  ;;  %v3232_v19 = vmul.f32 %v6923_v34, %v3208_v45 }
 0xa64   : > { %v3787_v7 = vpop.eup %3786  ;;  %v3295_v13 = vmul.f32 %v6989_v51, %v3271_v23  ;;  %v3296_v27 = vmul.f32 %v6989_v51, %v3272_v31  ;;  %v3326_v10 = vsel %vm2043_vm6, %v7121_v22, %v3320_v2  ;;  %v3330_v12 = vsel %vm2043_vm6, %v3320_v2, %v7121_v22 }
 0xa65   : > { %v3789_v53 = vpop.eup %3788  ;;  %v3485_v8 = vadd.f32 1.0, %v3787_v7  ;;  %v3239_v52 = vadd.f32 %v3231_v26, %v3175_v50  ;;  %v3240_v16 = vadd.f32 %v3232_v19, %v3176_v62  ;;  %v3335_v34 = vmul.f32 %v3326_v10, %v4856_v36  ;;  %v8179_v19 = vld [vmem:[#allocation62_spill] sm:$0xff] }
 0xa66   : > { %v3486_v5 = vadd.f32 1.0, %v3789_v53  ;;  %v3336_v40 = vmul.f32 %v3330_v12, %v4859_v37  ;;  %v3058_v44 = vpop.permute.xlu1 %3057  ;;  %v2930_v51 = vpop.permute.xlu0 %2929  ;;  %v2921_v26 = vmul.f32 %v6797_v61, %v6920_v41  ;;  %v2922_v7 = vmul.f32 %v6797_v61, %v8179_v19 }
 0xa67   : > { %v3493_v21 = vmul.f32 0.5, %v3485_v8  ;;  %v3303_v17 = vadd.f32 %v3295_v13, %v3239_v52  ;;  %v3304_v25 = vadd.f32 %v3296_v27, %v3240_v16  ;;  %v3359_v32 = vmul.f32 %v6974_v58, %v3335_v34  ;;  %v8180_v34 = vld [vmem:[#allocation52_spill] sm:$0xff] }
 0xa68   : > { %v3494_v22 = vmul.f32 0.5, %v3486_v5  ;;  %v3360_v33 = vmul.f32 %v6974_v58, %v3336_v40 }
 0xa69   : > { %v3501_v15 = vmul.f32 %v3493_v21, %v7111_v59  ;;  %v7197_v30 = vadd.f32 %v3359_v32, %v3303_v17 }
 0xa6a   : > { %v3502_v42 = vmul.f32 %v3494_v22, %v7113_v4  ;;  %v7200_v14 = vadd.f32 %v3360_v33, %v3304_v25  ;;  %v3186_v35 = vpop.permute.xlu1 %3185  ;;  %v3122_v38 = vpop.permute.xlu0 %3121  ;;  %v8181_v25 = vld [vmem:[#allocation32_spill] sm:$0xff] }
 0xa6b   : > { %3509 = vst [vmem:[%s7193_s14] sm:$0xff] %v3501_v15 }
 0xa6c   : > { %3510 = vst [vmem:[%s7193_s14 + $0x8] sm:$0xff] %v3502_v42 }
 0xa6e   : > { %v3314_v1 = vpop.permute.xlu1 %3313  ;;  %v3250_v55 = vpop.permute.xlu0 %3249 }
 0xa72   : > { %v7204_v48 = vpop.permute.xlu0 %3377  ;;  %v3002_v54 = vpop.permute.xlu1 %3001 }
 0xa73   : > { %v3007_v31 = vsel %vm1038_vm2, %v2994_v60, %v3002_v54  ;;  %v3011_v2 = vsel %vm1038_vm2, %v3002_v54, %v2994_v60 }
 0xa74   : > { %v3017_v10 = vmul.f32 %v3011_v2, %v8086_v3  ;;  %v3018_v12 = vmul.f32 %v3007_v31, %v8087_v24  ;;  %v8182_v31 = vld [vmem:[#allocation36_spill] sm:$0xff] }
 0xa76   : > { %v3066_v43 = vpop.permute.xlu1 %3065  ;;  %v2938_v11 = vpop.permute.xlu0 %2937  ;;  %v3041_v5 = vmul.f32 %v8180_v34, %v3017_v10  ;;  %v3042_v40 = vmul.f32 %v8180_v34, %v3018_v12 }
 0xa77   : > { %v2943_v58 = vsel %vm837_vm1, %v2930_v51, %v2938_v11  ;;  %v2947_v59 = vsel %vm837_vm1, %v2938_v11, %v2930_v51  ;;  %v3071_v53 = vsel %vm1239_vm3, %v3058_v44, %v3066_v43  ;;  %v3075_v60 = vsel %vm1239_vm3, %v3066_v43, %v3058_v44 }
 0xa78   : > { %v2953_v4 = vmul.f32 %v2947_v59, %v8108_v39  ;;  %v2954_v9 = vmul.f32 %v2943_v58, %v8111_v56  ;;  %v3081_v52 = vmul.f32 %v3075_v60, %v8088_v28  ;;  %v3082_v41 = vmul.f32 %v3071_v53, %v8089_v57 }
 0xa7a   : > { %v3194_v45 = vpop.permute.xlu1 %3193  ;;  %v3130_v23 = vpop.permute.xlu0 %3129  ;;  %v2977_v50 = vmul.f32 %v6822_v29, %v2953_v4  ;;  %v2978_v62 = vmul.f32 %v6822_v29, %v2954_v9  ;;  %v3105_v32 = vmul.f32 %v8181_v25, %v3081_v52  ;;  %v3106_v22 = vmul.f32 %v8181_v25, %v3082_v41 }
 0xa7b   : > { %v3135_v51 = vsel %vm1440_vm4, %v3122_v38, %v3130_v23  ;;  %v3139_v21 = vsel %vm1440_vm4, %v3130_v23, %v3122_v38  ;;  %v3199_v42 = vsel %vm1641_vm5, %v3186_v35, %v3194_v45  ;;  %v3203_v54 = vsel %vm1641_vm5, %v3194_v45, %v3186_v35 }
 0xa7c   : > { %v2985_v8 = vadd.f32 %v2977_v50, %v2921_v26  ;;  %v2986_v29 = vadd.f32 %v2978_v62, %v2922_v7  ;;  %v3145_v43 = vmul.f32 %v3139_v21, %v8090_v63  ;;  %v3146_v11 = vmul.f32 %v3135_v51, %v8091_v18  ;;  %v8187_v21 = vld [vmem:[#allocation53_spill] sm:$0xff] }
 0xa7d   : > { %v3209_v59 = vmul.f32 %v3199_v42, %v8092_v20  ;;  %v3210_v4 = vmul.f32 %v3203_v54, %v8093_v49 }
 0xa7e   : > { %v3322_v13 = vpop.permute.xlu1 %3321  ;;  %v3258_v27 = vpop.permute.xlu0 %3257  ;;  %v3049_v17 = vadd.f32 %v3041_v5, %v2985_v8  ;;  %v3050_v44 = vadd.f32 %v3042_v40, %v2986_v29  ;;  %v3169_v2 = vmul.f32 %v8182_v31, %v3145_v43  ;;  %v3170_v50 = vmul.f32 %v8182_v31, %v3146_v11  ;;  %v8183_v8 = vld [vmem:[#allocation61_spill] sm:$0xff]  ;;  %v8184_v5 = vld [vmem:[#allocation47_spill] sm:$0xff] }
 0xa7f   : > { %v3263_v35 = vsel %vm1842_vm7, %v3250_v55, %v3258_v27  ;;  %v3267_v45 = vsel %vm1842_vm7, %v3258_v27, %v3250_v55  ;;  %v3327_v19 = vsel %vm2043_vm6, %v3314_v1, %v3322_v13  ;;  %v3331_v7 = vsel %vm2043_vm6, %v3322_v13, %v3314_v1  ;;  %v8185_v1 = vld [vmem:[#allocation60_spill] sm:$0xff]  ;;  %v8186_v40 = vld [vmem:[#allocation15_spill] sm:$0xff] }
 0xa80   : > { %v3113_v38 = vadd.f32 %v3105_v32, %v3049_v17  ;;  %v3114_v58 = vadd.f32 %v3106_v22, %v3050_v44  ;;  %v3273_v10 = vmul.f32 %v3263_v35, %v7918_v47  ;;  %v3274_v12 = vmul.f32 %v3267_v45, %v4899_v46  ;;  %v8189_v35 = vld [vmem:[#allocation41_spill] sm:$0xff] }
 0xa81   : > { %v3233_v29 = vmul.f32 %v8183_v8, %v3209_v59  ;;  %v3234_v55 = vmul.f32 %v8183_v8, %v3210_v4  ;;  %v3337_v27 = vmul.f32 %v3327_v19, %v4856_v36  ;;  %v3338_v52 = vmul.f32 %v3331_v7, %v4859_v37  ;;  %v8188_v4 = vld [vmem:[#allocation55_spill] sm:$0xff] }
 0xa82   : > { %v2996_v16 = vpop.permute.xlu0 %2995  ;;  %v2932_v61 = vpop.permute.xlu1 %2931  ;;  %v3177_v62 = vadd.f32 %v3169_v2, %v3113_v38  ;;  %v3178_v26 = vadd.f32 %v3170_v50, %v3114_v58  ;;  %v2923_v13 = vmul.f32 %v8185_v1, %v8184_v5  ;;  %v2924_v51 = vmul.f32 %v8185_v1, %v8186_v40  ;;  %v8191_v5 = vld [vmem:[#allocation64_spill] sm:$0xff] }
 0xa83   : > { %v3297_v17 = vmul.f32 %v8187_v21, %v3273_v10  ;;  %v3298_v44 = vmul.f32 %v8187_v21, %v3274_v12  ;;  %v3361_v31 = vmul.f32 %v8188_v4, %v3337_v27  ;;  %v3362_v2 = vmul.f32 %v8188_v4, %v3338_v52  ;;  %v7311_v27 = vld [vmem:[%s7422_s7 + $0x10] ss:$0 sm:$0xff]  ;;  %v7317_v52 = vld [vmem:[%s7422_s7 + $0x18] ss:$0 sm:$0xff] }
 0xa84   : > { %v3241_v41 = vadd.f32 %v3233_v29, %v3177_v62  ;;  %v3242_v34 = vadd.f32 %v3234_v55, %v3178_v26  ;;  %v8190_v26 = vld [vmem:[#allocation63_spill] sm:$0xff]  ;;  %v8192_v21 = vld [vmem:[#allocation33_spill] sm:$0xff] }
 0xa86   : > { %v3060_v33 = vpop.permute.xlu0 %3059  ;;  %v7238_v15 = vpop.permute.xlu1 %3123  ;;  %v3305_v50 = vadd.f32 %v3297_v17, %v3241_v41 }
 0xa88   : > { %v7320_v41 = vadd.f32 %v3361_v31, %v3305_v50 }
 0xa8a   : > { %v7248_v9 = vpop.permute.xlu0 %3187  ;;  %v7250_v23 = vpop.permute.xlu1 %3251 }
 0xa8e   : > { %v7264_v53 = vpop.permute.xlu0 %3315  ;;  %v7266_v60 = vpop.permute.xlu1 %3379 }
 0xa92   : > { %v3004_v25 = vpop.permute.xlu0 %3003  ;;  %v2940_v32 = vpop.permute.xlu1 %2939 }
 0xa93   : > { %v3008_v22 = vsel %vm1038_vm2, %v2996_v16, %v3004_v25  ;;  %v3012_v42 = vsel %vm1038_vm2, %v3004_v25, %v2996_v16  ;;  %v2944_v54 = vsel %vm837_vm1, %v2932_v61, %v2940_v32  ;;  %v2948_v43 = vsel %vm837_vm1, %v2940_v32, %v2932_v61 }
 0xa94   : > { %v3019_v11 = vmul.f32 %v3012_v42, %v8086_v3  ;;  %v3020_v38 = vmul.f32 %v3008_v22, %v8087_v24  ;;  %v2955_v58 = vmul.f32 %v2948_v43, %v8108_v39  ;;  %v2956_v59 = vmul.f32 %v2944_v54, %v8111_v56 }
 0xa95   : > { %v3306_v16 = vadd.f32 %v3298_v44, %v3242_v34 }
 0xa96   : > { %v3043_v45 = vmul.f32 %v8189_v35, %v3019_v11  ;;  %v3044_v62 = vmul.f32 %v8189_v35, %v3020_v38  ;;  %v2979_v61 = vmul.f32 %v8190_v26, %v2955_v58  ;;  %v2980_v3 = vmul.f32 %v8190_v26, %v2956_v59  ;;  %v3068_v19 = vpop.permute.xlu0 %3067  ;;  %v3384_v24 = vpop.permute.xlu1 %3383  ;;  %v8193_v59 = vld [vmem:[#allocation27_spill] sm:$0xff]  ;;  %v8194_v35 = vld [vmem:[#allocation40_spill] sm:$0xff] }
 0xa97   : > { %v3072_v39 = vsel %vm1239_vm3, %v3060_v33, %v3068_v19  ;;  %v3076_v56 = vsel %vm1239_vm3, %v3068_v19, %v3060_v33  ;;  %v3390_v7 = vsel %vm2244_vm8, %v7123_v6, %v3384_v24  ;;  %v3394_v10 = vsel %vm2244_vm8, %v3384_v24, %v7123_v6 }
 0xa98   : > { %v2987_v12 = vadd.f32 %v2979_v61, %v2923_v13  ;;  %v2988_v8 = vadd.f32 %v2980_v3, %v2924_v51  ;;  %v3083_v29 = vmul.f32 %v3076_v56, %v8088_v28  ;;  %v3084_v55 = vmul.f32 %v3072_v39, %v8089_v57  ;;  %v8195_v39 = vld [vmem:[#allocation14_spill] sm:$0xff] }
 0xa99   : > { %v3399_v33 = vmul.f32 %v7311_v27, %v3390_v7  ;;  %v3400_v6 = vmul.f32 %v7317_v52, %v3394_v10  ;;  %v7322_v34 = vadd.f32 %v3362_v2, %v3306_v16 }
 0xa9a   : > { %v3051_v28 = vadd.f32 %v3043_v45, %v2987_v12  ;;  %v3052_v57 = vadd.f32 %v3044_v62, %v2988_v8  ;;  %v3107_v1 = vmul.f32 %v8191_v5, %v3083_v29  ;;  %v3108_v13 = vmul.f32 %v8191_v5, %v3084_v55  ;;  %v3196_v40 = vpop.permute.xlu0 %3195  ;;  %v3132_v51 = vpop.permute.xlu1 %3131  ;;  %v8196_v5 = vld [vmem:[#allocation45_spill] sm:$0xff] }
 0xa9b   : > { %v3423_v17 = vmul.f32 %v8192_v21, %v3399_v33  ;;  %v3424_v44 = vmul.f32 %v8192_v21, %v3400_v6  ;;  %v3200_v25 = vsel %vm1641_vm5, %v7248_v9, %v3196_v40  ;;  %v3204_v32 = vsel %vm1641_vm5, %v3196_v40, %v7248_v9 }
 0xa9c   : > { %v3115_v22 = vadd.f32 %v3107_v1, %v3051_v28  ;;  %v3116_v42 = vadd.f32 %v3108_v13, %v3052_v57  ;;  %v3211_v54 = vmul.f32 %v3200_v25, %v8092_v20  ;;  %v3212_v43 = vmul.f32 %v3204_v32, %v8093_v49  ;;  %v8197_v25 = vld [vmem:[#allocation24_spill] sm:$0xff] }
 0xa9d   : > { %v7337_v11 = vadd.f32 %v3423_v17, %v7197_v30  ;;  %v7340_v38 = vadd.f32 %v3424_v44, %v7200_v14  ;;  %v3136_v58 = vsel %vm1440_vm4, %v7238_v15, %v3132_v51  ;;  %v3140_v9 = vsel %vm1440_vm4, %v3132_v51, %v7238_v15 }
 0xa9e   : > { %v3235_v4 = vmul.f32 %v8193_v59, %v3211_v54  ;;  %v3236_v20 = vmul.f32 %v8193_v59, %v3212_v43  ;;  %v3147_v49 = vmul.f32 %v3140_v9, %v8090_v63  ;;  %v3148_v30 = vmul.f32 %v3136_v58, %v8091_v18  ;;  %v3324_v31 = vpop.permute.xlu0 %3323  ;;  %v3260_v2 = vpop.permute.xlu1 %3259 }
 0xa9f   : > { %v3439_v14 = vmul.f32 %v7337_v11, %v7337_v11  ;;  %v3440_v50 = vmul.f32 %v7340_v38, %v7340_v38  ;;  %v3328_v15 = vsel %vm2043_vm6, %v7264_v53, %v3324_v31  ;;  %v3332_v16 = vsel %vm2043_vm6, %v3324_v31, %v7264_v53 }
 0xaa0   : > { %v3171_v63 = vmul.f32 %v8194_v35, %v3147_v49  ;;  %v3172_v18 = vmul.f32 %v8194_v35, %v3148_v30  ;;  %v3339_v45 = vmul.f32 %v3328_v15, %v4856_v36  ;;  %v3340_v62 = vmul.f32 %v3332_v16, %v4859_v37 }
 0xaa1   : > { %v3447_v26 = vmul.f32 %v3439_v14, %v7337_v11  ;;  %v3448_v61 = vmul.f32 %v3440_v50, %v7340_v38  ;;  %v3264_v3 = vsel %vm1842_vm7, %v7250_v23, %v3260_v2  ;;  %v3268_v53 = vsel %vm1842_vm7, %v3260_v2, %v7250_v23 }
 0xaa2   : > { %v3179_v19 = vadd.f32 %v3171_v63, %v3115_v22  ;;  %v3180_v24 = vadd.f32 %v3172_v18, %v3116_v42  ;;  %v3363_v56 = vmul.f32 %v8195_v39, %v3339_v45  ;;  %v3364_v36 = vmul.f32 %v8195_v39, %v3340_v62  ;;  %v3386_v7 = vpop.permute.xlu0 %3385  ;;  %v3388_v29 = vpop.permute.xlu1 %3387 }
 0xaa3   : > { %v3455_v37 = vmul.f32 0.044715, %v3447_v26  ;;  %v3456_v10 = vmul.f32 0.044715, %v3448_v61  ;;  %v3275_v12 = vmul.f32 %v3264_v3, %v7918_v47  ;;  %v3276_v8 = vmul.f32 %v3268_v53, %v4899_v46 }
 0xaa4   : > { %v3243_v55 = vadd.f32 %v3235_v4, %v3179_v19  ;;  %v3244_v33 = vadd.f32 %v3236_v20, %v3180_v24  ;;  %v3391_v23 = vsel %vm2244_vm8, %v7204_v48, %v3386_v7  ;;  %v3395_v6 = vsel %vm2244_vm8, %v3386_v7, %v7204_v48 }
 0xaa5   : > { %v3463_v28 = vadd.f32 %v3455_v37, %v7337_v11  ;;  %v3464_v57 = vadd.f32 %v3456_v10, %v7340_v38  ;;  %v3299_v1 = vmul.f32 %v8196_v5, %v3275_v12  ;;  %v3300_v47 = vmul.f32 %v8196_v5, %v3276_v8 }
 0xaa6   : > { %v3401_v46 = vmul.f32 %v7311_v27, %v3391_v23  ;;  %v3402_v13 = vmul.f32 %v7317_v52, %v3395_v6  ;;  %v3392_v40 = vsel %vm2244_vm8, %v7266_v60, %v3388_v29  ;;  %v3396_v48 = vsel %vm2244_vm8, %v3388_v29, %v7266_v60  ;;  %v8198_v60 = vld [vmem:[#allocation57_spill] sm:$0xff] }
 0xaa7   : > { %v3471_v51 = vmul.f32 0.7978846, %v3463_v28  ;;  %v3472_v21 = vmul.f32 0.7978846, %v3464_v57  ;;  %v3307_v17 = vadd.f32 %v3299_v1, %v3243_v55  ;;  %v3308_v44 = vadd.f32 %v3300_v47, %v3244_v33 }
 0xaa8   : > { %v3425_v32 = vmul.f32 %v8197_v25, %v3401_v46  ;;  %v3426_v22 = vmul.f32 %v8197_v25, %v3402_v13  ;;  %v3403_v42 = vmul.f32 %v7311_v27, %v3392_v40  ;;  %v3404_v54 = vmul.f32 %v7317_v52, %v3396_v48 }
 0xaa9   : > { %3790 = vtanh.f32 %v3471_v51  ;;  %v3371_v43 = vadd.f32 %v3363_v56, %v3307_v17  ;;  %v3372_v58 = vadd.f32 %v3364_v36, %v3308_v44 }
 0xaaa   : > { %3792 = vtanh.f32 %v3472_v21  ;;  %v3433_v9 = vadd.f32 %v3425_v32, %v7320_v41  ;;  %v3434_v0 = vadd.f32 %v3426_v22, %v7322_v34  ;;  %v3427_v59 = vmul.f32 %v8198_v60, %v3403_v42 }
 0xaab   : > { %v3428_v4 = vmul.f32 %v8198_v60, %v3404_v54 }
 0xaac   : > { %v3441_v20 = vmul.f32 %v3433_v9, %v3433_v9  ;;  %v3442_v49 = vmul.f32 %v3434_v0, %v3434_v0  ;;  %v3435_v30 = vadd.f32 %v3427_v59, %v3371_v43 }
 0xaad   : > { %v3436_v31 = vadd.f32 %v3428_v4, %v3372_v58 }
 0xaae   : > { %v3449_v2 = vmul.f32 %v3441_v20, %v3433_v9  ;;  %v3450_v27 = vmul.f32 %v3442_v49, %v3434_v0  ;;  %v3443_v14 = vmul.f32 %v3435_v30, %v3435_v30 }
 0xaaf   : > { %v3444_v52 = vmul.f32 %v3436_v31, %v3436_v31 }
 0xab0   : > { %v3457_v50 = vmul.f32 0.044715, %v3449_v2  ;;  %v3458_v15 = vmul.f32 0.044715, %v3450_v27  ;;  %v3451_v16 = vmul.f32 %v3443_v14, %v3435_v30 }
 0xab1   : > { %v3452_v35 = vmul.f32 %v3444_v52, %v3436_v31 }
 0xab2   : > { %v3465_v63 = vadd.f32 %v3457_v50, %v3433_v9  ;;  %v3466_v41 = vadd.f32 %v3458_v15, %v3434_v0  ;;  %v3459_v18 = vmul.f32 0.044715, %v3451_v16 }
 0xab3   : > { %v3460_v34 = vmul.f32 0.044715, %v3452_v35 }
 0xab4   : > { %v3473_v45 = vmul.f32 0.7978846, %v3465_v63  ;;  %v3474_v62 = vmul.f32 0.7978846, %v3466_v41  ;;  %v3467_v26 = vadd.f32 %v3459_v18, %v3435_v30 }
 0xab5   : > { %v3468_v61 = vadd.f32 %v3460_v34, %v3436_v31 }
 0xab6   : > { %v3791_v3 = vpop.eup %3790  ;;  %3794 = vtanh.f32 %v3473_v45  ;;  %v3475_v53 = vmul.f32 0.7978846, %v3467_v26 }
 0xab7   : > { %v3793_v19 = vpop.eup %3792  ;;  %v3487_v24 = vadd.f32 1.0, %v3791_v3  ;;  %3796 = vtanh.f32 %v3474_v62  ;;  %v3476_v39 = vmul.f32 0.7978846, %v3468_v61 }
 0xab8   : > { %v3488_v56 = vadd.f32 1.0, %v3793_v19  ;;  %3798 = vtanh.f32 %v3475_v53 }
 0xab9   : > { %v3495_v36 = vmul.f32 0.5, %v3487_v24  ;;  %3800 = vtanh.f32 %v3476_v39 }
 0xaba   : > { %v3496_v7 = vmul.f32 0.5, %v3488_v56 }
 0xabb   : > { %v3503_v37 = vmul.f32 %v3495_v36, %v7337_v11 }
 0xabc   : > { %v3504_v10 = vmul.f32 %v3496_v7, %v7340_v38 }
 0xabd   : > { %3511 = vst [vmem:[%s7193_s14 + $0x10] sm:$0xff] %v3503_v37 }
 0xabe   : > { %3512 = vst [vmem:[%s7193_s14 + $0x18] sm:$0xff] %v3504_v10 }
 0xac3   : > { %v3795_v12 = vpop.eup %3794 }
 0xac4   : > { %v3797_v8 = vpop.eup %3796  ;;  %v3489_v29 = vadd.f32 1.0, %v3795_v12 }
 0xac5   : > { %v3799_v55 = vpop.eup %3798  ;;  %v3490_v33 = vadd.f32 1.0, %v3797_v8 }
 0xac6   : > { %v3801_v23 = vpop.eup %3800  ;;  %v3497_v6 = vmul.f32 0.5, %v3489_v29  ;;  %v3491_v28 = vadd.f32 1.0, %v3799_v55 }
 0xac7   : > { %v3498_v57 = vmul.f32 0.5, %v3490_v33  ;;  %v3492_v5 = vadd.f32 1.0, %v3801_v23 }
 0xac8   : > { %v3505_v1 = vmul.f32 %v3497_v6, %v3433_v9  ;;  %v3499_v11 = vmul.f32 0.5, %v3491_v28 }
 0xac9   : > { %v3506_v47 = vmul.f32 %v3498_v57, %v3434_v0  ;;  %v3500_v38 = vmul.f32 0.5, %v3492_v5 }
 0xaca   : > { %3513 = vst [vmem:[%s7193_s14 + $0x20] sm:$0xff] %v3505_v1  ;;  %v3507_v46 = vmul.f32 %v3499_v11, %v3435_v30 }
 0xacb   : > { %3514 = vst [vmem:[%s7193_s14 + $0x28] sm:$0xff] %v3506_v47  ;;  %v3508_v13 = vmul.f32 %v3500_v38, %v3436_v31 }
 0xacc   : > { %3515 = vst [vmem:[%s7193_s14 + $0x30] sm:$0xff] %v3507_v46 }
 0xacd   : > { %3516 = vst [vmem:[%s7193_s14 + $0x38] sm:$0xff] %v3508_v13 }
 0xace PF: > { %s21_s17 = sadd.s32 1, %s3826_s17  }
 0xacf   : > { %p18_p4 = scmp.ge.s32.totalorder %s21_s17, 4  }
 0xad1   :  { %20 = sbr.rel (!%p18_p4) target bundleno = 1 (0x1), region = 94 }

</bundles_post_ra>
